<compile_context>
chip_gen: v7x
topology: tpu7x:2x2x1
jax: 0.10.0
libtpu: 0.0.40
codegen_flags: <defaults>
</compile_context>

<pallas_src>
import functools

import numpy as np
import jax
import jax.numpy as jnp
from jax.experimental import pallas as pl
from jax.experimental.pallas import tpu as pltpu

# ----------------------------- configuration --------------------------------
IN_CHANNELS = 1
INPUT_SHAPE = (16, 16)     # (H, W)
LATENT_DIM = 8
NUM_GROUPS = 8
C1, C2 = 16, 32            # encoder hidden channels (decoder mirrors them)
KSIZE = 3
GN_EPS = 1e-5


# ----------------------------- fused Pallas kernel ---------------------------
def _vae_fused_kernel(
    x_ref, eps_ref,
    op1_ref, b1_ref, g1_ref, be1_ref,
    op2_ref, b2_ref, g2_ref, be2_ref,
    wmulv_ref, bmulv_ref,
    opd1_ref, bd1_ref, gd1_ref, bed1_ref,
    opd2_ref, bd2_ref,
    mulv_ref, xhat_ref,
    *, num_groups, gn_eps, latent_dim,
):
    def mm(a, w_ref):
        # bf16 operands into the MXU, f32 accumulation.
        return jnp.dot(a.astype(jnp.bfloat16), w_ref[...],
                       preferred_element_type=jnp.float32)

    def gn_silu(act, gamma, beta):
        # GroupNorm over contiguous channel-major column blocks (one block per group).
        # Lane reductions on VPU/XLU, no MXU matmuls; all math in f32.
        cols = act.shape[-1]
        s = cols // num_groups
        pieces = []
        for g in range(num_groups):
            blk = act[:, g * s:(g + 1) * s]
            m = jnp.mean(blk, axis=-1, keepdims=True)
            d = blk - m
            v = jnp.mean(d * d, axis=-1, keepdims=True)     # biased var (PyTorch GN)
            pieces.append(d * jax.lax.rsqrt(v + gn_eps))
        y = jnp.concatenate(pieces, axis=-1)
        y = y * gamma + beta
        return y * jax.nn.sigmoid(y)                         # SiLU

    x = x_ref[...]                                           # (N, Cin*H*W) f32

    # --- encoder ---
    h = mm(x, op1_ref) + b1_ref[...]                         # conv1  -> (N, C1*Q1)
    h = gn_silu(h, g1_ref[...], be1_ref[...])
    h = mm(h, op2_ref) + b2_ref[...]                         # conv2  -> (N, C2*Q2) == (N, Fe)
    h = gn_silu(h, g2_ref[...], be2_ref[...])

    # --- latent heads (merged mu | logvar) ---
    mulv = mm(h, wmulv_ref) + bmulv_ref[...]                 # (N, 2L)
    mu = mulv[:, :latent_dim]
    logvar = jnp.clip(mulv[:, latent_dim:], -10.0, 10.0)

    # --- reparameterize (clamps as in the reference module) ---
    z = jnp.clip(mu + eps_ref[...] * jnp.exp(0.5 * logvar), -10.0, 10.0)

    # --- decoder (fc folded into the convT1 operator) ---
    d = mm(z, opd1_ref) + bd1_ref[...]                       # fc+convT1 -> (N, C1*Qd1)
    d = gn_silu(d, gd1_ref[...], bed1_ref[...])
    xh = mm(d, opd2_ref) + bd2_ref[...]                      # convT2 -> (N, Cin*H*W)

    mulv_ref[...] = jnp.concatenate([mu, logvar], axis=-1)
    xhat_ref[...] = xh


# ------------------- host-side operator construction -------------------------
def _conv_operator(w_oikk, hi, wi, stride, pad):
    """Dense operator M: (Cin*Hi*Wi, Cout*Ho*Wo) s.t. flatten(out) = flatten(x) @ M (channel-major)."""
    w = np.asarray(w_oikk, dtype=np.float32)         # (Cout, Cin, k, k)
    cout, cin, k, _ = w.shape
    ho = (hi + 2 * pad - k) // stride + 1
    wo = (wi + 2 * pad - k) // stride + 1
    m = np.zeros((cin, hi, wi, cout, ho, wo), np.float32)
    for kh in range(k):
        for kw in range(k):
            wt = w[:, :, kh, kw].T                   # (Cin, Cout)
            for oh in range(ho):
                ih = oh * stride + kh - pad
                if ih < 0 or ih >= hi:
                    continue
                for ow in range(wo):
                    iw = ow * stride + kw - pad
                    if iw < 0 or iw >= wi:
                        continue
                    m[:, ih, iw, :, oh, ow] += wt
    return m.reshape(cin * hi * wi, cout * ho * wo), (ho, wo)


def _convT_operator(w_iokk, hi, wi, stride, pad, out_pad):
    """Dense operator for PyTorch ConvTranspose2d (weight (Cin, Cout, k, k))."""
    w = np.asarray(w_iokk, dtype=np.float32)         # (Cin, Cout, k, k)
    cin, cout, k, _ = w.shape
    ho = (hi - 1) * stride - 2 * pad + k + out_pad
    wo = (wi - 1) * stride - 2 * pad + k + out_pad
    m = np.zeros((cin, hi, wi, cout, ho, wo), np.float32)
    for kh in range(k):
        for kw in range(k):
            wt = w[:, :, kh, kw]                     # (Cin, Cout)
            for ih in range(hi):
                oh = ih * stride - pad + kh
                if oh < 0 or oh >= ho:
                    continue
                for iw in range(wi):
                    ow = iw * stride - pad + kw
                    if ow < 0 or ow >= wo:
                        continue
                    m[:, ih, iw, :, oh, ow] += wt
    return m.reshape(cin * hi * wi, cout * ho * wo), (ho, wo)


def _per_channel_cols(v, q):
    """Broadcast a per-channel vector to channel-major columns: (1, C*Q)."""
    v = np.asarray(v, dtype=np.float32)
    return np.repeat(v, q).reshape(1, -1)


# ----------------------------- parameters -----------------------------------
def init_params(key):
    ks = jax.random.split(key, 8)
    s = 0.05
    Fe = C2 * (INPUT_SHAPE[0] // 4) * (INPUT_SHAPE[1] // 4)
    p = {
        "enc_w1": jax.random.normal(ks[0], (C1, IN_CHANNELS, KSIZE, KSIZE), jnp.float32) * s,
        "enc_b1": jnp.zeros((C1,), jnp.float32),
        "enc_g1": jnp.ones((C1,), jnp.float32),
        "enc_beta1": jnp.zeros((C1,), jnp.float32),
        "enc_w2": jax.random.normal(ks[1], (C2, C1, KSIZE, KSIZE), jnp.float32) * s,
        "enc_b2": jnp.zeros((C2,), jnp.float32),
        "enc_g2": jnp.ones((C2,), jnp.float32),
        "enc_beta2": jnp.zeros((C2,), jnp.float32),
        "enc_wmu": jax.random.normal(ks[2], (Fe, LATENT_DIM), jnp.float32) * s,
        "enc_bmu": jnp.zeros((LATENT_DIM,), jnp.float32),
        "enc_wlv": jax.random.normal(ks[3], (Fe, LATENT_DIM), jnp.float32) * s,
        "enc_blv": jnp.zeros((LATENT_DIM,), jnp.float32),
        "dec_wfc": jax.random.normal(ks[4], (LATENT_DIM, Fe), jnp.float32) * s,
        "dec_bfc": jnp.zeros((Fe,), jnp.float32),
        "dec_w1": jax.random.normal(ks[5], (C2, C1, KSIZE, KSIZE), jnp.float32) * s,   # ConvT(C2->C1)
        "dec_b1": jnp.zeros((C1,), jnp.float32),
        "dec_g1": jnp.ones((C1,), jnp.float32),
        "dec_beta1": jnp.zeros((C1,), jnp.float32),
        "dec_w2": jax.random.normal(ks[6], (C1, IN_CHANNELS, KSIZE, KSIZE), jnp.float32) * s,  # ConvT(C1->Cin)
        "dec_b2": jnp.zeros((IN_CHANNELS,), jnp.float32),
    }
    return p


# ----------------------------- forward builder --------------------------------
def make_vae_forward(params, batch_size):
    H, W = INPUT_SHAPE
    N, L = batch_size, LATENT_DIM

    # --- fold every conv layer into a dense operator matrix (host side, once) ---
    op1, (h1, w1) = _conv_operator(params["enc_w1"], H, W, stride=2, pad=1)
    op2, (h2, w2) = _conv_operator(params["enc_w2"], h1, w1, stride=2, pad=1)
    opd1, (hd1, wd1) = _convT_operator(params["dec_w1"], h2, w2, stride=2, pad=1, out_pad=1)
    opd2, (hd2, wd2) = _convT_operator(params["dec_w2"], hd1, wd1, stride=2, pad=1, out_pad=1)
    q1, q2, qd1, qd2 = h1 * w1, h2 * w2, hd1 * wd1, hd2 * wd2
    Fe = C2 * q2

    assert op1.shape[0] == IN_CHANNELS * H * W
    assert op2.shape[1] == Fe == params["enc_wmu"].shape[0]
    assert opd1.shape == (Fe, C1 * qd1) and opd2.shape[0] == C1 * qd1

    # --- fold decoder FC into convT1 (exact: no nonlinearity between them) ---
    wfc = np.asarray(params["dec_wfc"], np.float32)                      # (L, Fe)
    bfc = np.asarray(params["dec_bfc"], np.float32)                      # (Fe,)
    opd1f = wfc @ opd1                                                   # (L, C1*Qd1)
    bd1f = (bfc @ opd1).reshape(1, -1) + _per_channel_cols(params["dec_b1"], qd1)

    # --- merge mu / logvar heads into one matrix + one bias row ---
    wmulv = np.concatenate([np.asarray(params["enc_wmu"], np.float32),
                            np.asarray(params["enc_wlv"], np.float32)], axis=1)   # (Fe, 2L)
    bmulv = np.concatenate([np.asarray(params["enc_bmu"], np.float32),
                            np.asarray(params["enc_blv"], np.float32)]).reshape(1, -1)

    np_ops = {
        "op1": op1, "b1": _per_channel_cols(params["enc_b1"], q1),
        "g1": _per_channel_cols(params["enc_g1"], q1), "be1": _per_channel_cols(params["enc_beta1"], q1),
        "op2": op2, "b2": _per_channel_cols(params["enc_b2"], q2),
        "g2": _per_channel_cols(params["enc_g2"], q2), "be2": _per_channel_cols(params["enc_beta2"], q2),
        "wmulv": wmulv, "bmulv": bmulv,
        "opd1f": opd1f, "bd1f": bd1f,
        "gd1": _per_channel_cols(params["dec_g1"], qd1), "bed1": _per_channel_cols(params["dec_beta1"], qd1),
        "opd2": opd2, "bd2": _per_channel_cols(params["dec_b2"], qd2),
    }
    names = ["op1", "b1", "g1", "be1", "op2", "b2", "g2", "be2",
             "wmulv", "bmulv", "opd1f", "bd1f", "gd1", "bed1", "opd2", "bd2"]
    # Large MXU operands in bf16 (halves weight DMA); biases/affine stay f32.
    bf16_names = {"op1", "op2", "wmulv", "opd1f", "opd2"}
    consts = tuple(jnp.asarray(np_ops[n],
                               jnp.bfloat16 if n in bf16_names else jnp.float32)
                   for n in names)

    # --- cost estimate: TRUE conv flops, not dense-operator structural zeros ---
    kk = KSIZE * KSIZE
    flops = (2 * N * (C1 * q1) * (IN_CHANNELS * kk)        # conv1
             + 2 * N * (C2 * q2) * (C1 * kk)               # conv2
             + 2 * N * Fe * (2 * L)                        # mu/logvar head
             + 2 * N * L * (C1 * qd1)                      # folded fc+convT1 (actual matmul)
             + 2 * N * (IN_CHANNELS * qd2) * (C1 * kk)     # convT2
             + 10 * N * (C1 * q1 + C2 * q2 + C1 * qd1))    # GN + SiLU epilogues
    transc = N * (C1 * q1 + C2 * q2 + C1 * qd1 + L)
    bytes_acc = (sum(int(c.size) * c.dtype.itemsize for c in consts)
                 + 4 * N * (IN_CHANNELS * H * W + L + 2 * L + IN_CHANNELS * qd2))
    cost = pl.CostEstimate(flops=int(flops), transcendentals=int(transc),
                           bytes_accessed=int(bytes_acc))

    # --- single fused pallas_call: NO grid -> single invocation, no pipeline
    #     double-buffering of the constants; everything resident in VMEM (~2 MiB). ---
    vmem_spec = pl.BlockSpec(memory_space=pltpu.MemorySpace.VMEM)
    n_inputs = 2 + len(names)
    out_shape = (jax.ShapeDtypeStruct((N, 2 * L), jnp.float32),
                 jax.ShapeDtypeStruct((N, IN_CHANNELS * qd2), jnp.float32))

    fused = pl.pallas_call(
        functools.partial(_vae_fused_kernel, num_groups=NUM_GROUPS,
                          gn_eps=GN_EPS, latent_dim=L),
        out_shape=out_shape,
        in_specs=[vmem_spec] * n_inputs,
        out_specs=(vmem_spec, vmem_spec),
        compiler_params=pltpu.CompilerParams(vmem_limit_bytes=16 * 1024 * 1024),
        cost_estimate=cost,
    )
    # TODO(synk): if batch grows beyond toy sizes, add a batch grid axis (TM=128/256)
    # with constant-index weight BlockSpecs and mark it "parallel" (v7x megacore);
    # the dense-operator trick itself does not scale past ~32x32 inputs (switch to
    # im2col-style (Cin*k*k, Cout) matmuls + spatial tiling then).

    def forward(x_nchw, eps_noise, const_args):
        n = x_nchw.shape[0]
        x_flat = x_nchw.reshape(n, -1).astype(jnp.float32)    # NCHW flatten == channel-major cols
        mulv, xhat_flat = fused(x_flat, eps_noise.astype(jnp.float32), *const_args)
        mu, logvar = mulv[:, :L], mulv[:, L:]
        x_hat = xhat_flat.reshape(n, IN_CHANNELS, hd2, wd2)   # back to NCHW

        # --- _match_output_length on the last (W / time) dim, as in the reference ---
        T_out, T_target = x_hat.shape[-1], x_nchw.shape[-1]
        if T_out > T_target:
            x_hat = x_hat[..., :T_target]
        elif T_out < T_target:
            x_hat = jnp.pad(
                x_hat,
                ((0, 0),) * (x_hat.ndim - 1) + ((0, T_target - T_out),),
                mode="constant", constant_values=0.0,
            )
        return x_hat, mu, logvar

    return forward, consts


# --------------------------------- main ---------------------------------------
if __name__ == "__main__":
    key = jax.random.PRNGKey(0)
    kx, keps = jax.random.split(key)
    N = 2
    x = jax.random.normal(kx, (N, IN_CHANNELS, *INPUT_SHAPE), jnp.float32)
    eps_noise = jax.random.normal(keps, (N, LATENT_DIM), jnp.float32)
    params = init_params(jax.random.PRNGKey(42))

    forward, consts = make_vae_forward(params, batch_size=N)
    fwd = jax.jit(forward)
    x_hat, mu, logvar = fwd(x, eps_noise, consts)
    jax.block_until_ready((x_hat, mu, logvar))

    # NaN checks mirroring the PyTorch module's warnings
    if bool(jnp.isnan(mu).any()) or bool(jnp.isnan(logvar).any()):
        print("[WARN] NaNs in latent parameters")
    if bool(jnp.isnan(x_hat).any()):
        print("[WARN] NaNs in reconstruction")

    assert x_hat.shape == x.shape
    assert mu.shape == (N, LATENT_DIM) and logvar.shape == (N, LATENT_DIM)
    print("KERNEL_OK")
</pallas_src>

<mosaic_0001>
module attributes {stable_mosaic.version = 11 : i64} {
  func.func @_vae_fused_kernel(%arg0: memref<2x256xf32, #tpu.memory_space<vmem>>, %arg1: memref<2x8xf32, #tpu.memory_space<vmem>>, %arg2: memref<256x1024xbf16, #tpu.memory_space<vmem>>, %arg3: memref<1x1024xf32, #tpu.memory_space<vmem>>, %arg4: memref<1x1024xf32, #tpu.memory_space<vmem>>, %arg5: memref<1x1024xf32, #tpu.memory_space<vmem>>, %arg6: memref<1024x512xbf16, #tpu.memory_space<vmem>>, %arg7: memref<1x512xf32, #tpu.memory_space<vmem>>, %arg8: memref<1x512xf32, #tpu.memory_space<vmem>>, %arg9: memref<1x512xf32, #tpu.memory_space<vmem>>, %arg10: memref<512x16xbf16, #tpu.memory_space<vmem>>, %arg11: memref<1x16xf32, #tpu.memory_space<vmem>>, %arg12: memref<8x1024xbf16, #tpu.memory_space<vmem>>, %arg13: memref<1x1024xf32, #tpu.memory_space<vmem>>, %arg14: memref<1x1024xf32, #tpu.memory_space<vmem>>, %arg15: memref<1x1024xf32, #tpu.memory_space<vmem>>, %arg16: memref<1024x256xbf16, #tpu.memory_space<vmem>>, %arg17: memref<1x256xf32, #tpu.memory_space<vmem>>, %arg18: memref<2x16xf32, #tpu.memory_space<vmem>>, %arg19: memref<2x256xf32, #tpu.memory_space<vmem>>) attributes {dimension_semantics = [], scalar_prefetch = 0 : i64, scratch_operands = 0 : i64, tpu.core_type = #tpu.core_type<tc>} {
    %c0 = arith.constant 0 : index
    %c0_0 = arith.constant 0 : index
    %0 = vector.load %arg0[%c0, %c0_0] : memref<2x256xf32, #tpu.memory_space<vmem>>, vector<2x256xf32>
    %1 = arith.truncf %0 : vector<2x256xf32> to vector<2x256xbf16>
    %c0_1 = arith.constant 0 : index
    %c0_2 = arith.constant 0 : index
    %2 = vector.load %arg2[%c0_1, %c0_2] : memref<256x1024xbf16, #tpu.memory_space<vmem>>, vector<256x1024xbf16>
    %cst = arith.constant dense<0.000000e+00> : vector<2x1024xf32>
    %3 = tpu.matmul %1, %2, %cst {dimension_numbers = #tpu.dot_dimension_numbers<[1], [0], [0], [1], [0, 0, 1, 1], [], []>} : vector<2x256xbf16>, vector<256x1024xbf16>, vector<2x1024xf32> -> vector<2x1024xf32>
    %c0_3 = arith.constant 0 : index
    %c0_4 = arith.constant 0 : index
    %4 = vector.load %arg3[%c0_3, %c0_4] : memref<1x1024xf32, #tpu.memory_space<vmem>>, vector<1x1024xf32>
    %5 = vector.broadcast %4 : vector<1x1024xf32> to vector<2x1024xf32>
    %6 = arith.addf %3, %5 : vector<2x1024xf32>
    %c0_5 = arith.constant 0 : index
    %c0_6 = arith.constant 0 : index
    %7 = vector.load %arg4[%c0_5, %c0_6] : memref<1x1024xf32, #tpu.memory_space<vmem>>, vector<1x1024xf32>
    %c0_7 = arith.constant 0 : index
    %c0_8 = arith.constant 0 : index
    %8 = vector.load %arg5[%c0_7, %c0_8] : memref<1x1024xf32, #tpu.memory_space<vmem>>, vector<1x1024xf32>
    %9 = vector.extract_strided_slice %6 {offsets = [0, 0], sizes = [2, 128], strides = [1, 1]} : vector<2x1024xf32> to vector<2x128xf32>
    %cst_9 = arith.constant dense<0.000000e+00> : vector<2xf32>
    %10 = vector.multi_reduction <add>, %9, %cst_9 [1] : vector<2x128xf32> to vector<2xf32>
    %11 = vector.shape_cast %10 : vector<2xf32> to vector<2x1xf32>
    %cst_10 = arith.constant 1.280000e+02 : f32
    %12 = vector.broadcast %cst_10 : f32 to vector<2x1xf32>
    %13 = arith.divf %11, %12 : vector<2x1xf32>
    %14 = vector.broadcast %13 : vector<2x1xf32> to vector<2x128xf32>
    %15 = arith.subf %9, %14 : vector<2x128xf32>
    %16 = arith.mulf %15, %15 : vector<2x128xf32>
    %cst_11 = arith.constant dense<0.000000e+00> : vector<2xf32>
    %17 = vector.multi_reduction <add>, %16, %cst_11 [1] : vector<2x128xf32> to vector<2xf32>
    %18 = vector.shape_cast %17 : vector<2xf32> to vector<2x1xf32>
    %cst_12 = arith.constant 1.280000e+02 : f32
    %19 = vector.broadcast %cst_12 : f32 to vector<2x1xf32>
    %20 = arith.divf %18, %19 : vector<2x1xf32>
    %cst_13 = arith.constant 9.99999974E-6 : f32
    %21 = vector.broadcast %cst_13 : f32 to vector<2x1xf32>
    %22 = arith.addf %20, %21 : vector<2x1xf32>
    %23 = math.rsqrt %22 : vector<2x1xf32>
    %24 = vector.broadcast %23 : vector<2x1xf32> to vector<2x128xf32>
    %25 = arith.mulf %15, %24 : vector<2x128xf32>
    %26 = vector.extract_strided_slice %6 {offsets = [0, 128], sizes = [2, 128], strides = [1, 1]} : vector<2x1024xf32> to vector<2x128xf32>
    %cst_14 = arith.constant dense<0.000000e+00> : vector<2xf32>
    %27 = vector.multi_reduction <add>, %26, %cst_14 [1] : vector<2x128xf32> to vector<2xf32>
    %28 = vector.shape_cast %27 : vector<2xf32> to vector<2x1xf32>
    %cst_15 = arith.constant 1.280000e+02 : f32
    %29 = vector.broadcast %cst_15 : f32 to vector<2x1xf32>
    %30 = arith.divf %28, %29 : vector<2x1xf32>
    %31 = vector.broadcast %30 : vector<2x1xf32> to vector<2x128xf32>
    %32 = arith.subf %26, %31 : vector<2x128xf32>
    %33 = arith.mulf %32, %32 : vector<2x128xf32>
    %cst_16 = arith.constant dense<0.000000e+00> : vector<2xf32>
    %34 = vector.multi_reduction <add>, %33, %cst_16 [1] : vector<2x128xf32> to vector<2xf32>
    %35 = vector.shape_cast %34 : vector<2xf32> to vector<2x1xf32>
    %cst_17 = arith.constant 1.280000e+02 : f32
    %36 = vector.broadcast %cst_17 : f32 to vector<2x1xf32>
    %37 = arith.divf %35, %36 : vector<2x1xf32>
    %cst_18 = arith.constant 9.99999974E-6 : f32
    %38 = vector.broadcast %cst_18 : f32 to vector<2x1xf32>
    %39 = arith.addf %37, %38 : vector<2x1xf32>
    %40 = math.rsqrt %39 : vector<2x1xf32>
    %41 = vector.broadcast %40 : vector<2x1xf32> to vector<2x128xf32>
    %42 = arith.mulf %32, %41 : vector<2x128xf32>
    %43 = vector.extract_strided_slice %6 {offsets = [0, 256], sizes = [2, 128], strides = [1, 1]} : vector<2x1024xf32> to vector<2x128xf32>
    %cst_19 = arith.constant dense<0.000000e+00> : vector<2xf32>
    %44 = vector.multi_reduction <add>, %43, %cst_19 [1] : vector<2x128xf32> to vector<2xf32>
    %45 = vector.shape_cast %44 : vector<2xf32> to vector<2x1xf32>
    %cst_20 = arith.constant 1.280000e+02 : f32
    %46 = vector.broadcast %cst_20 : f32 to vector<2x1xf32>
    %47 = arith.divf %45, %46 : vector<2x1xf32>
    %48 = vector.broadcast %47 : vector<2x1xf32> to vector<2x128xf32>
    %49 = arith.subf %43, %48 : vector<2x128xf32>
    %50 = arith.mulf %49, %49 : vector<2x128xf32>
    %cst_21 = arith.constant dense<0.000000e+00> : vector<2xf32>
    %51 = vector.multi_reduction <add>, %50, %cst_21 [1] : vector<2x128xf32> to vector<2xf32>
    %52 = vector.shape_cast %51 : vector<2xf32> to vector<2x1xf32>
    %cst_22 = arith.constant 1.280000e+02 : f32
    %53 = vector.broadcast %cst_22 : f32 to vector<2x1xf32>
    %54 = arith.divf %52, %53 : vector<2x1xf32>
    %cst_23 = arith.constant 9.99999974E-6 : f32
    %55 = vector.broadcast %cst_23 : f32 to vector<2x1xf32>
    %56 = arith.addf %54, %55 : vector<2x1xf32>
    %57 = math.rsqrt %56 : vector<2x1xf32>
    %58 = vector.broadcast %57 : vector<2x1xf32> to vector<2x128xf32>
    %59 = arith.mulf %49, %58 : vector<2x128xf32>
    %60 = vector.extract_strided_slice %6 {offsets = [0, 384], sizes = [2, 128], strides = [1, 1]} : vector<2x1024xf32> to vector<2x128xf32>
    %cst_24 = arith.constant dense<0.000000e+00> : vector<2xf32>
    %61 = vector.multi_reduction <add>, %60, %cst_24 [1] : vector<2x128xf32> to vector<2xf32>
    %62 = vector.shape_cast %61 : vector<2xf32> to vector<2x1xf32>
    %cst_25 = arith.constant 1.280000e+02 : f32
    %63 = vector.broadcast %cst_25 : f32 to vector<2x1xf32>
    %64 = arith.divf %62, %63 : vector<2x1xf32>
    %65 = vector.broadcast %64 : vector<2x1xf32> to vector<2x128xf32>
    %66 = arith.subf %60, %65 : vector<2x128xf32>
    %67 = arith.mulf %66, %66 : vector<2x128xf32>
    %cst_26 = arith.constant dense<0.000000e+00> : vector<2xf32>
    %68 = vector.multi_reduction <add>, %67, %cst_26 [1] : vector<2x128xf32> to vector<2xf32>
    %69 = vector.shape_cast %68 : vector<2xf32> to vector<2x1xf32>
    %cst_27 = arith.constant 1.280000e+02 : f32
    %70 = vector.broadcast %cst_27 : f32 to vector<2x1xf32>
    %71 = arith.divf %69, %70 : vector<2x1xf32>
    %cst_28 = arith.constant 9.99999974E-6 : f32
    %72 = vector.broadcast %cst_28 : f32 to vector<2x1xf32>
    %73 = arith.addf %71, %72 : vector<2x1xf32>
    %74 = math.rsqrt %73 : vector<2x1xf32>
    %75 = vector.broadcast %74 : vector<2x1xf32> to vector<2x128xf32>
    %76 = arith.mulf %66, %75 : vector<2x128xf32>
    %77 = vector.extract_strided_slice %6 {offsets = [0, 512], sizes = [2, 128], strides = [1, 1]} : vector<2x1024xf32> to vector<2x128xf32>
    %cst_29 = arith.constant dense<0.000000e+00> : vector<2xf32>
    %78 = vector.multi_reduction <add>, %77, %cst_29 [1] : vector<2x128xf32> to vector<2xf32>
    %79 = vector.shape_cast %78 : vector<2xf32> to vector<2x1xf32>
    %cst_30 = arith.constant 1.280000e+02 : f32
    %80 = vector.broadcast %cst_30 : f32 to vector<2x1xf32>
    %81 = arith.divf %79, %80 : vector<2x1xf32>
    %82 = vector.broadcast %81 : vector<2x1xf32> to vector<2x128xf32>
    %83 = arith.subf %77, %82 : vector<2x128xf32>
    %84 = arith.mulf %83, %83 : vector<2x128xf32>
    %cst_31 = arith.constant dense<0.000000e+00> : vector<2xf32>
    %85 = vector.multi_reduction <add>, %84, %cst_31 [1] : vector<2x128xf32> to vector<2xf32>
    %86 = vector.shape_cast %85 : vector<2xf32> to vector<2x1xf32>
    %cst_32 = arith.constant 1.280000e+02 : f32
    %87 = vector.broadcast %cst_32 : f32 to vector<2x1xf32>
    %88 = arith.divf %86, %87 : vector<2x1xf32>
    %cst_33 = arith.constant 9.99999974E-6 : f32
    %89 = vector.broadcast %cst_33 : f32 to vector<2x1xf32>
    %90 = arith.addf %88, %89 : vector<2x1xf32>
    %91 = math.rsqrt %90 : vector<2x1xf32>
    %92 = vector.broadcast %91 : vector<2x1xf32> to vector<2x128xf32>
    %93 = arith.mulf %83, %92 : vector<2x128xf32>
    %94 = vector.extract_strided_slice %6 {offsets = [0, 640], sizes = [2, 128], strides = [1, 1]} : vector<2x1024xf32> to vector<2x128xf32>
    %cst_34 = arith.constant dense<0.000000e+00> : vector<2xf32>
    %95 = vector.multi_reduction <add>, %94, %cst_34 [1] : vector<2x128xf32> to vector<2xf32>
    %96 = vector.shape_cast %95 : vector<2xf32> to vector<2x1xf32>
    %cst_35 = arith.constant 1.280000e+02 : f32
    %97 = vector.broadcast %cst_35 : f32 to vector<2x1xf32>
    %98 = arith.divf %96, %97 : vector<2x1xf32>
    %99 = vector.broadcast %98 : vector<2x1xf32> to vector<2x128xf32>
    %100 = arith.subf %94, %99 : vector<2x128xf32>
    %101 = arith.mulf %100, %100 : vector<2x128xf32>
    %cst_36 = arith.constant dense<0.000000e+00> : vector<2xf32>
    %102 = vector.multi_reduction <add>, %101, %cst_36 [1] : vector<2x128xf32> to vector<2xf32>
    %103 = vector.shape_cast %102 : vector<2xf32> to vector<2x1xf32>
    %cst_37 = arith.constant 1.280000e+02 : f32
    %104 = vector.broadcast %cst_37 : f32 to vector<2x1xf32>
    %105 = arith.divf %103, %104 : vector<2x1xf32>
    %cst_38 = arith.constant 9.99999974E-6 : f32
    %106 = vector.broadcast %cst_38 : f32 to vector<2x1xf32>
    %107 = arith.addf %105, %106 : vector<2x1xf32>
    %108 = math.rsqrt %107 : vector<2x1xf32>
    %109 = vector.broadcast %108 : vector<2x1xf32> to vector<2x128xf32>
    %110 = arith.mulf %100, %109 : vector<2x128xf32>
    %111 = vector.extract_strided_slice %6 {offsets = [0, 768], sizes = [2, 128], strides = [1, 1]} : vector<2x1024xf32> to vector<2x128xf32>
    %cst_39 = arith.constant dense<0.000000e+00> : vector<2xf32>
    %112 = vector.multi_reduction <add>, %111, %cst_39 [1] : vector<2x128xf32> to vector<2xf32>
    %113 = vector.shape_cast %112 : vector<2xf32> to vector<2x1xf32>
    %cst_40 = arith.constant 1.280000e+02 : f32
    %114 = vector.broadcast %cst_40 : f32 to vector<2x1xf32>
    %115 = arith.divf %113, %114 : vector<2x1xf32>
    %116 = vector.broadcast %115 : vector<2x1xf32> to vector<2x128xf32>
    %117 = arith.subf %111, %116 : vector<2x128xf32>
    %118 = arith.mulf %117, %117 : vector<2x128xf32>
    %cst_41 = arith.constant dense<0.000000e+00> : vector<2xf32>
    %119 = vector.multi_reduction <add>, %118, %cst_41 [1] : vector<2x128xf32> to vector<2xf32>
    %120 = vector.shape_cast %119 : vector<2xf32> to vector<2x1xf32>
    %cst_42 = arith.constant 1.280000e+02 : f32
    %121 = vector.broadcast %cst_42 : f32 to vector<2x1xf32>
    %122 = arith.divf %120, %121 : vector<2x1xf32>
    %cst_43 = arith.constant 9.99999974E-6 : f32
    %123 = vector.broadcast %cst_43 : f32 to vector<2x1xf32>
    %124 = arith.addf %122, %123 : vector<2x1xf32>
    %125 = math.rsqrt %124 : vector<2x1xf32>
    %126 = vector.broadcast %125 : vector<2x1xf32> to vector<2x128xf32>
    %127 = arith.mulf %117, %126 : vector<2x128xf32>
    %128 = vector.extract_strided_slice %6 {offsets = [0, 896], sizes = [2, 128], strides = [1, 1]} : vector<2x1024xf32> to vector<2x128xf32>
    %cst_44 = arith.constant dense<0.000000e+00> : vector<2xf32>
    %129 = vector.multi_reduction <add>, %128, %cst_44 [1] : vector<2x128xf32> to vector<2xf32>
    %130 = vector.shape_cast %129 : vector<2xf32> to vector<2x1xf32>
    %cst_45 = arith.constant 1.280000e+02 : f32
    %131 = vector.broadcast %cst_45 : f32 to vector<2x1xf32>
    %132 = arith.divf %130, %131 : vector<2x1xf32>
    %133 = vector.broadcast %132 : vector<2x1xf32> to vector<2x128xf32>
    %134 = arith.subf %128, %133 : vector<2x128xf32>
    %135 = arith.mulf %134, %134 : vector<2x128xf32>
    %cst_46 = arith.constant dense<0.000000e+00> : vector<2xf32>
    %136 = vector.multi_reduction <add>, %135, %cst_46 [1] : vector<2x128xf32> to vector<2xf32>
    %137 = vector.shape_cast %136 : vector<2xf32> to vector<2x1xf32>
    %cst_47 = arith.constant 1.280000e+02 : f32
    %138 = vector.broadcast %cst_47 : f32 to vector<2x1xf32>
    %139 = arith.divf %137, %138 : vector<2x1xf32>
    %cst_48 = arith.constant 9.99999974E-6 : f32
    %140 = vector.broadcast %cst_48 : f32 to vector<2x1xf32>
    %141 = arith.addf %139, %140 : vector<2x1xf32>
    %142 = math.rsqrt %141 : vector<2x1xf32>
    %143 = vector.broadcast %142 : vector<2x1xf32> to vector<2x128xf32>
    %144 = arith.mulf %134, %143 : vector<2x128xf32>
    %145 = tpu.concatenate %25, %42, %59, %76, %93, %110, %127, %144 in 1 : vector<2x128xf32>, vector<2x128xf32>, vector<2x128xf32>, vector<2x128xf32>, vector<2x128xf32>, vector<2x128xf32>, vector<2x128xf32>, vector<2x128xf32> -> vector<2x1024xf32>
    %146 = vector.broadcast %7 : vector<1x1024xf32> to vector<2x1024xf32>
    %147 = arith.mulf %145, %146 : vector<2x1024xf32>
    %148 = vector.broadcast %8 : vector<1x1024xf32> to vector<2x1024xf32>
    %149 = arith.addf %147, %148 : vector<2x1024xf32>
    %150 = arith.negf %149 : vector<2x1024xf32>
    %151 = math.exp %150 : vector<2x1024xf32>
    %cst_49 = arith.constant 1.000000e+00 : f32
    %152 = vector.broadcast %cst_49 : f32 to vector<2x1024xf32>
    %153 = arith.addf %152, %151 : vector<2x1024xf32>
    %154 = arith.divf %152, %153 : vector<2x1024xf32>
    %155 = arith.mulf %149, %154 : vector<2x1024xf32>
    %156 = arith.truncf %155 : vector<2x1024xf32> to vector<2x1024xbf16>
    %c0_50 = arith.constant 0 : index
    %c0_51 = arith.constant 0 : index
    %157 = vector.load %arg6[%c0_50, %c0_51] : memref<1024x512xbf16, #tpu.memory_space<vmem>>, vector<1024x512xbf16>
    %cst_52 = arith.constant dense<0.000000e+00> : vector<2x512xf32>
    %158 = tpu.matmul %156, %157, %cst_52 {dimension_numbers = #tpu.dot_dimension_numbers<[1], [0], [0], [1], [0, 0, 1, 1], [], []>} : vector<2x1024xbf16>, vector<1024x512xbf16>, vector<2x512xf32> -> vector<2x512xf32>
    %c0_53 = arith.constant 0 : index
    %c0_54 = arith.constant 0 : index
    %159 = vector.load %arg7[%c0_53, %c0_54] : memref<1x512xf32, #tpu.memory_space<vmem>>, vector<1x512xf32>
    %160 = vector.broadcast %159 : vector<1x512xf32> to vector<2x512xf32>
    %161 = arith.addf %158, %160 : vector<2x512xf32>
    %c0_55 = arith.constant 0 : index
    %c0_56 = arith.constant 0 : index
    %162 = vector.load %arg8[%c0_55, %c0_56] : memref<1x512xf32, #tpu.memory_space<vmem>>, vector<1x512xf32>
    %c0_57 = arith.constant 0 : index
    %c0_58 = arith.constant 0 : index
    %163 = vector.load %arg9[%c0_57, %c0_58] : memref<1x512xf32, #tpu.memory_space<vmem>>, vector<1x512xf32>
    %164 = vector.extract_strided_slice %161 {offsets = [0, 0], sizes = [2, 64], strides = [1, 1]} : vector<2x512xf32> to vector<2x64xf32>
    %cst_59 = arith.constant dense<0.000000e+00> : vector<2xf32>
    %165 = vector.multi_reduction <add>, %164, %cst_59 [1] : vector<2x64xf32> to vector<2xf32>
    %166 = vector.shape_cast %165 : vector<2xf32> to vector<2x1xf32>
    %cst_60 = arith.constant 6.400000e+01 : f32
    %167 = vector.broadcast %cst_60 : f32 to vector<2x1xf32>
    %168 = arith.divf %166, %167 : vector<2x1xf32>
    %169 = vector.broadcast %168 : vector<2x1xf32> to vector<2x64xf32>
    %170 = arith.subf %164, %169 : vector<2x64xf32>
    %171 = arith.mulf %170, %170 : vector<2x64xf32>
    %cst_61 = arith.constant dense<0.000000e+00> : vector<2xf32>
    %172 = vector.multi_reduction <add>, %171, %cst_61 [1] : vector<2x64xf32> to vector<2xf32>
    %173 = vector.shape_cast %172 : vector<2xf32> to vector<2x1xf32>
    %cst_62 = arith.constant 6.400000e+01 : f32
    %174 = vector.broadcast %cst_62 : f32 to vector<2x1xf32>
    %175 = arith.divf %173, %174 : vector<2x1xf32>
    %cst_63 = arith.constant 9.99999974E-6 : f32
    %176 = vector.broadcast %cst_63 : f32 to vector<2x1xf32>
    %177 = arith.addf %175, %176 : vector<2x1xf32>
    %178 = math.rsqrt %177 : vector<2x1xf32>
    %179 = vector.broadcast %178 : vector<2x1xf32> to vector<2x64xf32>
    %180 = arith.mulf %170, %179 : vector<2x64xf32>
    %181 = vector.extract_strided_slice %161 {offsets = [0, 64], sizes = [2, 64], strides = [1, 1]} : vector<2x512xf32> to vector<2x64xf32>
    %cst_64 = arith.constant dense<0.000000e+00> : vector<2xf32>
    %182 = vector.multi_reduction <add>, %181, %cst_64 [1] : vector<2x64xf32> to vector<2xf32>
    %183 = vector.shape_cast %182 : vector<2xf32> to vector<2x1xf32>
    %cst_65 = arith.constant 6.400000e+01 : f32
    %184 = vector.broadcast %cst_65 : f32 to vector<2x1xf32>
    %185 = arith.divf %183, %184 : vector<2x1xf32>
    %186 = vector.broadcast %185 : vector<2x1xf32> to vector<2x64xf32>
    %187 = arith.subf %181, %186 : vector<2x64xf32>
    %188 = arith.mulf %187, %187 : vector<2x64xf32>
    %cst_66 = arith.constant dense<0.000000e+00> : vector<2xf32>
    %189 = vector.multi_reduction <add>, %188, %cst_66 [1] : vector<2x64xf32> to vector<2xf32>
    %190 = vector.shape_cast %189 : vector<2xf32> to vector<2x1xf32>
    %cst_67 = arith.constant 6.400000e+01 : f32
    %191 = vector.broadcast %cst_67 : f32 to vector<2x1xf32>
    %192 = arith.divf %190, %191 : vector<2x1xf32>
    %cst_68 = arith.constant 9.99999974E-6 : f32
    %193 = vector.broadcast %cst_68 : f32 to vector<2x1xf32>
    %194 = arith.addf %192, %193 : vector<2x1xf32>
    %195 = math.rsqrt %194 : vector<2x1xf32>
    %196 = vector.broadcast %195 : vector<2x1xf32> to vector<2x64xf32>
    %197 = arith.mulf %187, %196 : vector<2x64xf32>
    %198 = vector.extract_strided_slice %161 {offsets = [0, 128], sizes = [2, 64], strides = [1, 1]} : vector<2x512xf32> to vector<2x64xf32>
    %cst_69 = arith.constant dense<0.000000e+00> : vector<2xf32>
    %199 = vector.multi_reduction <add>, %198, %cst_69 [1] : vector<2x64xf32> to vector<2xf32>
    %200 = vector.shape_cast %199 : vector<2xf32> to vector<2x1xf32>
    %cst_70 = arith.constant 6.400000e+01 : f32
    %201 = vector.broadcast %cst_70 : f32 to vector<2x1xf32>
    %202 = arith.divf %200, %201 : vector<2x1xf32>
    %203 = vector.broadcast %202 : vector<2x1xf32> to vector<2x64xf32>
    %204 = arith.subf %198, %203 : vector<2x64xf32>
    %205 = arith.mulf %204, %204 : vector<2x64xf32>
    %cst_71 = arith.constant dense<0.000000e+00> : vector<2xf32>
    %206 = vector.multi_reduction <add>, %205, %cst_71 [1] : vector<2x64xf32> to vector<2xf32>
    %207 = vector.shape_cast %206 : vector<2xf32> to vector<2x1xf32>
    %cst_72 = arith.constant 6.400000e+01 : f32
    %208 = vector.broadcast %cst_72 : f32 to vector<2x1xf32>
    %209 = arith.divf %207, %208 : vector<2x1xf32>
    %cst_73 = arith.constant 9.99999974E-6 : f32
    %210 = vector.broadcast %cst_73 : f32 to vector<2x1xf32>
    %211 = arith.addf %209, %210 : vector<2x1xf32>
    %212 = math.rsqrt %211 : vector<2x1xf32>
    %213 = vector.broadcast %212 : vector<2x1xf32> to vector<2x64xf32>
    %214 = arith.mulf %204, %213 : vector<2x64xf32>
    %215 = vector.extract_strided_slice %161 {offsets = [0, 192], sizes = [2, 64], strides = [1, 1]} : vector<2x512xf32> to vector<2x64xf32>
    %cst_74 = arith.constant dense<0.000000e+00> : vector<2xf32>
    %216 = vector.multi_reduction <add>, %215, %cst_74 [1] : vector<2x64xf32> to vector<2xf32>
    %217 = vector.shape_cast %216 : vector<2xf32> to vector<2x1xf32>
    %cst_75 = arith.constant 6.400000e+01 : f32
    %218 = vector.broadcast %cst_75 : f32 to vector<2x1xf32>
    %219 = arith.divf %217, %218 : vector<2x1xf32>
    %220 = vector.broadcast %219 : vector<2x1xf32> to vector<2x64xf32>
    %221 = arith.subf %215, %220 : vector<2x64xf32>
    %222 = arith.mulf %221, %221 : vector<2x64xf32>
    %cst_76 = arith.constant dense<0.000000e+00> : vector<2xf32>
    %223 = vector.multi_reduction <add>, %222, %cst_76 [1] : vector<2x64xf32> to vector<2xf32>
    %224 = vector.shape_cast %223 : vector<2xf32> to vector<2x1xf32>
    %cst_77 = arith.constant 6.400000e+01 : f32
    %225 = vector.broadcast %cst_77 : f32 to vector<2x1xf32>
    %226 = arith.divf %224, %225 : vector<2x1xf32>
    %cst_78 = arith.constant 9.99999974E-6 : f32
    %227 = vector.broadcast %cst_78 : f32 to vector<2x1xf32>
    %228 = arith.addf %226, %227 : vector<2x1xf32>
    %229 = math.rsqrt %228 : vector<2x1xf32>
    %230 = vector.broadcast %229 : vector<2x1xf32> to vector<2x64xf32>
    %231 = arith.mulf %221, %230 : vector<2x64xf32>
    %232 = vector.extract_strided_slice %161 {offsets = [0, 256], sizes = [2, 64], strides = [1, 1]} : vector<2x512xf32> to vector<2x64xf32>
    %cst_79 = arith.constant dense<0.000000e+00> : vector<2xf32>
    %233 = vector.multi_reduction <add>, %232, %cst_79 [1] : vector<2x64xf32> to vector<2xf32>
    %234 = vector.shape_cast %233 : vector<2xf32> to vector<2x1xf32>
    %cst_80 = arith.constant 6.400000e+01 : f32
    %235 = vector.broadcast %cst_80 : f32 to vector<2x1xf32>
    %236 = arith.divf %234, %235 : vector<2x1xf32>
    %237 = vector.broadcast %236 : vector<2x1xf32> to vector<2x64xf32>
    %238 = arith.subf %232, %237 : vector<2x64xf32>
    %239 = arith.mulf %238, %238 : vector<2x64xf32>
    %cst_81 = arith.constant dense<0.000000e+00> : vector<2xf32>
    %240 = vector.multi_reduction <add>, %239, %cst_81 [1] : vector<2x64xf32> to vector<2xf32>
    %241 = vector.shape_cast %240 : vector<2xf32> to vector<2x1xf32>
    %cst_82 = arith.constant 6.400000e+01 : f32
    %242 = vector.broadcast %cst_82 : f32 to vector<2x1xf32>
    %243 = arith.divf %241, %242 : vector<2x1xf32>
    %cst_83 = arith.constant 9.99999974E-6 : f32
    %244 = vector.broadcast %cst_83 : f32 to vector<2x1xf32>
    %245 = arith.addf %243, %244 : vector<2x1xf32>
    %246 = math.rsqrt %245 : vector<2x1xf32>
    %247 = vector.broadcast %246 : vector<2x1xf32> to vector<2x64xf32>
    %248 = arith.mulf %238, %247 : vector<2x64xf32>
    %249 = vector.extract_strided_slice %161 {offsets = [0, 320], sizes = [2, 64], strides = [1, 1]} : vector<2x512xf32> to vector<2x64xf32>
    %cst_84 = arith.constant dense<0.000000e+00> : vector<2xf32>
    %250 = vector.multi_reduction <add>, %249, %cst_84 [1] : vector<2x64xf32> to vector<2xf32>
    %251 = vector.shape_cast %250 : vector<2xf32> to vector<2x1xf32>
    %cst_85 = arith.constant 6.400000e+01 : f32
    %252 = vector.broadcast %cst_85 : f32 to vector<2x1xf32>
    %253 = arith.divf %251, %252 : vector<2x1xf32>
    %254 = vector.broadcast %253 : vector<2x1xf32> to vector<2x64xf32>
    %255 = arith.subf %249, %254 : vector<2x64xf32>
    %256 = arith.mulf %255, %255 : vector<2x64xf32>
    %cst_86 = arith.constant dense<0.000000e+00> : vector<2xf32>
    %257 = vector.multi_reduction <add>, %256, %cst_86 [1] : vector<2x64xf32> to vector<2xf32>
    %258 = vector.shape_cast %257 : vector<2xf32> to vector<2x1xf32>
    %cst_87 = arith.constant 6.400000e+01 : f32
    %259 = vector.broadcast %cst_87 : f32 to vector<2x1xf32>
    %260 = arith.divf %258, %259 : vector<2x1xf32>
    %cst_88 = arith.constant 9.99999974E-6 : f32
    %261 = vector.broadcast %cst_88 : f32 to vector<2x1xf32>
    %262 = arith.addf %260, %261 : vector<2x1xf32>
    %263 = math.rsqrt %262 : vector<2x1xf32>
    %264 = vector.broadcast %263 : vector<2x1xf32> to vector<2x64xf32>
    %265 = arith.mulf %255, %264 : vector<2x64xf32>
    %266 = vector.extract_strided_slice %161 {offsets = [0, 384], sizes = [2, 64], strides = [1, 1]} : vector<2x512xf32> to vector<2x64xf32>
    %cst_89 = arith.constant dense<0.000000e+00> : vector<2xf32>
    %267 = vector.multi_reduction <add>, %266, %cst_89 [1] : vector<2x64xf32> to vector<2xf32>
    %268 = vector.shape_cast %267 : vector<2xf32> to vector<2x1xf32>
    %cst_90 = arith.constant 6.400000e+01 : f32
    %269 = vector.broadcast %cst_90 : f32 to vector<2x1xf32>
    %270 = arith.divf %268, %269 : vector<2x1xf32>
    %271 = vector.broadcast %270 : vector<2x1xf32> to vector<2x64xf32>
    %272 = arith.subf %266, %271 : vector<2x64xf32>
    %273 = arith.mulf %272, %272 : vector<2x64xf32>
    %cst_91 = arith.constant dense<0.000000e+00> : vector<2xf32>
    %274 = vector.multi_reduction <add>, %273, %cst_91 [1] : vector<2x64xf32> to vector<2xf32>
    %275 = vector.shape_cast %274 : vector<2xf32> to vector<2x1xf32>
    %cst_92 = arith.constant 6.400000e+01 : f32
    %276 = vector.broadcast %cst_92 : f32 to vector<2x1xf32>
    %277 = arith.divf %275, %276 : vector<2x1xf32>
    %cst_93 = arith.constant 9.99999974E-6 : f32
    %278 = vector.broadcast %cst_93 : f32 to vector<2x1xf32>
    %279 = arith.addf %277, %278 : vector<2x1xf32>
    %280 = math.rsqrt %279 : vector<2x1xf32>
    %281 = vector.broadcast %280 : vector<2x1xf32> to vector<2x64xf32>
    %282 = arith.mulf %272, %281 : vector<2x64xf32>
    %283 = vector.extract_strided_slice %161 {offsets = [0, 448], sizes = [2, 64], strides = [1, 1]} : vector<2x512xf32> to vector<2x64xf32>
    %cst_94 = arith.constant dense<0.000000e+00> : vector<2xf32>
    %284 = vector.multi_reduction <add>, %283, %cst_94 [1] : vector<2x64xf32> to vector<2xf32>
    %285 = vector.shape_cast %284 : vector<2xf32> to vector<2x1xf32>
    %cst_95 = arith.constant 6.400000e+01 : f32
    %286 = vector.broadcast %cst_95 : f32 to vector<2x1xf32>
    %287 = arith.divf %285, %286 : vector<2x1xf32>
    %288 = vector.broadcast %287 : vector<2x1xf32> to vector<2x64xf32>
    %289 = arith.subf %283, %288 : vector<2x64xf32>
    %290 = arith.mulf %289, %289 : vector<2x64xf32>
    %cst_96 = arith.constant dense<0.000000e+00> : vector<2xf32>
    %291 = vector.multi_reduction <add>, %290, %cst_96 [1] : vector<2x64xf32> to vector<2xf32>
    %292 = vector.shape_cast %291 : vector<2xf32> to vector<2x1xf32>
    %cst_97 = arith.constant 6.400000e+01 : f32
    %293 = vector.broadcast %cst_97 : f32 to vector<2x1xf32>
    %294 = arith.divf %292, %293 : vector<2x1xf32>
    %cst_98 = arith.constant 9.99999974E-6 : f32
    %295 = vector.broadcast %cst_98 : f32 to vector<2x1xf32>
    %296 = arith.addf %294, %295 : vector<2x1xf32>
    %297 = math.rsqrt %296 : vector<2x1xf32>
    %298 = vector.broadcast %297 : vector<2x1xf32> to vector<2x64xf32>
    %299 = arith.mulf %289, %298 : vector<2x64xf32>
    %300 = tpu.concatenate %180, %197, %214, %231, %248, %265, %282, %299 in 1 : vector<2x64xf32>, vector<2x64xf32>, vector<2x64xf32>, vector<2x64xf32>, vector<2x64xf32>, vector<2x64xf32>, vector<2x64xf32>, vector<2x64xf32> -> vector<2x512xf32>
    %301 = vector.broadcast %162 : vector<1x512xf32> to vector<2x512xf32>
    %302 = arith.mulf %300, %301 : vector<2x512xf32>
    %303 = vector.broadcast %163 : vector<1x512xf32> to vector<2x512xf32>
    %304 = arith.addf %302, %303 : vector<2x512xf32>
    %305 = arith.negf %304 : vector<2x512xf32>
    %306 = math.exp %305 : vector<2x512xf32>
    %cst_99 = arith.constant 1.000000e+00 : f32
    %307 = vector.broadcast %cst_99 : f32 to vector<2x512xf32>
    %308 = arith.addf %307, %306 : vector<2x512xf32>
    %309 = arith.divf %307, %308 : vector<2x512xf32>
    %310 = arith.mulf %304, %309 : vector<2x512xf32>
    %311 = arith.truncf %310 : vector<2x512xf32> to vector<2x512xbf16>
    %c0_100 = arith.constant 0 : index
    %c0_101 = arith.constant 0 : index
    %312 = vector.load %arg10[%c0_100, %c0_101] : memref<512x16xbf16, #tpu.memory_space<vmem>>, vector<512x16xbf16>
    %cst_102 = arith.constant dense<0.000000e+00> : vector<2x16xf32>
    %313 = tpu.matmul %311, %312, %cst_102 {dimension_numbers = #tpu.dot_dimension_numbers<[1], [0], [0], [1], [0, 0, 1, 1], [], []>} : vector<2x512xbf16>, vector<512x16xbf16>, vector<2x16xf32> -> vector<2x16xf32>
    %c0_103 = arith.constant 0 : index
    %c0_104 = arith.constant 0 : index
    %314 = vector.load %arg11[%c0_103, %c0_104] : memref<1x16xf32, #tpu.memory_space<vmem>>, vector<1x16xf32>
    %315 = vector.broadcast %314 : vector<1x16xf32> to vector<2x16xf32>
    %316 = arith.addf %313, %315 : vector<2x16xf32>
    %317 = vector.extract_strided_slice %316 {offsets = [0, 0], sizes = [2, 8], strides = [1, 1]} : vector<2x16xf32> to vector<2x8xf32>
    %318 = vector.extract_strided_slice %316 {offsets = [0, 8], sizes = [2, 8], strides = [1, 1]} : vector<2x16xf32> to vector<2x8xf32>
    %cst_105 = arith.constant -1.000000e+01 : f32
    %cst_106 = arith.constant 1.000000e+01 : f32
    %319 = vector.broadcast %cst_105 : f32 to vector<2x8xf32>
    %320 = arith.maximumf %319, %318 : vector<2x8xf32>
    %321 = vector.broadcast %cst_106 : f32 to vector<2x8xf32>
    %322 = arith.minimumf %321, %320 : vector<2x8xf32>
    %c0_107 = arith.constant 0 : index
    %c0_108 = arith.constant 0 : index
    %323 = vector.load %arg1[%c0_107, %c0_108] : memref<2x8xf32, #tpu.memory_space<vmem>>, vector<2x8xf32>
    %cst_109 = arith.constant 5.000000e-01 : f32
    %324 = vector.broadcast %cst_109 : f32 to vector<2x8xf32>
    %325 = arith.mulf %324, %322 : vector<2x8xf32>
    %326 = math.exp %325 : vector<2x8xf32>
    %327 = arith.mulf %323, %326 : vector<2x8xf32>
    %328 = arith.addf %317, %327 : vector<2x8xf32>
    %cst_110 = arith.constant -1.000000e+01 : f32
    %cst_111 = arith.constant 1.000000e+01 : f32
    %329 = vector.broadcast %cst_110 : f32 to vector<2x8xf32>
    %330 = arith.maximumf %329, %328 : vector<2x8xf32>
    %331 = vector.broadcast %cst_111 : f32 to vector<2x8xf32>
    %332 = arith.minimumf %331, %330 : vector<2x8xf32>
    %333 = arith.truncf %332 : vector<2x8xf32> to vector<2x8xbf16>
    %c0_112 = arith.constant 0 : index
    %c0_113 = arith.constant 0 : index
    %334 = vector.load %arg12[%c0_112, %c0_113] : memref<8x1024xbf16, #tpu.memory_space<vmem>>, vector<8x1024xbf16>
    %cst_114 = arith.constant dense<0.000000e+00> : vector<2x1024xf32>
    %335 = tpu.matmul %333, %334, %cst_114 {dimension_numbers = #tpu.dot_dimension_numbers<[1], [0], [0], [1], [0, 0, 1, 1], [], []>} : vector<2x8xbf16>, vector<8x1024xbf16>, vector<2x1024xf32> -> vector<2x1024xf32>
    %c0_115 = arith.constant 0 : index
    %c0_116 = arith.constant 0 : index
    %336 = vector.load %arg13[%c0_115, %c0_116] : memref<1x1024xf32, #tpu.memory_space<vmem>>, vector<1x1024xf32>
    %337 = vector.broadcast %336 : vector<1x1024xf32> to vector<2x1024xf32>
    %338 = arith.addf %335, %337 : vector<2x1024xf32>
    %c0_117 = arith.constant 0 : index
    %c0_118 = arith.constant 0 : index
    %339 = vector.load %arg14[%c0_117, %c0_118] : memref<1x1024xf32, #tpu.memory_space<vmem>>, vector<1x1024xf32>
    %c0_119 = arith.constant 0 : index
    %c0_120 = arith.constant 0 : index
    %340 = vector.load %arg15[%c0_119, %c0_120] : memref<1x1024xf32, #tpu.memory_space<vmem>>, vector<1x1024xf32>
    %341 = vector.extract_strided_slice %338 {offsets = [0, 0], sizes = [2, 128], strides = [1, 1]} : vector<2x1024xf32> to vector<2x128xf32>
    %cst_121 = arith.constant dense<0.000000e+00> : vector<2xf32>
    %342 = vector.multi_reduction <add>, %341, %cst_121 [1] : vector<2x128xf32> to vector<2xf32>
    %343 = vector.shape_cast %342 : vector<2xf32> to vector<2x1xf32>
    %cst_122 = arith.constant 1.280000e+02 : f32
    %344 = vector.broadcast %cst_122 : f32 to vector<2x1xf32>
    %345 = arith.divf %343, %344 : vector<2x1xf32>
    %346 = vector.broadcast %345 : vector<2x1xf32> to vector<2x128xf32>
    %347 = arith.subf %341, %346 : vector<2x128xf32>
    %348 = arith.mulf %347, %347 : vector<2x128xf32>
    %cst_123 = arith.constant dense<0.000000e+00> : vector<2xf32>
    %349 = vector.multi_reduction <add>, %348, %cst_123 [1] : vector<2x128xf32> to vector<2xf32>
    %350 = vector.shape_cast %349 : vector<2xf32> to vector<2x1xf32>
    %cst_124 = arith.constant 1.280000e+02 : f32
    %351 = vector.broadcast %cst_124 : f32 to vector<2x1xf32>
    %352 = arith.divf %350, %351 : vector<2x1xf32>
    %cst_125 = arith.constant 9.99999974E-6 : f32
    %353 = vector.broadcast %cst_125 : f32 to vector<2x1xf32>
    %354 = arith.addf %352, %353 : vector<2x1xf32>
    %355 = math.rsqrt %354 : vector<2x1xf32>
    %356 = vector.broadcast %355 : vector<2x1xf32> to vector<2x128xf32>
    %357 = arith.mulf %347, %356 : vector<2x128xf32>
    %358 = vector.extract_strided_slice %338 {offsets = [0, 128], sizes = [2, 128], strides = [1, 1]} : vector<2x1024xf32> to vector<2x128xf32>
    %cst_126 = arith.constant dense<0.000000e+00> : vector<2xf32>
    %359 = vector.multi_reduction <add>, %358, %cst_126 [1] : vector<2x128xf32> to vector<2xf32>
    %360 = vector.shape_cast %359 : vector<2xf32> to vector<2x1xf32>
    %cst_127 = arith.constant 1.280000e+02 : f32
    %361 = vector.broadcast %cst_127 : f32 to vector<2x1xf32>
    %362 = arith.divf %360, %361 : vector<2x1xf32>
    %363 = vector.broadcast %362 : vector<2x1xf32> to vector<2x128xf32>
    %364 = arith.subf %358, %363 : vector<2x128xf32>
    %365 = arith.mulf %364, %364 : vector<2x128xf32>
    %cst_128 = arith.constant dense<0.000000e+00> : vector<2xf32>
    %366 = vector.multi_reduction <add>, %365, %cst_128 [1] : vector<2x128xf32> to vector<2xf32>
    %367 = vector.shape_cast %366 : vector<2xf32> to vector<2x1xf32>
    %cst_129 = arith.constant 1.280000e+02 : f32
    %368 = vector.broadcast %cst_129 : f32 to vector<2x1xf32>
    %369 = arith.divf %367, %368 : vector<2x1xf32>
    %cst_130 = arith.constant 9.99999974E-6 : f32
    %370 = vector.broadcast %cst_130 : f32 to vector<2x1xf32>
    %371 = arith.addf %369, %370 : vector<2x1xf32>
    %372 = math.rsqrt %371 : vector<2x1xf32>
    %373 = vector.broadcast %372 : vector<2x1xf32> to vector<2x128xf32>
    %374 = arith.mulf %364, %373 : vector<2x128xf32>
    %375 = vector.extract_strided_slice %338 {offsets = [0, 256], sizes = [2, 128], strides = [1, 1]} : vector<2x1024xf32> to vector<2x128xf32>
    %cst_131 = arith.constant dense<0.000000e+00> : vector<2xf32>
    %376 = vector.multi_reduction <add>, %375, %cst_131 [1] : vector<2x128xf32> to vector<2xf32>
    %377 = vector.shape_cast %376 : vector<2xf32> to vector<2x1xf32>
    %cst_132 = arith.constant 1.280000e+02 : f32
    %378 = vector.broadcast %cst_132 : f32 to vector<2x1xf32>
    %379 = arith.divf %377, %378 : vector<2x1xf32>
    %380 = vector.broadcast %379 : vector<2x1xf32> to vector<2x128xf32>
    %381 = arith.subf %375, %380 : vector<2x128xf32>
    %382 = arith.mulf %381, %381 : vector<2x128xf32>
    %cst_133 = arith.constant dense<0.000000e+00> : vector<2xf32>
    %383 = vector.multi_reduction <add>, %382, %cst_133 [1] : vector<2x128xf32> to vector<2xf32>
    %384 = vector.shape_cast %383 : vector<2xf32> to vector<2x1xf32>
    %cst_134 = arith.constant 1.280000e+02 : f32
    %385 = vector.broadcast %cst_134 : f32 to vector<2x1xf32>
    %386 = arith.divf %384, %385 : vector<2x1xf32>
    %cst_135 = arith.constant 9.99999974E-6 : f32
    %387 = vector.broadcast %cst_135 : f32 to vector<2x1xf32>
    %388 = arith.addf %386, %387 : vector<2x1xf32>
    %389 = math.rsqrt %388 : vector<2x1xf32>
    %390 = vector.broadcast %389 : vector<2x1xf32> to vector<2x128xf32>
    %391 = arith.mulf %381, %390 : vector<2x128xf32>
    %392 = vector.extract_strided_slice %338 {offsets = [0, 384], sizes = [2, 128], strides = [1, 1]} : vector<2x1024xf32> to vector<2x128xf32>
    %cst_136 = arith.constant dense<0.000000e+00> : vector<2xf32>
    %393 = vector.multi_reduction <add>, %392, %cst_136 [1] : vector<2x128xf32> to vector<2xf32>
    %394 = vector.shape_cast %393 : vector<2xf32> to vector<2x1xf32>
    %cst_137 = arith.constant 1.280000e+02 : f32
    %395 = vector.broadcast %cst_137 : f32 to vector<2x1xf32>
    %396 = arith.divf %394, %395 : vector<2x1xf32>
    %397 = vector.broadcast %396 : vector<2x1xf32> to vector<2x128xf32>
    %398 = arith.subf %392, %397 : vector<2x128xf32>
    %399 = arith.mulf %398, %398 : vector<2x128xf32>
    %cst_138 = arith.constant dense<0.000000e+00> : vector<2xf32>
    %400 = vector.multi_reduction <add>, %399, %cst_138 [1] : vector<2x128xf32> to vector<2xf32>
    %401 = vector.shape_cast %400 : vector<2xf32> to vector<2x1xf32>
    %cst_139 = arith.constant 1.280000e+02 : f32
    %402 = vector.broadcast %cst_139 : f32 to vector<2x1xf32>
    %403 = arith.divf %401, %402 : vector<2x1xf32>
    %cst_140 = arith.constant 9.99999974E-6 : f32
    %404 = vector.broadcast %cst_140 : f32 to vector<2x1xf32>
    %405 = arith.addf %403, %404 : vector<2x1xf32>
    %406 = math.rsqrt %405 : vector<2x1xf32>
    %407 = vector.broadcast %406 : vector<2x1xf32> to vector<2x128xf32>
    %408 = arith.mulf %398, %407 : vector<2x128xf32>
    %409 = vector.extract_strided_slice %338 {offsets = [0, 512], sizes = [2, 128], strides = [1, 1]} : vector<2x1024xf32> to vector<2x128xf32>
    %cst_141 = arith.constant dense<0.000000e+00> : vector<2xf32>
    %410 = vector.multi_reduction <add>, %409, %cst_141 [1] : vector<2x128xf32> to vector<2xf32>
    %411 = vector.shape_cast %410 : vector<2xf32> to vector<2x1xf32>
    %cst_142 = arith.constant 1.280000e+02 : f32
    %412 = vector.broadcast %cst_142 : f32 to vector<2x1xf32>
    %413 = arith.divf %411, %412 : vector<2x1xf32>
    %414 = vector.broadcast %413 : vector<2x1xf32> to vector<2x128xf32>
    %415 = arith.subf %409, %414 : vector<2x128xf32>
    %416 = arith.mulf %415, %415 : vector<2x128xf32>
    %cst_143 = arith.constant dense<0.000000e+00> : vector<2xf32>
    %417 = vector.multi_reduction <add>, %416, %cst_143 [1] : vector<2x128xf32> to vector<2xf32>
    %418 = vector.shape_cast %417 : vector<2xf32> to vector<2x1xf32>
    %cst_144 = arith.constant 1.280000e+02 : f32
    %419 = vector.broadcast %cst_144 : f32 to vector<2x1xf32>
    %420 = arith.divf %418, %419 : vector<2x1xf32>
    %cst_145 = arith.constant 9.99999974E-6 : f32
    %421 = vector.broadcast %cst_145 : f32 to vector<2x1xf32>
    %422 = arith.addf %420, %421 : vector<2x1xf32>
    %423 = math.rsqrt %422 : vector<2x1xf32>
    %424 = vector.broadcast %423 : vector<2x1xf32> to vector<2x128xf32>
    %425 = arith.mulf %415, %424 : vector<2x128xf32>
    %426 = vector.extract_strided_slice %338 {offsets = [0, 640], sizes = [2, 128], strides = [1, 1]} : vector<2x1024xf32> to vector<2x128xf32>
    %cst_146 = arith.constant dense<0.000000e+00> : vector<2xf32>
    %427 = vector.multi_reduction <add>, %426, %cst_146 [1] : vector<2x128xf32> to vector<2xf32>
    %428 = vector.shape_cast %427 : vector<2xf32> to vector<2x1xf32>
    %cst_147 = arith.constant 1.280000e+02 : f32
    %429 = vector.broadcast %cst_147 : f32 to vector<2x1xf32>
    %430 = arith.divf %428, %429 : vector<2x1xf32>
    %431 = vector.broadcast %430 : vector<2x1xf32> to vector<2x128xf32>
    %432 = arith.subf %426, %431 : vector<2x128xf32>
    %433 = arith.mulf %432, %432 : vector<2x128xf32>
    %cst_148 = arith.constant dense<0.000000e+00> : vector<2xf32>
    %434 = vector.multi_reduction <add>, %433, %cst_148 [1] : vector<2x128xf32> to vector<2xf32>
    %435 = vector.shape_cast %434 : vector<2xf32> to vector<2x1xf32>
    %cst_149 = arith.constant 1.280000e+02 : f32
    %436 = vector.broadcast %cst_149 : f32 to vector<2x1xf32>
    %437 = arith.divf %435, %436 : vector<2x1xf32>
    %cst_150 = arith.constant 9.99999974E-6 : f32
    %438 = vector.broadcast %cst_150 : f32 to vector<2x1xf32>
    %439 = arith.addf %437, %438 : vector<2x1xf32>
    %440 = math.rsqrt %439 : vector<2x1xf32>
    %441 = vector.broadcast %440 : vector<2x1xf32> to vector<2x128xf32>
    %442 = arith.mulf %432, %441 : vector<2x128xf32>
    %443 = vector.extract_strided_slice %338 {offsets = [0, 768], sizes = [2, 128], strides = [1, 1]} : vector<2x1024xf32> to vector<2x128xf32>
    %cst_151 = arith.constant dense<0.000000e+00> : vector<2xf32>
    %444 = vector.multi_reduction <add>, %443, %cst_151 [1] : vector<2x128xf32> to vector<2xf32>
    %445 = vector.shape_cast %444 : vector<2xf32> to vector<2x1xf32>
    %cst_152 = arith.constant 1.280000e+02 : f32
    %446 = vector.broadcast %cst_152 : f32 to vector<2x1xf32>
    %447 = arith.divf %445, %446 : vector<2x1xf32>
    %448 = vector.broadcast %447 : vector<2x1xf32> to vector<2x128xf32>
    %449 = arith.subf %443, %448 : vector<2x128xf32>
    %450 = arith.mulf %449, %449 : vector<2x128xf32>
    %cst_153 = arith.constant dense<0.000000e+00> : vector<2xf32>
    %451 = vector.multi_reduction <add>, %450, %cst_153 [1] : vector<2x128xf32> to vector<2xf32>
    %452 = vector.shape_cast %451 : vector<2xf32> to vector<2x1xf32>
    %cst_154 = arith.constant 1.280000e+02 : f32
    %453 = vector.broadcast %cst_154 : f32 to vector<2x1xf32>
    %454 = arith.divf %452, %453 : vector<2x1xf32>
    %cst_155 = arith.constant 9.99999974E-6 : f32
    %455 = vector.broadcast %cst_155 : f32 to vector<2x1xf32>
    %456 = arith.addf %454, %455 : vector<2x1xf32>
    %457 = math.rsqrt %456 : vector<2x1xf32>
    %458 = vector.broadcast %457 : vector<2x1xf32> to vector<2x128xf32>
    %459 = arith.mulf %449, %458 : vector<2x128xf32>
    %460 = vector.extract_strided_slice %338 {offsets = [0, 896], sizes = [2, 128], strides = [1, 1]} : vector<2x1024xf32> to vector<2x128xf32>
    %cst_156 = arith.constant dense<0.000000e+00> : vector<2xf32>
    %461 = vector.multi_reduction <add>, %460, %cst_156 [1] : vector<2x128xf32> to vector<2xf32>
    %462 = vector.shape_cast %461 : vector<2xf32> to vector<2x1xf32>
    %cst_157 = arith.constant 1.280000e+02 : f32
    %463 = vector.broadcast %cst_157 : f32 to vector<2x1xf32>
    %464 = arith.divf %462, %463 : vector<2x1xf32>
    %465 = vector.broadcast %464 : vector<2x1xf32> to vector<2x128xf32>
    %466 = arith.subf %460, %465 : vector<2x128xf32>
    %467 = arith.mulf %466, %466 : vector<2x128xf32>
    %cst_158 = arith.constant dense<0.000000e+00> : vector<2xf32>
    %468 = vector.multi_reduction <add>, %467, %cst_158 [1] : vector<2x128xf32> to vector<2xf32>
    %469 = vector.shape_cast %468 : vector<2xf32> to vector<2x1xf32>
    %cst_159 = arith.constant 1.280000e+02 : f32
    %470 = vector.broadcast %cst_159 : f32 to vector<2x1xf32>
    %471 = arith.divf %469, %470 : vector<2x1xf32>
    %cst_160 = arith.constant 9.99999974E-6 : f32
    %472 = vector.broadcast %cst_160 : f32 to vector<2x1xf32>
    %473 = arith.addf %471, %472 : vector<2x1xf32>
    %474 = math.rsqrt %473 : vector<2x1xf32>
    %475 = vector.broadcast %474 : vector<2x1xf32> to vector<2x128xf32>
    %476 = arith.mulf %466, %475 : vector<2x128xf32>
    %477 = tpu.concatenate %357, %374, %391, %408, %425, %442, %459, %476 in 1 : vector<2x128xf32>, vector<2x128xf32>, vector<2x128xf32>, vector<2x128xf32>, vector<2x128xf32>, vector<2x128xf32>, vector<2x128xf32>, vector<2x128xf32> -> vector<2x1024xf32>
    %478 = vector.broadcast %339 : vector<1x1024xf32> to vector<2x1024xf32>
    %479 = arith.mulf %477, %478 : vector<2x1024xf32>
    %480 = vector.broadcast %340 : vector<1x1024xf32> to vector<2x1024xf32>
    %481 = arith.addf %479, %480 : vector<2x1024xf32>
    %482 = arith.negf %481 : vector<2x1024xf32>
    %483 = math.exp %482 : vector<2x1024xf32>
    %cst_161 = arith.constant 1.000000e+00 : f32
    %484 = vector.broadcast %cst_161 : f32 to vector<2x1024xf32>
    %485 = arith.addf %484, %483 : vector<2x1024xf32>
    %486 = arith.divf %484, %485 : vector<2x1024xf32>
    %487 = arith.mulf %481, %486 : vector<2x1024xf32>
    %488 = arith.truncf %487 : vector<2x1024xf32> to vector<2x1024xbf16>
    %c0_162 = arith.constant 0 : index
    %c0_163 = arith.constant 0 : index
    %489 = vector.load %arg16[%c0_162, %c0_163] : memref<1024x256xbf16, #tpu.memory_space<vmem>>, vector<1024x256xbf16>
    %cst_164 = arith.constant dense<0.000000e+00> : vector<2x256xf32>
    %490 = tpu.matmul %488, %489, %cst_164 {dimension_numbers = #tpu.dot_dimension_numbers<[1], [0], [0], [1], [0, 0, 1, 1], [], []>} : vector<2x1024xbf16>, vector<1024x256xbf16>, vector<2x256xf32> -> vector<2x256xf32>
    %c0_165 = arith.constant 0 : index
    %c0_166 = arith.constant 0 : index
    %491 = vector.load %arg17[%c0_165, %c0_166] : memref<1x256xf32, #tpu.memory_space<vmem>>, vector<1x256xf32>
    %492 = vector.broadcast %491 : vector<1x256xf32> to vector<2x256xf32>
    %493 = arith.addf %490, %492 : vector<2x256xf32>
    %494 = tpu.concatenate %317, %322 in 1 : vector<2x8xf32>, vector<2x8xf32> -> vector<2x16xf32>
    %c0_167 = arith.constant 0 : index
    %c0_168 = arith.constant 0 : index
    %495 = vector.load %arg18[%c0_167, %c0_168] : memref<2x16xf32, #tpu.memory_space<vmem>>, vector<2x16xf32>
    tpu.vector_store %arg18[%c0_167, %c0_168], %494 {strides = array<i32>} : memref<2x16xf32, #tpu.memory_space<vmem>>, vector<2x16xf32>,
    %c0_169 = arith.constant 0 : index
    %c0_170 = arith.constant 0 : index
    %496 = vector.load %arg19[%c0_169, %c0_170] : memref<2x256xf32, #tpu.memory_space<vmem>>, vector<2x256xf32>
    tpu.vector_store %arg19[%c0_169, %c0_170], %493 {strides = array<i32>} : memref<2x256xf32, #tpu.memory_space<vmem>>, vector<2x256xf32>,
    return
  }
}

</mosaic_0001>

<bundles_post_ra>
// kernel: forward.1
= control target key start
LH: loop header
LB: loop body
LE: loop exit
PB: predicated region body
PF: predicated region fallthrough
CT: control target
= control target key end

     0   :  { %s7561_s0 = inlined_call_operand.vmem [shape: f32[2,256], index: 0, kind: input, shape index: {}]   ;;  %s7562_s1 = inlined_call_operand.vmem [shape: f32[2,8], index: 1, kind: input, shape index: {}]   ;;  %s7563_s2 = inlined_call_operand.hbm [shape: bf16[256,1024], index: 2, kind: input, shape index: {}]   ;;  %s7564_s3 = inlined_call_operand.vmem [shape: f32[1,1024], index: 3, kind: input, shape index: {}]   ;;  %s7565_s4 = inlined_call_operand.vmem [shape: f32[1,1024], index: 4, kind: input, shape index: {}]   ;;  %s7566_s5 = inlined_call_operand.vmem [shape: f32[1,1024], index: 5, kind: input, shape index: {}]   ;;  %s7567_s6 = inlined_call_operand.hbm [shape: bf16[1024,512], index: 6, kind: input, shape index: {}]   ;;  %s7568_s7 = inlined_call_operand.vmem [shape: f32[1,512], index: 7, kind: input, shape index: {}]   ;;  %s7569_s8 = inlined_call_operand.vmem [shape: f32[1,512], index: 8, kind: input, shape index: {}]   ;;  %s7570_s9 = inlined_call_operand.vmem [shape: f32[1,512], index: 9, kind: input, shape index: {}]   ;;  %s7571_s10 = inlined_call_operand.vmem [shape: bf16[512,16], index: 10, kind: input, shape index: {}]   ;;  %s7572_s11 = inlined_call_operand.vmem [shape: f32[1,16], index: 11, kind: input, shape index: {}]   ;;  %s7573_s12 = inlined_call_operand.vmem [shape: bf16[8,1024], index: 12, kind: input, shape index: {}]   ;;  %s7574_s13 = inlined_call_operand.vmem [shape: f32[1,1024], index: 13, kind: input, shape index: {}]   ;;  %s7575_s14 = inlined_call_operand.vmem [shape: f32[1,1024], index: 14, kind: input, shape index: {}]   ;;  %s7576_s15 = inlined_call_operand.vmem [shape: f32[1,1024], index: 15, kind: input, shape index: {}]   ;;  %s7577_s16 = inlined_call_operand.hbm [shape: bf16[1024,256], index: 16, kind: input, shape index: {}]   ;;  %s7578_s17 = inlined_call_operand.vmem [shape: f32[1,256], index: 17, kind: input, shape index: {}]   ;;  %s7579_s18 = inlined_call_operand.vmem [shape: f32[2,16], index: 18, kind: output, shape index: {0}]   ;;  %s7580_s19 = inlined_call_operand.vmem [shape: f32[2,256], index: 19, kind: output, shape index: {1}]  }
   0x1   :  { %7582 = sst [smem:[#allocation9_spill]] %s7561_s0 }
   0x2   :  { %7583 = sst [smem:[#allocation10_spill]] %s7562_s1 }
   0x3   :  { %7584 = sst [smem:[#allocation11_spill]] %s7563_s2 }
   0x4   :  { %7585 = sst [smem:[#allocation12_spill]] %s7564_s3 }
   0x5   :  { %7586 = sst [smem:[#allocation13_spill]] %s7580_s19 }
   0x6   :  { %25 = vsyncpa [#allocation3], 0 }
   0x7   :  { %26 = vsyncpa [#allocation5], 0  ;;  %s6827_s0 = smov [#allocation4]   ;;  %s6757_s1 = scalar_lea.hbm %s7567_s6, 32768 }
   0x8   :  { %s54_s30 = sshll.u32 %s6827_s0, 4  ;;  %p6758_p0 = scmp.ne.s32.totalorder %s7567_s6, %s6757_s1  ;;  %s55_s30 = int_to_ptr.vmem [resolvable:$true] %s54_s30 }
   0x9   :  { %p6761_p1 = scmp.lt.u32.totalorder %s6757_s1, %s7567_s6 }
   0xb   :  { %p6763_p2 = pnand %p6761_p1, %p6758_p0 }
   0xd   :  { %6766 = shalt.err (!%p6763_p2)
}
   0xe   :  { %s6767_s25 = scalar_lea.vmem %s55_s30, 32768  ;;  %p6772_p4 = scmp.lt.s32.totalorder %s55_s30, %s55_s30 }
   0xf   :  { %p6768_p3 = scmp.ne.s32.totalorder %s55_s30, %s6767_s25  ;;  %p6773_p5 = scmp.lt.s32.totalorder %s6767_s25, %s6767_s25 }
  0x11   :  { %p6774_p6 = por %p6773_p5, %p6772_p4 }
  0x13   :  { %p6775_p7 = pnand %p6774_p6, %p6768_p3 }
  0x15   :  { %6778 = shalt.err (!%p6775_p7)
}
  0x16   :  { %s6828_s3 = smov 256   ;;  %s6829_s26 = smov 16  }
  0x17   :  { %60 = dma.hbm_to_vmem [thread:$0]  %s7567_s6, 32768, %s55_s30, [#allocation5], %s6828_s3, %s6828_s3, %s6829_s26  }
  0x18   :  { %s6830_s29 = smov [#allocation2]   ;;  %s7587_s1 = sld [smem:[#allocation11_spill]] }
  0x19   :  { %s36_s0 = sshll.u32 %s6830_s29, 4  ;;  %s37_s0 = int_to_ptr.vmem [resolvable:$true] %s36_s0 }
  0x1e   :  { %s6779_s22 = scalar_lea.hbm %s7587_s1, 16384 }
  0x1f   :  { %p6780_p8 = scmp.ne.s32.totalorder %s7587_s1, %s6779_s22  ;;  %p6783_p9 = scmp.lt.u32.totalorder %s6779_s22, %s7587_s1 }
  0x21   :  { %p6785_p10 = pnand %p6783_p9, %p6780_p8 }
  0x23   :  { %6788 = shalt.err (!%p6785_p10)
}
  0x24   :  { %s6789_s19 = scalar_lea.vmem %s37_s0, 16384  ;;  %p6794_p12 = scmp.lt.s32.totalorder %s37_s0, %s37_s0 }
  0x25   :  { %p6790_p11 = scmp.ne.s32.totalorder %s37_s0, %s6789_s19  ;;  %p6795_p13 = scmp.lt.s32.totalorder %s6789_s19, %s6789_s19 }
  0x27   :  { %p6796_p0 = por %p6795_p13, %p6794_p12 }
  0x29   :  { %p6797_p1 = pnand %p6796_p0, %p6790_p11 }
  0x2b   :  { %6800 = shalt.err (!%p6797_p1)
}
  0x2c   :  { %s6831_s6 = smov 512   ;;  %s6832_s30 = smov 32  }
  0x2d   :  { %42 = dma.hbm_to_vmem [thread:$0]  %s7587_s1, 16384, %s37_s0, [#allocation3], %s6831_s6, %s6831_s6, %s6832_s30  }
  0x2e   :  { %s6833_s27 = smov [#allocation6]   ;;  %s6801_s21 = scalar_lea.hbm %s7577_s16, 16384 }
  0x2f   :  { %s84_s28 = sshll.u32 %s6833_s27, 4  ;;  %p6802_p2 = scmp.ne.s32.totalorder %s7577_s16, %s6801_s21  ;;  %s85_s28 = int_to_ptr.vmem [resolvable:$true] %s84_s28 }
  0x30   :  { %p6805_p3 = scmp.lt.u32.totalorder %s6801_s21, %s7577_s16 }
  0x32   :  { %p6807_p4 = pnand %p6805_p3, %p6802_p2 }
  0x34   :  { %6810 = shalt.err (!%p6807_p4)
}
  0x35   :  { %s6811_s24 = scalar_lea.vmem %s85_s28, 16384  ;;  %p6816_p6 = scmp.lt.s32.totalorder %s85_s28, %s85_s28 }
  0x36   :  { %p6812_p5 = scmp.ne.s32.totalorder %s85_s28, %s6811_s24  ;;  %p6817_p7 = scmp.lt.s32.totalorder %s6811_s24, %s6811_s24 }
  0x38   :  { %p6818_p8 = por %p6817_p7, %p6816_p6 }
  0x3a   :  { %p6819_p9 = pnand %p6818_p8, %p6812_p5 }
  0x3c   :  { %6822 = shalt.err (!%p6819_p9)
}
  0x3d   :  { %s6834_s0 = smov 128   ;;  %s6835_s1 = smov 8  }
  0x3e   :  { %90 = dma.hbm_to_vmem [thread:$0]  %s7577_s16, 16384, %s85_s28, [#allocation5], %s6834_s0, %s6834_s0, %s6835_s1  }
  0x3f   :  { %6823 = dma.done.wait [#allocation3], 16384  }
  0x40   :  { %6824 = vsyncadd [#allocation3], 4294950912 }
  0x41   :  { %6825 = dma.done.wait [#allocation5], 49152  }
  0x42   :  { %6826 = vsyncadd [#allocation5], 4294918144  ;;  %v117_v0 = vld [vmem:[#allocation2] sm:$0xff]  ;;  %s7588_s3 = sld [smem:[#allocation9_spill]]  ;;  %s7589_s28 = sld [smem:[#allocation12_spill]]  ;;  %vm1093_vm0 = vcmask 1041408  }
  0x43   :  { %v121_v1 = vld [vmem:[#allocation2 + $0x20] sm:$0xff]  ;;  %s6836_s2 = smov 64   ;;  %vm3249_vm1 = vcmask 517120   ;;  %vm3387_vm2 = vcmask 523264   ;;  %vm3902_vm3 = vcmask 1043456   ;;  %vm3898_vm4 = vcmask 64512  }
  0x44   :  { %v125_v2 = vld [vmem:[#allocation2 + $0x40] sm:$0xff]  ;;  %v5330_v3 = vcombine.high %v117_v0, %v121_v1  ;;  %v5329_v4 = vcombine.low %v117_v0, %v121_v1  ;;  %v118_v1 = vld [vmem:[#allocation2 + $0x8] sm:$0xff]  ;;  %vm5304_vm5 = vcmask 123904   ;;  %s6838_s27 = smov 120   ;;  %s7590_s20 = sld [smem:[#allocation10_spill]] }
  0x45   :  { %v129_v5 = vld [vmem:[#allocation2 + $0x60] sm:$0xff] }
  0x46   :  { %v5338_v6 = vcombine.high %v125_v2, %v129_v5  ;;  %v133_v7 = vld [vmem:[#allocation2 + $0x80] sm:$0xff]  ;;  %927 = vmatprep.subr.bf16.mxu1 %v5330_v3  ;;  %v5337_v9 = vcombine.low %v125_v2, %v129_v5  ;;  %v122_v2 = vld [vmem:[#allocation2 + $0x28] sm:$0xff] }
  0x47   :  { %v137_v8 = vld [vmem:[#allocation2 + $0xa0] sm:$0xff]  ;;  %928 = vmatpush1.bf16.msra.mxu1 %v5329_v4  ;;  %v126_v5 = vld [vmem:[#allocation2 + $0x48] sm:$0xff] }
  0x48   :  { %929 = vmatprep.subr.bf16.mxu1 %v5338_v6  ;;  %v5346_v10 = vcombine.high %v133_v7, %v137_v8  ;;  %v141_v11 = vld [vmem:[#allocation2 + $0xc0] sm:$0xff]  ;;  %v5345_v13 = vcombine.low %v133_v7, %v137_v8  ;;  %v130_v6 = vld [vmem:[#allocation2 + $0x68] sm:$0xff]  ;;  %v5332_v7 = vcombine.high %v118_v1, %v122_v2 }
  0x49   :  { %v145_v12 = vld [vmem:[#allocation2 + $0xe0] sm:$0xff] }
  0x4a   :  { %v5354_v14 = vcombine.high %v141_v11, %v145_v12  ;;  %v149_v15 = vld [vmem:[#allocation2 + $0x100] sm:$0xff]  ;;  %v5353_v19 = vcombine.low %v141_v11, %v145_v12  ;;  %v138_v11 = vld [vmem:[#allocation2 + $0xa8] sm:$0xff]  ;;  %v5340_v12 = vcombine.high %v126_v5, %v130_v6 }
  0x4b   :  { %930 = vmatpush1.bf16.msra.mxu1 %v5337_v9  ;;  %v153_v16 = vld [vmem:[#allocation2 + $0x120] sm:$0xff]  ;;  %v5331_v9 = vcombine.low %v118_v1, %v122_v2 }
  0x4c   :  { %931 = vmatprep.subr.bf16.mxu1 %v5346_v10  ;;  %v6978_v17 = vld.sshfl [vmem:[%s7588_s3] sm:$0x33 pattern:$0x76325410]  ;;  %v5362_v20 = vcombine.high %v149_v15, %v153_v16  ;;  %v5361_v24 = vcombine.low %v149_v15, %v153_v16  ;;  %v134_v10 = vld [vmem:[#allocation2 + $0x88] sm:$0xff] }
  0x4d   :  { %v112_v18 = vcombine.high %v6978_v17, %v6978_v17  ;;  %v157_v22 = vld [vmem:[#allocation2 + $0x140] sm:$0xff]  ;;  %v6987_v8 = vpack.c.bf16 %v6978_v17, %v6978_v17  ;;  %v146_v15 = vld [vmem:[#allocation2 + $0xe8] sm:$0xff]  ;;  %v5348_v16 = vcombine.high %v134_v10, %v138_v11 }
  0x4e   :  { %v161_v23 = vld [vmem:[#allocation2 + $0x160] sm:$0xff]  ;;  %v150_v17 = vld [vmem:[#allocation2 + $0x108] sm:$0xff] }
  0x4f   :  { %932 = vmatpush1.bf16.msra.mxu1 %v5345_v13  ;;  %v6982_v21 = vpack.c.bf16 %v112_v18, %v112_v18  ;;  %v5370_v25 = vcombine.high %v157_v22, %v161_v23  ;;  %v165_v26 = vld [vmem:[#allocation2 + $0x180] sm:$0xff]  ;;  %v5369_v28 = vcombine.low %v157_v22, %v161_v23  ;;  %v5339_v13 = vcombine.low %v126_v5, %v130_v6  ;;  %v158_v23 = vld [vmem:[#allocation2 + $0x148] sm:$0xff] }
  0x50   :  { %933 = vmatprep.subr.bf16.mxu1 %v5354_v14  ;;  %v169_v27 = vld [vmem:[#allocation2 + $0x1a0] sm:$0xff]  ;;  %v142_v14 = vld [vmem:[#allocation2 + $0xc8] sm:$0xff]  ;;  %v5347_v18 = vcombine.low %v134_v10, %v138_v11 }
  0x51   :  { %959 = vmatprep.mubr.bf16.mxu1 %v6982_v21  ;;  %v5378_v29 = vcombine.high %v165_v26, %v169_v27  ;;  %v173_v30 = vld [vmem:[#allocation2 + $0x1c0] sm:$0xff]  ;;  %v5377_v32 = vcombine.low %v165_v26, %v169_v27  ;;  %v5355_v22 = vcombine.low %v142_v14, %v146_v15  ;;  %v166_v27 = vld [vmem:[#allocation2 + $0x188] sm:$0xff] }
  0x52   :  { %v177_v31 = vld [vmem:[#allocation2 + $0x1e0] sm:$0xff] }
  0x53   :  { %934 = vmatpush1.bf16.msra.mxu1 %v5353_v19  ;;  %v5386_v33 = vcombine.high %v173_v30, %v177_v31  ;;  %v181_v34 = vld [vmem:[#allocation2 + $0x200] sm:$0xff]  ;;  %v5385_v36 = vcombine.low %v173_v30, %v177_v31  ;;  %v154_v19 = vld [vmem:[#allocation2 + $0x128] sm:$0xff] }
  0x54   :  { %935 = vmatprep.subr.bf16.mxu1 %v5362_v20  ;;  %v185_v35 = vld [vmem:[#allocation2 + $0x220] sm:$0xff]  ;;  %v5356_v20 = vcombine.high %v142_v14, %v146_v15  ;;  %v5363_v26 = vcombine.low %v150_v17, %v154_v19  ;;  %v174_v31 = vld [vmem:[#allocation2 + $0x1c8] sm:$0xff] }
  0x55   :  { %v189_v37 = vld [vmem:[#allocation2 + $0x240] sm:$0xff]  ;;  %v5394_v39 = vcombine.high %v181_v34, %v185_v35  ;;  %v5393_v40 = vcombine.low %v181_v34, %v185_v35  ;;  %v182_v35 = vld [vmem:[#allocation2 + $0x208] sm:$0xff] }
  0x56   :  { %v193_v38 = vld [vmem:[#allocation2 + $0x260] sm:$0xff] }
  0x57   :  { %936 = vmatpush1.bf16.msra.mxu1 %v5361_v24  ;;  %v197_v41 = vld [vmem:[#allocation2 + $0x280] sm:$0xff]  ;;  %v5402_v43 = vcombine.high %v189_v37, %v193_v38  ;;  %v5401_v44 = vcombine.low %v189_v37, %v193_v38  ;;  %v162_v24 = vld [vmem:[#allocation2 + $0x168] sm:$0xff] }
  0x58   :  { %937 = vmatprep.subr.bf16.mxu1 %v5370_v25  ;;  %v201_v42 = vld [vmem:[#allocation2 + $0x2a0] sm:$0xff]  ;;  %v5364_v25 = vcombine.high %v150_v17, %v154_v19  ;;  %v5371_v30 = vcombine.low %v158_v23, %v162_v24 }
  0x59   :  { %v205_v45 = vld [vmem:[#allocation2 + $0x2c0] sm:$0xff]  ;;  %v5410_v47 = vcombine.high %v197_v41, %v201_v42  ;;  %v5409_v48 = vcombine.low %v197_v41, %v201_v42 }
  0x5a   :  { %v209_v46 = vld [vmem:[#allocation2 + $0x2e0] sm:$0xff] }
  0x5b   :  { %938 = vmatpush1.bf16.msra.mxu1 %v5369_v28  ;;  %v213_v49 = vld [vmem:[#allocation2 + $0x300] sm:$0xff]  ;;  %v5418_v51 = vcombine.high %v205_v45, %v209_v46  ;;  %v5417_v52 = vcombine.low %v205_v45, %v209_v46  ;;  %v170_v28 = vld [vmem:[#allocation2 + $0x1a8] sm:$0xff] }
  0x5c   :  { %939 = vmatprep.subr.bf16.mxu1 %v5378_v29  ;;  %v217_v50 = vld [vmem:[#allocation2 + $0x320] sm:$0xff]  ;;  %v5372_v29 = vcombine.high %v158_v23, %v162_v24  ;;  %v5379_v34 = vcombine.low %v166_v27, %v170_v28 }
  0x5d   :  { %v221_v53 = vld [vmem:[#allocation2 + $0x340] sm:$0xff]  ;;  %v5426_v55 = vcombine.high %v213_v49, %v217_v50  ;;  %v5425_v56 = vcombine.low %v213_v49, %v217_v50 }
  0x5e   :  { %v225_v54 = vld [vmem:[#allocation2 + $0x360] sm:$0xff] }
  0x5f   :  { %940 = vmatpush1.bf16.msra.mxu1 %v5377_v32  ;;  %v229_v57 = vld [vmem:[#allocation2 + $0x380] sm:$0xff]  ;;  %v5434_v59 = vcombine.high %v221_v53, %v225_v54  ;;  %v5433_v60 = vcombine.low %v221_v53, %v225_v54  ;;  %v178_v32 = vld [vmem:[#allocation2 + $0x1e8] sm:$0xff] }
  0x60   :  { %941 = vmatprep.subr.bf16.mxu1 %v5386_v33  ;;  %v233_v58 = vld [vmem:[#allocation2 + $0x3a0] sm:$0xff]  ;;  %v5380_v33 = vcombine.high %v166_v27, %v170_v28  ;;  %v5388_v37 = vcombine.high %v174_v31, %v178_v32  ;;  %v5387_v38 = vcombine.low %v174_v31, %v178_v32 }
  0x61   :  { %v237_v61 = vld [vmem:[#allocation2 + $0x3c0] sm:$0xff]  ;;  %v5442_v63 = vcombine.high %v229_v57, %v233_v58  ;;  %v5441_v0 = vcombine.low %v229_v57, %v233_v58 }
  0x62   :  { %v241_v62 = vld [vmem:[#allocation2 + $0x3e0] sm:$0xff] }
  0x63   :  { %942 = vmatpush1.bf16.msra.mxu1 %v5385_v36  ;;  %v5450_v3 = vcombine.high %v237_v61, %v241_v62  ;;  %v5449_v4 = vcombine.low %v237_v61, %v241_v62  ;;  %v186_v36 = vld [vmem:[#allocation2 + $0x228] sm:$0xff] }
  0x64   :  { %943 = vmatprep.subr.bf16.mxu1 %v5394_v39  ;;  %v190_v39 = vld [vmem:[#allocation2 + $0x248] sm:$0xff]  ;;  %v5396_v41 = vcombine.high %v182_v35, %v186_v36  ;;  %v5395_v42 = vcombine.low %v182_v35, %v186_v36  ;;  %v179_v35 = vld [vmem:[#allocation2 + $0x1f0] sm:$0xff] }
  0x67   :  { %944 = vmatpush1.bf16.msra.mxu1 %v5393_v40  ;;  %v194_v40 = vld [vmem:[#allocation2 + $0x268] sm:$0xff] }
  0x68   :  { %945 = vmatprep.subr.bf16.mxu1 %v5402_v43  ;;  %v198_v43 = vld [vmem:[#allocation2 + $0x288] sm:$0xff]  ;;  %v5404_v45 = vcombine.high %v190_v39, %v194_v40  ;;  %v5403_v46 = vcombine.low %v190_v39, %v194_v40 }
  0x6b   :  { %946 = vmatpush1.bf16.msra.mxu1 %v5401_v44  ;;  %v202_v44 = vld [vmem:[#allocation2 + $0x2a8] sm:$0xff] }
  0x6c   :  { %947 = vmatprep.subr.bf16.mxu1 %v5410_v47  ;;  %v206_v47 = vld [vmem:[#allocation2 + $0x2c8] sm:$0xff]  ;;  %v5412_v49 = vcombine.high %v198_v43, %v202_v44  ;;  %v5411_v50 = vcombine.low %v198_v43, %v202_v44 }
  0x6f   :  { %948 = vmatpush1.bf16.msra.mxu1 %v5409_v48  ;;  %v210_v48 = vld [vmem:[#allocation2 + $0x2e8] sm:$0xff] }
  0x70   :  { %949 = vmatprep.subr.bf16.mxu1 %v5418_v51  ;;  %v214_v51 = vld [vmem:[#allocation2 + $0x308] sm:$0xff]  ;;  %v5420_v53 = vcombine.high %v206_v47, %v210_v48  ;;  %v5419_v54 = vcombine.low %v206_v47, %v210_v48 }
  0x73   :  { %950 = vmatpush1.bf16.msra.mxu1 %v5417_v52  ;;  %v218_v52 = vld [vmem:[#allocation2 + $0x328] sm:$0xff] }
  0x74   :  { %951 = vmatprep.subr.bf16.mxu1 %v5426_v55  ;;  %v222_v55 = vld [vmem:[#allocation2 + $0x348] sm:$0xff]  ;;  %v5428_v57 = vcombine.high %v214_v51, %v218_v52  ;;  %v5427_v58 = vcombine.low %v214_v51, %v218_v52 }
  0x77   :  { %952 = vmatpush1.bf16.msra.mxu1 %v5425_v56  ;;  %v226_v56 = vld [vmem:[#allocation2 + $0x368] sm:$0xff] }
  0x78   :  { %953 = vmatprep.subr.bf16.mxu1 %v5434_v59  ;;  %v230_v59 = vld [vmem:[#allocation2 + $0x388] sm:$0xff]  ;;  %v5436_v61 = vcombine.high %v222_v55, %v226_v56  ;;  %v5435_v62 = vcombine.low %v222_v55, %v226_v56 }
  0x7b   :  { %954 = vmatpush1.bf16.msra.mxu1 %v5433_v60  ;;  %v234_v60 = vld [vmem:[#allocation2 + $0x3a8] sm:$0xff] }
  0x7c   :  { %955 = vmatprep.subr.bf16.mxu1 %v5442_v63  ;;  %v238_v63 = vld [vmem:[#allocation2 + $0x3c8] sm:$0xff]  ;;  %v5444_v1 = vcombine.high %v230_v59, %v234_v60  ;;  %v5443_v2 = vcombine.low %v230_v59, %v234_v60 }
  0x7f   :  { %956 = vmatpush1.bf16.msra.mxu1 %v5441_v0  ;;  %v242_v0 = vld [vmem:[#allocation2 + $0x3e8] sm:$0xff] }
  0x80   :  { %957 = vmatprep.subr.bf16.mxu1 %v5450_v3  ;;  %v119_v3 = vld [vmem:[#allocation2 + $0x10] sm:$0xff]  ;;  %v5452_v5 = vcombine.high %v238_v63, %v242_v0  ;;  %v5451_v6 = vcombine.low %v238_v63, %v242_v0 }
  0x83   :  { %958 = vmatpush1.bf16.msra.mxu1 %v5449_v4  ;;  %v123_v4 = vld [vmem:[#allocation2 + $0x30] sm:$0xff] }
  0x84   :  { %968 = vmatprep.subr.bf16.mxu1 %v5332_v7  ;;  %v127_v7 = vld [vmem:[#allocation2 + $0x50] sm:$0xff]  ;;  %v5334_v10 = vcombine.high %v119_v3, %v123_v4  ;;  %v5333_v11 = vcombine.low %v119_v3, %v123_v4 }
  0x86   :  { %960 = vmatmul.mubr.bf16.vlgmr.msra.gmra.mrb[0].mxu1 %v6987_v8 }
  0x87   :  { %969 = vmatpush1.bf16.msra.mxu1 %v5331_v9  ;;  %1000 = vmatprep.mubr.bf16.mxu1 %v6982_v21  ;;  %v131_v9 = vld [vmem:[#allocation2 + $0x70] sm:$0xff] }
  0x88   :  { %970 = vmatprep.subr.bf16.mxu1 %v5340_v12  ;;  %v135_v12 = vld [vmem:[#allocation2 + $0x90] sm:$0xff]  ;;  %v5342_v14 = vcombine.high %v127_v7, %v131_v9  ;;  %v5341_v15 = vcombine.low %v127_v7, %v131_v9 }
  0x8b   :  { %971 = vmatpush1.bf16.msra.mxu1 %v5339_v13  ;;  %v139_v13 = vld [vmem:[#allocation2 + $0xb0] sm:$0xff] }
  0x8c   :  { %972 = vmatprep.subr.bf16.mxu1 %v5348_v16  ;;  %v143_v16 = vld [vmem:[#allocation2 + $0xd0] sm:$0xff]  ;;  %v5350_v17 = vcombine.high %v135_v12, %v139_v13  ;;  %v5349_v19 = vcombine.low %v135_v12, %v139_v13 }
  0x8f   :  { %973 = vmatpush1.bf16.msra.mxu1 %v5347_v18  ;;  %v147_v18 = vld [vmem:[#allocation2 + $0xf0] sm:$0xff] }
  0x90   :  { %974 = vmatprep.subr.bf16.mxu1 %v5356_v20  ;;  %v151_v20 = vld [vmem:[#allocation2 + $0x110] sm:$0xff]  ;;  %v5358_v23 = vcombine.high %v143_v16, %v147_v18  ;;  %v5357_v24 = vcombine.low %v143_v16, %v147_v18  ;;  %v140_v16 = vld [vmem:[#allocation2 + $0xb8] sm:$0xff] }
  0x93   :  { %975 = vmatpush1.bf16.msra.mxu1 %v5355_v22  ;;  %v155_v22 = vld [vmem:[#allocation2 + $0x130] sm:$0xff] }
  0x94   :  { %976 = vmatprep.subr.bf16.mxu1 %v5364_v25  ;;  %v159_v25 = vld [vmem:[#allocation2 + $0x150] sm:$0xff]  ;;  %v5366_v27 = vcombine.high %v151_v20, %v155_v22  ;;  %v5365_v28 = vcombine.low %v151_v20, %v155_v22  ;;  %v148_v20 = vld [vmem:[#allocation2 + $0xf8] sm:$0xff] }
  0x97   :  { %977 = vmatpush1.bf16.msra.mxu1 %v5363_v26  ;;  %v163_v26 = vld [vmem:[#allocation2 + $0x170] sm:$0xff] }
  0x98   :  { %978 = vmatprep.subr.bf16.mxu1 %v5372_v29  ;;  %v167_v29 = vld [vmem:[#allocation2 + $0x190] sm:$0xff]  ;;  %v5374_v31 = vcombine.high %v159_v25, %v163_v26  ;;  %v5373_v32 = vcombine.low %v159_v25, %v163_v26  ;;  %v156_v25 = vld [vmem:[#allocation2 + $0x138] sm:$0xff] }
  0x9b   :  { %979 = vmatpush1.bf16.msra.mxu1 %v5371_v30  ;;  %v171_v30 = vld [vmem:[#allocation2 + $0x1b0] sm:$0xff] }
  0x9c   :  { %980 = vmatprep.subr.bf16.mxu1 %v5380_v33  ;;  %v5382_v33 = vcombine.high %v167_v29, %v171_v30  ;;  %v5381_v36 = vcombine.low %v167_v29, %v171_v30  ;;  %v164_v29 = vld [vmem:[#allocation2 + $0x178] sm:$0xff] }
  0x9f   :  { %981 = vmatpush1.bf16.msra.mxu1 %v5379_v34  ;;  %v175_v34 = vld [vmem:[#allocation2 + $0x1d0] sm:$0xff] }
  0xa0   :  { %982 = vmatprep.subr.bf16.mxu1 %v5388_v37  ;;  %v183_v37 = vld [vmem:[#allocation2 + $0x210] sm:$0xff]  ;;  %v5390_v39 = vcombine.high %v175_v34, %v179_v35  ;;  %v5389_v40 = vcombine.low %v175_v34, %v179_v35  ;;  %v176_v35 = vld [vmem:[#allocation2 + $0x1d8] sm:$0xff] }
  0xa3   :  { %983 = vmatpush1.bf16.msra.mxu1 %v5387_v38  ;;  %v187_v38 = vld [vmem:[#allocation2 + $0x230] sm:$0xff] }
  0xa4   :  { %984 = vmatprep.subr.bf16.mxu1 %v5396_v41  ;;  %v191_v41 = vld [vmem:[#allocation2 + $0x250] sm:$0xff]  ;;  %v5398_v43 = vcombine.high %v183_v37, %v187_v38  ;;  %v5397_v44 = vcombine.low %v183_v37, %v187_v38 }
  0xa7   :  { %985 = vmatpush1.bf16.msra.mxu1 %v5395_v42  ;;  %v195_v42 = vld [vmem:[#allocation2 + $0x270] sm:$0xff] }
  0xa8   :  { %986 = vmatprep.subr.bf16.mxu1 %v5404_v45  ;;  %v199_v45 = vld [vmem:[#allocation2 + $0x290] sm:$0xff]  ;;  %v5406_v47 = vcombine.high %v191_v41, %v195_v42  ;;  %v5405_v48 = vcombine.low %v191_v41, %v195_v42 }
  0xab   :  { %987 = vmatpush1.bf16.msra.mxu1 %v5403_v46  ;;  %v203_v46 = vld [vmem:[#allocation2 + $0x2b0] sm:$0xff] }
  0xac   :  { %988 = vmatprep.subr.bf16.mxu1 %v5412_v49  ;;  %v207_v49 = vld [vmem:[#allocation2 + $0x2d0] sm:$0xff]  ;;  %v5414_v51 = vcombine.high %v199_v45, %v203_v46  ;;  %v5413_v52 = vcombine.low %v199_v45, %v203_v46 }
  0xaf   :  { %989 = vmatpush1.bf16.msra.mxu1 %v5411_v50  ;;  %v211_v50 = vld [vmem:[#allocation2 + $0x2f0] sm:$0xff] }
  0xb0   :  { %990 = vmatprep.subr.bf16.mxu1 %v5420_v53  ;;  %v215_v53 = vld [vmem:[#allocation2 + $0x310] sm:$0xff]  ;;  %v5422_v55 = vcombine.high %v207_v49, %v211_v50  ;;  %v5421_v56 = vcombine.low %v207_v49, %v211_v50 }
  0xb3   :  { %991 = vmatpush1.bf16.msra.mxu1 %v5419_v54  ;;  %v219_v54 = vld [vmem:[#allocation2 + $0x330] sm:$0xff] }
  0xb4   :  { %992 = vmatprep.subr.bf16.mxu1 %v5428_v57  ;;  %v223_v57 = vld [vmem:[#allocation2 + $0x350] sm:$0xff]  ;;  %v5430_v59 = vcombine.high %v215_v53, %v219_v54  ;;  %v5429_v60 = vcombine.low %v215_v53, %v219_v54 }
  0xb7   :  { %993 = vmatpush1.bf16.msra.mxu1 %v5427_v58  ;;  %v227_v58 = vld [vmem:[#allocation2 + $0x370] sm:$0xff] }
  0xb8   :  { %994 = vmatprep.subr.bf16.mxu1 %v5436_v61  ;;  %v231_v61 = vld [vmem:[#allocation2 + $0x390] sm:$0xff]  ;;  %v5438_v63 = vcombine.high %v223_v57, %v227_v58  ;;  %v5437_v0 = vcombine.low %v223_v57, %v227_v58 }
  0xbb   :  { %995 = vmatpush1.bf16.msra.mxu1 %v5435_v62  ;;  %v235_v62 = vld [vmem:[#allocation2 + $0x3b0] sm:$0xff] }
  0xbc   :  { %996 = vmatprep.subr.bf16.mxu1 %v5444_v1  ;;  %v239_v1 = vld [vmem:[#allocation2 + $0x3d0] sm:$0xff]  ;;  %v5446_v3 = vcombine.high %v231_v61, %v235_v62  ;;  %v5445_v4 = vcombine.low %v231_v61, %v235_v62 }
  0xbf   :  { %997 = vmatpush1.bf16.msra.mxu1 %v5443_v2  ;;  %v243_v2 = vld [vmem:[#allocation2 + $0x3f0] sm:$0xff] }
  0xc0   :  { %998 = vmatprep.subr.bf16.mxu1 %v5452_v5  ;;  %v120_v5 = vld [vmem:[#allocation2 + $0x18] sm:$0xff]  ;;  %v5454_v7 = vcombine.high %v239_v1, %v243_v2  ;;  %v5453_v9 = vcombine.low %v239_v1, %v243_v2 }
  0xc3   :  { %999 = vmatpush1.bf16.msra.mxu1 %v5451_v6  ;;  %v124_v6 = vld [vmem:[#allocation2 + $0x38] sm:$0xff] }
  0xc4   :  { %1009 = vmatprep.subr.bf16.mxu1 %v5334_v10  ;;  %v128_v10 = vld [vmem:[#allocation2 + $0x58] sm:$0xff]  ;;  %v5336_v12 = vcombine.high %v120_v5, %v124_v6  ;;  %v5335_v13 = vcombine.low %v120_v5, %v124_v6 }
  0xc6   :  { %1001 = vmatmul.mubr.bf16.vlgmr.msra.gmra.mrb[4].mxu1 %v6987_v8 }
  0xc7   :  { %1010 = vmatpush1.bf16.msra.mxu1 %v5333_v11  ;;  %1041 = vmatprep.mubr.bf16.mxu1 %v6982_v21  ;;  %v132_v11 = vld [vmem:[#allocation2 + $0x78] sm:$0xff] }
  0xc8   :  { %1011 = vmatprep.subr.bf16.mxu1 %v5342_v14  ;;  %v5344_v14 = vcombine.high %v128_v10, %v132_v11  ;;  %v5343_v18 = vcombine.low %v128_v10, %v132_v11 }
  0xcb   :  { %1012 = vmatpush1.bf16.msra.mxu1 %v5341_v15  ;;  %v136_v15 = vld [vmem:[#allocation2 + $0x98] sm:$0xff] }
  0xcc   :  { %1013 = vmatprep.subr.bf16.mxu1 %v5350_v17  ;;  %v5352_v17 = vcombine.high %v136_v15, %v140_v16  ;;  %v5351_v22 = vcombine.low %v136_v15, %v140_v16 }
  0xcf   :  { %1014 = vmatpush1.bf16.msra.mxu1 %v5349_v19  ;;  %v144_v19 = vld [vmem:[#allocation2 + $0xd8] sm:$0xff] }
  0xd0   :  { %1015 = vmatprep.subr.bf16.mxu1 %v5358_v23  ;;  %v5360_v23 = vcombine.high %v144_v19, %v148_v20  ;;  %v5359_v26 = vcombine.low %v144_v19, %v148_v20 }
  0xd3   :  { %1016 = vmatpush1.bf16.msra.mxu1 %v5357_v24  ;;  %v152_v24 = vld [vmem:[#allocation2 + $0x118] sm:$0xff] }
  0xd4   :  { %1017 = vmatprep.subr.bf16.mxu1 %v5366_v27  ;;  %v5368_v27 = vcombine.high %v152_v24, %v156_v25  ;;  %v5367_v30 = vcombine.low %v152_v24, %v156_v25 }
  0xd7   :  { %1018 = vmatpush1.bf16.msra.mxu1 %v5365_v28  ;;  %v160_v28 = vld [vmem:[#allocation2 + $0x158] sm:$0xff] }
  0xd8   :  { %1019 = vmatprep.subr.bf16.mxu1 %v5374_v31  ;;  %v168_v31 = vld [vmem:[#allocation2 + $0x198] sm:$0xff] }
  0xdb   :  { %1020 = vmatpush1.bf16.msra.mxu1 %v5373_v32  ;;  %v172_v32 = vld [vmem:[#allocation2 + $0x1b8] sm:$0xff] }
  0xdc   :  { %1021 = vmatprep.subr.bf16.mxu1 %v5382_v33  ;;  %v5375_v33 = vcombine.low %v160_v28, %v164_v29  ;;  %v5384_v34 = vcombine.high %v168_v31, %v172_v32  ;;  %v5383_v37 = vcombine.low %v168_v31, %v172_v32 }
  0xdf   :  { %1022 = vmatpush1.bf16.msra.mxu1 %v5381_v36  ;;  %v180_v36 = vld [vmem:[#allocation2 + $0x1f8] sm:$0xff] }
  0xe0   :  { %1023 = vmatprep.subr.bf16.mxu1 %v5390_v39  ;;  %v5392_v38 = vcombine.high %v176_v35, %v180_v36  ;;  %v184_v39 = vld [vmem:[#allocation2 + $0x218] sm:$0xff]  ;;  %v5391_v41 = vcombine.low %v176_v35, %v180_v36  ;;  %v6011_v35 = vld [vmem:[#allocation4 + $0x4] ss:$16 sps:$4 sm:$0xff]  }
  0xe1   :  { %v6013_v36 = vld [vmem:[#allocation4 + $0x8] ss:$16 sps:$4 sm:$0xff]   ;;  %2919 = vmatprep.subr.bf16.mxu0 %v6011_v35 }
  0xe2   :  { %v6061_v35 = vld [vmem:[#allocation4 + $0x108] ss:$16 sps:$4 sm:$0xff]  }
  0xe3   :  { %1024 = vmatpush1.bf16.msra.mxu1 %v5389_v40  ;;  %v188_v40 = vld [vmem:[#allocation2 + $0x238] sm:$0xff] }
  0xe4   :  { %1025 = vmatprep.subr.bf16.mxu1 %v5398_v43  ;;  %v5400_v42 = vcombine.high %v184_v39, %v188_v40  ;;  %v192_v43 = vld [vmem:[#allocation2 + $0x258] sm:$0xff]  ;;  %v5399_v45 = vcombine.low %v184_v39, %v188_v40  ;;  %v6017_v39 = vld [vmem:[#allocation4 + $0x24] ss:$16 sps:$4 sm:$0xff]  }
  0xe5   :  { %v6021_v40 = vld [vmem:[#allocation4 + $0x2c] ss:$16 sps:$4 sm:$0xff]  }
  0xe7   :  { %1026 = vmatpush1.bf16.msra.mxu1 %v5397_v44  ;;  %v196_v44 = vld [vmem:[#allocation2 + $0x278] sm:$0xff] }
  0xe8   :  { %1027 = vmatprep.subr.bf16.mxu1 %v5406_v47  ;;  %v5408_v46 = vcombine.high %v192_v43, %v196_v44  ;;  %v200_v47 = vld [vmem:[#allocation2 + $0x298] sm:$0xff]  ;;  %v5407_v49 = vcombine.low %v192_v43, %v196_v44  ;;  %v6023_v43 = vld [vmem:[#allocation4 + $0x44] ss:$16 sps:$4 sm:$0xff]  }
  0xe9   :  { %v6027_v44 = vld [vmem:[#allocation4 + $0x4c] ss:$16 sps:$4 sm:$0xff]  }
  0xeb   :  { %1028 = vmatpush1.bf16.msra.mxu1 %v5405_v48  ;;  %v204_v48 = vld [vmem:[#allocation2 + $0x2b8] sm:$0xff] }
  0xec   :  { %1029 = vmatprep.subr.bf16.mxu1 %v5414_v51  ;;  %v5416_v50 = vcombine.high %v200_v47, %v204_v48  ;;  %v208_v51 = vld [vmem:[#allocation2 + $0x2d8] sm:$0xff]  ;;  %v5415_v53 = vcombine.low %v200_v47, %v204_v48 }
  0xef   :  { %1030 = vmatpush1.bf16.msra.mxu1 %v5413_v52  ;;  %v212_v52 = vld [vmem:[#allocation2 + $0x2f8] sm:$0xff] }
  0xf0   :  { %1031 = vmatprep.subr.bf16.mxu1 %v5422_v55  ;;  %v5424_v54 = vcombine.high %v208_v51, %v212_v52  ;;  %v216_v55 = vld [vmem:[#allocation2 + $0x318] sm:$0xff]  ;;  %v5423_v57 = vcombine.low %v208_v51, %v212_v52 }
  0xf3   :  { %1032 = vmatpush1.bf16.msra.mxu1 %v5421_v56  ;;  %v220_v56 = vld [vmem:[#allocation2 + $0x338] sm:$0xff] }
  0xf4   :  { %1033 = vmatprep.subr.bf16.mxu1 %v5430_v59  ;;  %v5432_v58 = vcombine.high %v216_v55, %v220_v56  ;;  %v224_v59 = vld [vmem:[#allocation2 + $0x358] sm:$0xff]  ;;  %v5431_v61 = vcombine.low %v216_v55, %v220_v56 }
  0xf7   :  { %1034 = vmatpush1.bf16.msra.mxu1 %v5429_v60  ;;  %v228_v60 = vld [vmem:[#allocation2 + $0x378] sm:$0xff] }
  0xf8   :  { %1035 = vmatprep.subr.bf16.mxu1 %v5438_v63  ;;  %v5440_v62 = vcombine.high %v224_v59, %v228_v60  ;;  %v232_v63 = vld [vmem:[#allocation2 + $0x398] sm:$0xff]  ;;  %v5439_v1 = vcombine.low %v224_v59, %v228_v60 }
  0xfb   :  { %1036 = vmatpush1.bf16.msra.mxu1 %v5437_v0  ;;  %v236_v0 = vld [vmem:[#allocation2 + $0x3b8] sm:$0xff] }
  0xfc   :  { %1037 = vmatprep.subr.bf16.mxu1 %v5446_v3  ;;  %v5448_v2 = vcombine.high %v232_v63, %v236_v0  ;;  %v240_v3 = vld [vmem:[#allocation2 + $0x3d8] sm:$0xff]  ;;  %v5447_v5 = vcombine.low %v232_v63, %v236_v0 }
  0xff   :  { %1038 = vmatpush1.bf16.msra.mxu1 %v5445_v4  ;;  %v244_v4 = vld [vmem:[#allocation2 + $0x3f8] sm:$0xff] }
 0x100   :  { %1039 = vmatprep.subr.bf16.mxu1 %v5454_v7  ;;  %v5456_v6 = vcombine.high %v240_v3, %v244_v4  ;;  %v5455_v7 = vcombine.low %v240_v3, %v244_v4  ;;  %v6028_v4 = vld [vmem:[#allocation4 + $0x40] ss:$16 sps:$4 sm:$0xff]  }
 0x103   :  { %1040 = vmatpush1.bf16.msra.mxu1 %v5453_v9  ;;  %v247_v9 = vlaneseq }
 0x104   :  { %1050 = vmatprep.subr.bf16.mxu1 %v5336_v12  ;;  %v7004_v12 = vld [vmem:[%s7589_s28] sm:$0xff] }
 0x105   :  { %v6996_v10 = vshrl.u32 %v247_v9, 7  ;;  %v6034_v9 = vld [vmem:[#allocation4 + $0x60] ss:$16 sps:$4 sm:$0xff]  }
 0x106   :  { %1042 = vmatmul.mubr.bf16.vlgmr.msra.gmra.mrb[8].mxu1 %v6987_v8 }
 0x107   :  { %1051 = vmatpush1.bf16.msra.mxu1 %v5335_v13  ;;  %1082 = vmatprep.mubr.bf16.mxu1 %v6982_v21  ;;  %v5376_v21 = vcombine.high %v160_v28, %v164_v29  ;;  %v6999_v11 = vsub.s32 1, %v6996_v10  ;;  %v7007_v13 = vsub.s32 0, %v6996_v10  ;;  %v7016_v24 = vsub.s32 3, %v6996_v10 }
 0x108   :  { %1052 = vmatprep.subr.bf16.mxu1 %v5344_v14  ;;  %v7019_v25 = vsub.s32 2, %v6996_v10 }
 0x109   :  { %v254_v14 = vrot.slane %v7004_v12, %v6999_v11 }
 0x10b   :  { %1053 = vmatpush1.bf16.msra.mxu1 %v5343_v18 }
 0x10c   :  { %1054 = vmatprep.subr.bf16.mxu1 %v5352_v17 }
 0x10f   :  { %1055 = vmatpush1.bf16.msra.mxu1 %v5351_v22 }
 0x110   :  { %1056 = vmatprep.subr.bf16.mxu1 %v5360_v23 }
 0x113   :  { %1057 = vmatpush1.bf16.msra.mxu1 %v5359_v26  ;;  %v262_v26 = vrot.slane %v7004_v12, %v7016_v24 }
 0x114   :  { %1058 = vmatprep.subr.bf16.mxu1 %v5368_v27  ;;  %v258_v27 = vrot.slane %v7004_v12, %v7019_v25 }
 0x117   :  { %1059 = vmatpush1.bf16.msra.mxu1 %v5367_v30 }
 0x118   :  { %1060 = vmatprep.subr.bf16.mxu1 %v5376_v21 }
 0x11b   :  { %1061 = vmatpush1.bf16.msra.mxu1 %v5375_v33 }
 0x11c   :  { %1062 = vmatprep.subr.bf16.mxu1 %v5384_v34 }
 0x11f   :  { %1063 = vmatpush1.bf16.msra.mxu1 %v5383_v37  ;;  %v6015_v37 = vld [vmem:[#allocation4 + $0xc] ss:$16 sps:$4 sm:$0xff]  }
 0x120   :  { %1064 = vmatprep.subr.bf16.mxu1 %v5392_v38  ;;  %v6016_v38 = vld [vmem:[#allocation4] ss:$16 sps:$4 sm:$0xff]  }
 0x121   :  { %2920 = vmatpush1.bf16.msra.mxu0 %v6016_v38  ;;  %v6069_v38 = vld [vmem:[#allocation4 + $0x12c] ss:$16 sps:$4 sm:$0xff]  }
 0x122   :  { %2921 = vmatprep.subr.bf16.mxu0 %v6017_v39 }
 0x123   :  { %1065 = vmatpush1.bf16.msra.mxu1 %v5391_v41  ;;  %v6019_v41 = vld [vmem:[#allocation4 + $0x28] ss:$16 sps:$4 sm:$0xff]  }
 0x124   :  { %1066 = vmatprep.subr.bf16.mxu1 %v5400_v42  ;;  %v6022_v42 = vld [vmem:[#allocation4 + $0x20] ss:$16 sps:$4 sm:$0xff]  }
 0x125   :  { %2922 = vmatpush1.bf16.msra.mxu0 %v6022_v42 }
 0x126   :  { %2923 = vmatprep.subr.bf16.mxu0 %v6023_v43  ;;  %v6071_v43 = vld [vmem:[#allocation4 + $0x144] ss:$16 sps:$4 sm:$0xff]  }
 0x127   :  { %1067 = vmatpush1.bf16.msra.mxu1 %v5399_v45  ;;  %v6025_v45 = vld [vmem:[#allocation4 + $0x48] ss:$16 sps:$4 sm:$0xff]  }
 0x128   :  { %1068 = vmatprep.subr.bf16.mxu1 %v5408_v46 }
 0x129   :  { %2924 = vmatpush1.bf16.msra.mxu0 %v6028_v4  ;;  %v6095_v4 = vld [vmem:[#allocation4 + $0x1c4] ss:$16 sps:$4 sm:$0xff]  }
 0x12b   :  { %1069 = vmatpush1.bf16.msra.mxu1 %v5407_v49 }
 0x12c   :  { %1070 = vmatprep.subr.bf16.mxu1 %v5416_v50  ;;  %v7034_v50 = vsub.s32 5, %v6996_v10 }
 0x12f   :  { %1071 = vmatpush1.bf16.msra.mxu1 %v5415_v53  ;;  %v7037_v53 = vsub.s32 4, %v6996_v10 }
 0x130   :  { %1072 = vmatprep.subr.bf16.mxu1 %v5424_v54  ;;  %v270_v54 = vrot.slane %v7004_v12, %v7034_v50 }
 0x133   :  { %1073 = vmatpush1.bf16.msra.mxu1 %v5423_v57 }
 0x134   :  { %1074 = vmatprep.subr.bf16.mxu1 %v5432_v58  ;;  %v266_v58 = vrot.slane %v7004_v12, %v7037_v53 }
 0x137   :  { %1075 = vmatpush1.bf16.msra.mxu1 %v5431_v61 }
 0x138   :  { %1076 = vmatprep.subr.bf16.mxu1 %v5440_v62 }
 0x13b   :  { %1077 = vmatpush1.bf16.msra.mxu1 %v5439_v1 }
 0x13c   :  { %1078 = vmatprep.subr.bf16.mxu1 %v5448_v2 }
 0x13f   :  { %1079 = vmatpush1.bf16.msra.mxu1 %v5447_v5  ;;  %v6029_v5 = vld [vmem:[#allocation4 + $0x64] ss:$16 sps:$4 sm:$0xff]  }
 0x140   :  { %1080 = vmatprep.subr.bf16.mxu1 %v5456_v6  ;;  %v6033_v6 = vld [vmem:[#allocation4 + $0x6c] ss:$16 sps:$4 sm:$0xff]   ;;  %2925 = vmatprep.subr.bf16.mxu0 %v6029_v5 }
 0x141   :  { %2926 = vmatpush1.bf16.msra.mxu0 %v6034_v9  ;;  %v6099_v5 = vld [vmem:[#allocation4 + $0x1cc] ss:$16 sps:$4 sm:$0xff]  }
 0x143   :  { %1081 = vmatpush1.bf16.msra.mxu1 %v5455_v7  ;;  %v6031_v7 = vld [vmem:[#allocation4 + $0x68] ss:$16 sps:$4 sm:$0xff]  }
 0x144   :  { %3083 = vmatprep.subr.bf16.mxu1 %v6015_v37  ;;  %v6065_v37 = vld [vmem:[#allocation4 + $0x124] ss:$16 sps:$4 sm:$0xff]  }
 0x146   :  { %1083 = vmatmul.mubr.bf16.vlgmr.msra.gmra.mrb[12].mxu1 %v6987_v8  ;;  %v250_v8 = vrot.slane %v7004_v12, %v7007_v13 }
 0x147   :  { %3084 = vmatpush1.bf16.msra.mxu1 %v6013_v36  ;;  %v6064_v36 = vld [vmem:[#allocation4 + $0x100] ss:$16 sps:$4 sm:$0xff]  }
 0x148   :  { %3085 = vmatprep.subr.bf16.mxu1 %v6021_v40  ;;  %v6067_v40 = vld [vmem:[#allocation4 + $0x128] ss:$16 sps:$4 sm:$0xff]  }
 0x14b   :  { %3086 = vmatpush1.bf16.msra.mxu1 %v6019_v41  ;;  %v6070_v41 = vld [vmem:[#allocation4 + $0x120] ss:$16 sps:$4 sm:$0xff]  }
 0x14c   :  { %3087 = vmatprep.subr.bf16.mxu1 %v6027_v44  ;;  %v6075_v44 = vld [vmem:[#allocation4 + $0x14c] ss:$16 sps:$4 sm:$0xff]  }
 0x14f   :  { %3088 = vmatpush1.bf16.msra.mxu1 %v6025_v45 }
 0x150   :  { %3089 = vmatprep.subr.bf16.mxu1 %v6033_v6 }
 0x153   :  { %3090 = vmatpush1.bf16.msra.mxu1 %v6031_v7 }
 0x159   :  { %v961_v15 = vpop.f32.mrb[0].mxu1 }
 0x15a   :  { %v963_v16 = vpop.f32.mrb[1].mxu1  ;;  %v962_v20 = vadd.f32 %v961_v15, %v250_v8  ;;  %v6039_v8 = vld [vmem:[#allocation4 + $0x8c] ss:$16 sps:$4 sm:$0xff]   ;;  %v6037_v15 = vld [vmem:[#allocation4 + $0x88] ss:$16 sps:$4 sm:$0xff]  }
 0x15b   :  { %v964_v18 = vadd.f32 %v963_v16, %v254_v14  ;;  %v965_v17 = vpop.f32.mrb[2].mxu1  ;;  %v6035_v14 = vld [vmem:[#allocation4 + $0x84] ss:$16 sps:$4 sm:$0xff]   ;;  %v6040_v16 = vld [vmem:[#allocation4 + $0x80] ss:$16 sps:$4 sm:$0xff]   ;;  %3091 = vmatprep.subr.bf16.mxu1 %v6039_v8 }
 0x15c   :  { %v966_v19 = vpop.f32.mrb[3].mxu1  ;;  %v1094_v23 = vsel %vm1093_vm0, %v962_v20, 0.0  ;;  %2927 = vmatprep.subr.bf16.mxu0 %v6035_v14  ;;  %3092 = vmatpush1.bf16.msra.mxu1 %v6037_v15  ;;  %v6045_v17 = vld [vmem:[#allocation4 + $0xac] ss:$16 sps:$4 sm:$0xff]   ;;  %v6097_v14 = vld [vmem:[#allocation4 + $0x1c8] ss:$16 sps:$4 sm:$0xff]  }
 0x15d   :  { %v1108_v22 = vsel %vm1093_vm0, %v964_v18, 0.0  ;;  %2928 = vmatpush1.bf16.msra.mxu0 %v6040_v16  ;;  %v6043_v19 = vld [vmem:[#allocation4 + $0xa8] ss:$16 sps:$4 sm:$0xff]   ;;  %3093 = vmatprep.subr.bf16.mxu1 %v6045_v17  ;;  %v6100_v8 = vld [vmem:[#allocation4 + $0x1c0] ss:$16 sps:$4 sm:$0xff]   ;;  %v7072_v16 = vsub.s32 6, %v6996_v10 }
 0x15e   :  { %1109 = vadd.xlane.f32.xlu0 %v1108_v22  ;;  %v6047_v22 = vld [vmem:[#allocation4 + $0xc4] ss:$16 sps:$4 sm:$0xff]  }
 0x160   :  { %3094 = vmatpush1.bf16.msra.mxu1 %v6043_v19 }
 0x162   :  { %1095 = vadd.xlane.f32.xlu0 %v1094_v23  ;;  %v6051_v23 = vld [vmem:[#allocation4 + $0xcc] ss:$16 sps:$4 sm:$0xff]  }
 0x163   :  { %3095 = vmatprep.subr.bf16.mxu1 %v6051_v23 }
 0x199   :  { %v1002_v28 = vpop.f32.mrb[4].mxu1 }
 0x19a   :  { %v1004_v29 = vpop.f32.mrb[5].mxu1  ;;  %v7027_v32 = vadd.f32 %v1002_v28, %v258_v27  ;;  %v6052_v27 = vld [vmem:[#allocation4 + $0xc0] ss:$16 sps:$4 sm:$0xff]   ;;  %v6053_v28 = vld [vmem:[#allocation4 + $0xe4] ss:$16 sps:$4 sm:$0xff]  }
 0x19b   :  { %v7025_v30 = vadd.f32 %v1004_v29, %v262_v26  ;;  %v1006_v21 = vpop.f32.mrb[6].mxu1  ;;  %v6049_v26 = vld [vmem:[#allocation4 + $0xc8] ss:$16 sps:$4 sm:$0xff]   ;;  %v6057_v29 = vld [vmem:[#allocation4 + $0xec] ss:$16 sps:$4 sm:$0xff]  }
 0x19c   :  { %v1007_v31 = vpop.f32.mrb[7].mxu1  ;;  %v1121_v34 = vsel %vm1093_vm0, %v7027_v32, 0.0  ;;  %3096 = vmatpush1.bf16.msra.mxu1 %v6049_v26  ;;  %v6055_v21 = vld [vmem:[#allocation4 + $0xe8] ss:$16 sps:$4 sm:$0xff]   ;;  %v6105_v26 = vld [vmem:[#allocation4 + $0x1ec] ss:$16 sps:$4 sm:$0xff]  }
 0x19d   :  { %v1134_v33 = vsel %vm1093_vm0, %v7025_v30, 0.0  ;;  %v6058_v31 = vld [vmem:[#allocation4 + $0xe0] ss:$16 sps:$4 sm:$0xff]   ;;  %3097 = vmatprep.subr.bf16.mxu1 %v6057_v29 }
 0x19e   :  { %1135 = vadd.xlane.f32.xlu1 %v1134_v33  ;;  %v6059_v33 = vld [vmem:[#allocation4 + $0x104] ss:$16 sps:$4 sm:$0xff]  }
 0x1a0   :  { %3098 = vmatpush1.bf16.msra.mxu1 %v6055_v21 }
 0x1a2   :  { %1122 = vadd.xlane.f32.xlu1 %v1121_v34  ;;  %v6063_v34 = vld [vmem:[#allocation4 + $0x10c] ss:$16 sps:$4 sm:$0xff]  }
 0x1a3   :  { %3099 = vmatprep.subr.bf16.mxu1 %v6063_v34 }
 0x1a4   :  { %3100 = vmatpush1.bf16.msra.mxu1 %v6061_v35 }
 0x1a5   :  { %3101 = vmatprep.subr.bf16.mxu1 %v6069_v38 }
 0x1a8   :  { %3102 = vmatpush1.bf16.msra.mxu1 %v6067_v40 }
 0x1a9   :  { %3103 = vmatprep.subr.bf16.mxu1 %v6075_v44 }
 0x1d9   :  { %v1043_v46 = vpop.f32.mrb[8].mxu1 }
 0x1da   :  { %v1045_v47 = vpop.f32.mrb[9].mxu1  ;;  %v7052_v63 = vadd.f32 %v1043_v46, %v266_v58  ;;  %v6085_v58 = vld [vmem:[#allocation4 + $0x188] ss:$16 sps:$4 sm:$0xff]  }
 0x1db   :  { %v1047_v48 = vpop.f32.mrb[10].mxu1  ;;  %v7045_v59 = vadd.f32 %v1045_v47, %v270_v54  ;;  %v6073_v47 = vld [vmem:[#allocation4 + $0x148] ss:$16 sps:$4 sm:$0xff]   ;;  %v6082_v54 = vld [vmem:[#allocation4 + $0x160] ss:$16 sps:$4 sm:$0xff]  }
 0x1dc   :  { %v1048_v49 = vpop.f32.mrb[11].mxu1  ;;  %v1147_v3 = vsel %vm1093_vm0, %v7052_v63, 0.0  ;;  %v6076_v48 = vld [vmem:[#allocation4 + $0x140] ss:$16 sps:$4 sm:$0xff]   ;;  %3104 = vmatpush1.bf16.msra.mxu1 %v6073_v47 }
 0x1dd   :  { %v1160_v0 = vsel %vm1093_vm0, %v7045_v59, 0.0  ;;  %v6077_v49 = vld [vmem:[#allocation4 + $0x164] ss:$16 sps:$4 sm:$0xff]  }
 0x1eb   :  { %v1110_v51 = vpop.xlane.xlu0 %1109 }
 0x1ec   :  { %v1111_v52 = vmul.f32 0.0078125, %v1110_v51  ;;  %v6081_v51 = vld [vmem:[#allocation4 + $0x16c] ss:$16 sps:$4 sm:$0xff]  }
 0x1ed   :  { %3105 = vmatprep.subr.bf16.mxu1 %v6081_v51  ;;  %v7113_v51 = vld [vmem:[%s7566_s5] sm:$0xff] }
 0x1ee   :  { %v7041_v55 = vsub.f32 %v964_v18, %v1111_v52  ;;  %v6041_v18 = vld [vmem:[#allocation4 + $0xa4] ss:$16 sps:$4 sm:$0xff]   ;;  %v6079_v52 = vld [vmem:[#allocation4 + $0x168] ss:$16 sps:$4 sm:$0xff]  }
 0x1ef   :  { %v1096_v56 = vpop.xlane.xlu0 %1095  ;;  %2929 = vmatprep.subr.bf16.mxu0 %v6041_v18  ;;  %3106 = vmatpush1.bf16.msra.mxu1 %v6079_v52  ;;  %v6101_v18 = vld [vmem:[#allocation4 + $0x1e4] ss:$16 sps:$4 sm:$0xff]  }
 0x1f0   :  { %v1098_v57 = vmul.f32 0.0078125, %v1096_v56  ;;  %v1113_v60 = vmul.f32 %v7041_v55, %v7041_v55  ;;  %v6083_v56 = vld [vmem:[#allocation4 + $0x184] ss:$16 sps:$4 sm:$0xff]  }
 0x1f2   :  { %v7049_v61 = vsub.f32 %v962_v20, %v1098_v57  ;;  %v1114_v62 = vsel %vm1093_vm0, %v1113_v60, 0.0  ;;  %v6046_v20 = vld [vmem:[#allocation4 + $0xa0] ss:$16 sps:$4 sm:$0xff]   ;;  %v6087_v57 = vld [vmem:[#allocation4 + $0x18c] ss:$16 sps:$4 sm:$0xff]  }
 0x1f3   :  { %1115 = vadd.xlane.f32.xlu0 %v1114_v62  ;;  %2930 = vmatpush1.bf16.msra.mxu0 %v6046_v20  ;;  %v6088_v60 = vld [vmem:[#allocation4 + $0x180] ss:$16 sps:$4 sm:$0xff]   ;;  %v6089_v62 = vld [vmem:[#allocation4 + $0x1a4] ss:$16 sps:$4 sm:$0xff]  }
 0x1f4   :  { %v1100_v1 = vmul.f32 %v7049_v61, %v7049_v61  ;;  %2931 = vmatprep.subr.bf16.mxu0 %v6047_v22  ;;  %3107 = vmatprep.subr.bf16.mxu1 %v6087_v57  ;;  %v1256_v57 = vrot.slane %v7113_v51, %v6999_v11 }
 0x1f5   :  { %3108 = vmatpush1.bf16.msra.mxu1 %v6085_v58 }
 0x1f6   :  { %v1101_v2 = vsel %vm1093_vm0, %v1100_v1, 0.0  ;;  %v7064_v1 = vsub.s32 7, %v6996_v10 }
 0x1f7   :  { %1161 = vadd.xlane.f32.xlu0 %v1160_v0  ;;  %1102 = vadd.xlane.f32.xlu1 %v1101_v2  ;;  %v6093_v0 = vld [vmem:[#allocation4 + $0x1ac] ss:$16 sps:$4 sm:$0xff]   ;;  %v6091_v2 = vld [vmem:[#allocation4 + $0x1a8] ss:$16 sps:$4 sm:$0xff]  }
 0x1f8   :  { %2932 = vmatpush1.bf16.msra.mxu0 %v6052_v27  ;;  %3109 = vmatprep.subr.bf16.mxu1 %v6093_v0  ;;  %v278_v9 = vrot.slane %v7004_v12, %v7064_v1  ;;  %v6103_v27 = vld [vmem:[#allocation4 + $0x1e8] ss:$16 sps:$4 sm:$0xff]  }
 0x1f9   :  { %2933 = vmatprep.subr.bf16.mxu0 %v6053_v28  ;;  %3110 = vmatpush1.bf16.msra.mxu1 %v6091_v2  ;;  %v6106_v28 = vld [vmem:[#allocation4 + $0x1e0] ss:$16 sps:$4 sm:$0xff]  }
 0x1fa   :  { %3111 = vmatprep.subr.bf16.mxu1 %v6099_v5 }
 0x1fb   :  { %1148 = vadd.xlane.f32.xlu1 %v1147_v3  ;;  %v6094_v3 = vld [vmem:[#allocation4 + $0x1a0] ss:$16 sps:$4 sm:$0xff]  }
 0x1fc   :  { %2934 = vmatpush1.bf16.msra.mxu0 %v6058_v31  ;;  %v6109_v31 = vld [vmem:[#allocation4 + $0x204] ss:$16 sps:$4 sm:$0xff]  }
 0x1fd   :  { %2935 = vmatprep.subr.bf16.mxu0 %v6059_v33  ;;  %3112 = vmatpush1.bf16.msra.mxu1 %v6097_v14  ;;  %v6112_v33 = vld [vmem:[#allocation4 + $0x20c] ss:$16 sps:$4 sm:$0xff]  }
 0x1fe   :  { %3113 = vmatprep.subr.bf16.mxu1 %v6105_v26 }
 0x200   :  { %2936 = vmatpush1.bf16.msra.mxu0 %v6064_v36 }
 0x201   :  { %2937 = vmatprep.subr.bf16.mxu0 %v6065_v37  ;;  %3114 = vmatpush1.bf16.msra.mxu1 %v6103_v27  ;;  %v6115_v27 = vld [vmem:[#allocation4 + $0x224] ss:$16 sps:$4 sm:$0xff]  }
 0x202   :  { %3124 = vmatprep.subr.bf16.mxu1 %v6112_v33  ;;  %v6119_v33 = vld [vmem:[#allocation4 + $0x240] ss:$16 sps:$4 sm:$0xff]  }
 0x204   :  { %2938 = vmatpush1.bf16.msra.mxu0 %v6070_v41 }
 0x205   :  { %2939 = vmatprep.subr.bf16.mxu0 %v6071_v43 }
 0x208   :  { %2940 = vmatpush1.bf16.msra.mxu0 %v6076_v48 }
 0x209   :  { %2941 = vmatprep.subr.bf16.mxu0 %v6077_v49  ;;  %v7106_v49 = vld [vmem:[%s7565_s4] sm:$0xff] }
 0x20c   :  { %2942 = vmatpush1.bf16.msra.mxu0 %v6082_v54 }
 0x20d   :  { %2943 = vmatprep.subr.bf16.mxu0 %v6083_v56 }
 0x210   :  { %2944 = vmatpush1.bf16.msra.mxu0 %v6088_v60  ;;  %v1203_v60 = vrot.slane %v7106_v49, %v7007_v13 }
 0x211   :  { %2945 = vmatprep.subr.bf16.mxu0 %v6089_v62 }
 0x214   :  { %2946 = vmatpush1.bf16.msra.mxu0 %v6094_v3  ;;  %v1252_v3 = vrot.slane %v7113_v51, %v7007_v13 }
 0x215   :  { %2947 = vmatprep.subr.bf16.mxu0 %v6095_v4 }
 0x218   :  { %2948 = vmatpush1.bf16.msra.mxu0 %v6100_v8 }
 0x219   :  { %v7061_v39 = vpop.f32.mrb[12].mxu1  ;;  %2949 = vmatprep.subr.bf16.mxu0 %v6101_v18 }
 0x21a   :  { %v1086_v42 = vpop.f32.mrb[13].mxu1 }
 0x21b   :  { %v1088_v45 = vpop.f32.mrb[14].mxu1  ;;  %v7074_v20 = vadd.f32 %v1086_v42, %v278_v9 }
 0x21c   :  { %v1089_v46 = vpop.f32.mrb[15].mxu1  ;;  %2950 = vmatpush1.bf16.msra.mxu0 %v6106_v28  ;;  %v6118_v28 = vld [vmem:[#allocation4 + $0x22c] ss:$16 sps:$4 sm:$0xff]  }
 0x21d   :  { %v1186_v29 = vsel %vm1093_vm0, %v7074_v20, 0.0  ;;  %2960 = vmatprep.subr.bf16.mxu0 %v6109_v31  ;;  %v6124_v31 = vld [vmem:[#allocation4 + $0x24c] ss:$16 sps:$4 sm:$0xff]  }
 0x22b   :  { %v1136_v6 = vpop.xlane.xlu1 %1135 }
 0x22c   :  { %v1137_v7 = vmul.f32 0.0078125, %v1136_v6 }
 0x22e   :  { %v7069_v15 = vsub.f32 %v7025_v30, %v1137_v7  ;;  %v274_v30 = vrot.slane %v7004_v12, %v7072_v16 }
 0x22f   :  { %v1123_v17 = vpop.xlane.xlu1 %1122 }
 0x230   :  { %v1124_v19 = vmul.f32 0.0078125, %v1123_v17  ;;  %v1139_v22 = vmul.f32 %v7069_v15, %v7069_v15 }
 0x232   :  { %v7079_v23 = vsub.f32 %v7027_v32, %v1124_v19  ;;  %v1140_v10 = vsel %vm1093_vm0, %v1139_v22, 0.0  ;;  %v7089_v32 = vadd.f32 %v7061_v39, %v274_v30  ;;  %v6107_v30 = vld [vmem:[#allocation4 + $0x200] ss:$16 sps:$4 sm:$0xff]  }
 0x233   :  { %1141 = vadd.xlane.f32.xlu0 %v1140_v10  ;;  %v6110_v10 = vld [vmem:[#allocation4 + $0x208] ss:$16 sps:$4 sm:$0xff]  }
 0x234   :  { %v1126_v21 = vmul.f32 %v7079_v23, %v7079_v23  ;;  %v1173_v34 = vsel %vm1093_vm0, %v7089_v32, 0.0 }
 0x236   :  { %v1127_v12 = vsel %vm1093_vm0, %v1126_v21, 0.0  ;;  %v6116_v21 = vld [vmem:[#allocation4 + $0x228] ss:$16 sps:$4 sm:$0xff]  }
 0x237   :  { %1187 = vadd.xlane.f32.xlu0 %v1186_v29  ;;  %1128 = vadd.xlane.f32.xlu1 %v1127_v12  ;;  %v6113_v29 = vld [vmem:[#allocation4 + $0x220] ss:$16 sps:$4 sm:$0xff]   ;;  %v6121_v12 = vld [vmem:[#allocation4 + $0x244] ss:$16 sps:$4 sm:$0xff]  }
 0x23b   :  { %1174 = vadd.xlane.f32.xlu1 %v1173_v34  ;;  %v6122_v34 = vld [vmem:[#allocation4 + $0x248] ss:$16 sps:$4 sm:$0xff]  }
 0x280   :  { %v1116_v35 = vpop.xlane.xlu0 %1115 }
 0x281   :  { %v1117_v36 = vmul.f32 0.0078125, %v1116_v35  ;;  %v6127_v35 = vld [vmem:[#allocation4 + $0x264] ss:$16 sps:$4 sm:$0xff]  }
 0x283   :  { %v1118_v37 = vadd.f32 1e-05, %v1117_v36  ;;  %v6130_v36 = vld [vmem:[#allocation4 + $0x26c] ss:$16 sps:$4 sm:$0xff]  }
 0x284   :  { %v1103_v38 = vpop.xlane.xlu1 %1102  ;;  %v1162_v40 = vpop.xlane.xlu0 %1161 }
 0x285   :  { %6627 = vrsqrt.f32 %v1118_v37  ;;  %v1104_v39 = vmul.f32 0.0078125, %v1103_v38  ;;  %v1163_v41 = vmul.f32 0.0078125, %v1162_v40  ;;  %v6125_v40 = vld [vmem:[#allocation4 + $0x260] ss:$16 sps:$4 sm:$0xff]  }
 0x287   :  { %v1105_v42 = vadd.f32 1e-05, %v1104_v39  ;;  %v7095_v43 = vsub.f32 %v7045_v59, %v1163_v41  ;;  %v6128_v39 = vld [vmem:[#allocation4 + $0x268] ss:$16 sps:$4 sm:$0xff]   ;;  %v6133_v41 = vld [vmem:[#allocation4 + $0x284] ss:$16 sps:$4 sm:$0xff]  }
 0x288   :  { %v1149_v44 = vpop.xlane.xlu1 %1148 }
 0x289   :  { %6629 = vrsqrt.f32 %v1105_v42  ;;  %v1150_v45 = vmul.f32 0.0078125, %v1149_v44  ;;  %v1165_v46 = vmul.f32 %v7095_v43, %v7095_v43  ;;  %v6136_v42 = vld [vmem:[#allocation4 + $0x28c] ss:$16 sps:$4 sm:$0xff]  }
 0x28b   :  { %v7100_v47 = vsub.f32 %v7052_v63, %v1150_v45  ;;  %v1166_v48 = vsel %vm1093_vm0, %v1165_v46, 0.0  ;;  %v1207_v63 = vrot.slane %v7106_v49, %v6999_v11 }
 0x28c   :  { %1167 = vadd.xlane.f32.xlu0 %v1166_v48 }
 0x28d   :  { %v1152_v59 = vmul.f32 %v7100_v47, %v7100_v47 }
 0x28f   :  { %v6628_v52 = vpop.eup %6627  ;;  %v1153_v54 = vsel %vm1093_vm0, %v1152_v59, 0.0 }
 0x290   :  { %1154 = vadd.xlane.f32.xlu1 %v1153_v54  ;;  %v1120_v56 = vmul.f32 %v6628_v52, %v7041_v55  ;;  %v6134_v52 = vld [vmem:[#allocation4 + $0x288] ss:$16 sps:$4 sm:$0xff]   ;;  %v6139_v54 = vld [vmem:[#allocation4 + $0x2a4] ss:$16 sps:$4 sm:$0xff]  }
 0x292   :  { %v1241_v58 = vmul.f32 %v1207_v63, %v1120_v56  ;;  %v6131_v63 = vld [vmem:[#allocation4 + $0x280] ss:$16 sps:$4 sm:$0xff]   ;;  %v6142_v56 = vld [vmem:[#allocation4 + $0x2ac] ss:$16 sps:$4 sm:$0xff]  }
 0x293   :  { %v6630_v62 = vpop.eup %6629 }
 0x294   :  { %v1290_v0 = vadd.f32 %v1256_v57, %v1241_v58  ;;  %v1107_v2 = vmul.f32 %v6630_v62, %v7049_v61 }
 0x296   :  { %v5458_v4 = vmul.f32 -1.442695, %v1290_v0  ;;  %v1240_v5 = vmul.f32 %v1203_v60, %v1107_v2  ;;  %v6140_v2 = vld [vmem:[#allocation4 + $0x2a8] ss:$16 sps:$4 sm:$0xff]  }
 0x298   :  { %6631 = vpow2.f32 %v5458_v4  ;;  %v1289_v6 = vadd.f32 %v1252_v3, %v1240_v5  ;;  %v6145_v4 = vld [vmem:[#allocation4 + $0x2c4] ss:$16 sps:$4 sm:$0xff]   ;;  %v6148_v5 = vld [vmem:[#allocation4 + $0x2cc] ss:$16 sps:$4 sm:$0xff]  }
 0x29a   :  { %v5457_v7 = vmul.f32 -1.442695, %v1289_v6 }
 0x29c   :  { %6633 = vpow2.f32 %v5457_v7 }
 0x2a2   :  { %v6632_v55 = vpop.eup %6631 }
 0x2a3   :  { %v1322_v9 = vadd.f32 1.0, %v6632_v55  ;;  %v6143_v55 = vld [vmem:[#allocation4 + $0x2c0] ss:$16 sps:$4 sm:$0xff]  }
 0x2a5   :  { %6635 = vrcp.f32 %v1322_v9  ;;  %v6146_v9 = vld [vmem:[#allocation4 + $0x2c8] ss:$16 sps:$4 sm:$0xff]  }
 0x2a6   :  { %v6634_v14 = vpop.eup %6633 }
 0x2a7   :  { %v1321_v8 = vadd.f32 1.0, %v6634_v14  ;;  %v6151_v14 = vld [vmem:[#allocation4 + $0x2e4] ss:$16 sps:$4 sm:$0xff]  }
 0x2a9   :  { %6637 = vrcp.f32 %v1321_v8  ;;  %v6154_v8 = vld [vmem:[#allocation4 + $0x2ec] ss:$16 sps:$4 sm:$0xff]  }
 0x2af   :  { %v6636_v18 = vpop.eup %6635 }
 0x2b0   :  { %v1346_v17 = vmul.f32 %v6636_v18, %v1290_v0  ;;  %v6137_v0 = vld [vmem:[#allocation4 + $0x2a0] ss:$16 sps:$4 sm:$0xff]   ;;  %v1215_v18 = vrot.slane %v7106_v49, %v7016_v24 }
 0x2b2   :  { %v1354_v19 = vpack.c.bf16 %v1346_v17, %v1346_v17 }
 0x2b3   :  { %v6638_v22 = vpop.eup %6637 }
 0x2b4   :  { %2951 = vmatprep.mubr.bf16.mxu0 %v1354_v19  ;;  %3115 = vmatprep.mubr.bf16.mxu1 %v1354_v19  ;;  %v1345_v61 = vmul.f32 %v6638_v22, %v1289_v6  ;;  %v1264_v22 = vrot.slane %v7113_v51, %v7016_v24 }
 0x2b6   :  { %v1353_v26 = vpack.c.bf16 %v1345_v61, %v1345_v61  ;;  %v6149_v61 = vld [vmem:[#allocation4 + $0x2e0] ss:$16 sps:$4 sm:$0xff]  }
 0x2b8   :  { %2952 = vmatmul.mubr.bf16.vlgmr.msra.gmra.mrb[0].mxu0 %v1353_v26  ;;  %3116 = vmatmul.mubr.bf16.vlgmr.msra.gmra.mrb[16].mxu1 %v1353_v26  ;;  %v6160_v26 = vld [vmem:[#allocation4 + $0x30c] ss:$16 sps:$4 sm:$0xff]  }
 0x2b9   :  { %2961 = vmatpush1.bf16.msra.mxu0 %v6107_v30  ;;  %3125 = vmatpush1.bf16.msra.mxu1 %v6110_v10  ;;  %v6152_v30 = vld [vmem:[#allocation4 + $0x2e8] ss:$16 sps:$4 sm:$0xff]   ;;  %v6157_v10 = vld [vmem:[#allocation4 + $0x304] ss:$16 sps:$4 sm:$0xff]  }
 0x2ba   :  { %2962 = vmatprep.subr.bf16.mxu0 %v6115_v27  ;;  %3126 = vmatprep.subr.bf16.mxu1 %v6118_v28  ;;  %v1211_v28 = vrot.slane %v7106_v49, %v7019_v25 }
 0x2bd   :  { %2963 = vmatpush1.bf16.msra.mxu0 %v6113_v29  ;;  %3127 = vmatpush1.bf16.msra.mxu1 %v6116_v21 }
 0x2be   :  { %2964 = vmatprep.subr.bf16.mxu0 %v6121_v12  ;;  %3128 = vmatprep.subr.bf16.mxu1 %v6124_v31  ;;  %v6155_v31 = vld [vmem:[#allocation4 + $0x300] ss:$16 sps:$4 sm:$0xff]  }
 0x2c0   :  { %v1142_v37 = vpop.xlane.xlu0 %1141 }
 0x2c1   :  { %v1143_v38 = vmul.f32 0.0078125, %v1142_v37  ;;  %2965 = vmatpush1.bf16.msra.mxu0 %v6119_v33  ;;  %3129 = vmatpush1.bf16.msra.mxu1 %v6122_v34  ;;  %v6158_v33 = vld [vmem:[#allocation4 + $0x308] ss:$16 sps:$4 sm:$0xff]   ;;  %v6163_v34 = vld [vmem:[#allocation4 + $0x324] ss:$16 sps:$4 sm:$0xff]  }
 0x2c2   :  { %2966 = vmatprep.subr.bf16.mxu0 %v6127_v35  ;;  %3130 = vmatprep.subr.bf16.mxu1 %v6130_v36  ;;  %v6166_v35 = vld [vmem:[#allocation4 + $0x32c] ss:$16 sps:$4 sm:$0xff]  }
 0x2c3   :  { %v1144_v44 = vadd.f32 1e-05, %v1143_v38 }
 0x2c4   :  { %v1129_v45 = vpop.xlane.xlu1 %1128  ;;  %v1188_v46 = vpop.xlane.xlu0 %1187 }
 0x2c5   :  { %6639 = vrsqrt.f32 %v1144_v44  ;;  %v1130_v48 = vmul.f32 0.0078125, %v1129_v45  ;;  %v1189_v59 = vmul.f32 0.0078125, %v1188_v46  ;;  %2967 = vmatpush1.bf16.msra.mxu0 %v6125_v40  ;;  %3131 = vmatpush1.bf16.msra.mxu1 %v6128_v39  ;;  %v6164_v40 = vld [vmem:[#allocation4 + $0x328] ss:$16 sps:$4 sm:$0xff]   ;;  %v6169_v39 = vld [vmem:[#allocation4 + $0x344] ss:$16 sps:$4 sm:$0xff]  }
 0x2c6   :  { %2968 = vmatprep.subr.bf16.mxu0 %v6133_v41  ;;  %3132 = vmatprep.subr.bf16.mxu1 %v6136_v42  ;;  %v6172_v41 = vld [vmem:[#allocation4 + $0x34c] ss:$16 sps:$4 sm:$0xff]   ;;  %v6167_v44 = vld [vmem:[#allocation4 + $0x340] ss:$16 sps:$4 sm:$0xff]   ;;  %v6170_v45 = vld [vmem:[#allocation4 + $0x348] ss:$16 sps:$4 sm:$0xff]  }
 0x2c7   :  { %v1131_v57 = vadd.f32 1e-05, %v1130_v48  ;;  %v7127_v58 = vsub.f32 %v7074_v20, %v1189_v59  ;;  %v6175_v46 = vld [vmem:[#allocation4 + $0x364] ss:$16 sps:$4 sm:$0xff]   ;;  %v6178_v48 = vld [vmem:[#allocation4 + $0x36c] ss:$16 sps:$4 sm:$0xff]  }
 0x2c8   :  { %v1175_v60 = vpop.xlane.xlu1 %1174  ;;  %v6173_v59 = vld [vmem:[#allocation4 + $0x360] ss:$16 sps:$4 sm:$0xff]  }
 0x2c9   :  { %6641 = vrsqrt.f32 %v1131_v57  ;;  %v1176_v62 = vmul.f32 0.0078125, %v1175_v60  ;;  %2969 = vmatpush1.bf16.msra.mxu0 %v6131_v63  ;;  %3133 = vmatpush1.bf16.msra.mxu1 %v6134_v52  ;;  %v1191_v3 = vmul.f32 %v7127_v58, %v7127_v58  ;;  %v6176_v63 = vld [vmem:[#allocation4 + $0x368] ss:$16 sps:$4 sm:$0xff]   ;;  %v6179_v60 = vld [vmem:[#allocation4 + $0x380] ss:$16 sps:$4 sm:$0xff]  }
 0x2ca   :  { %2970 = vmatprep.subr.bf16.mxu0 %v6139_v54  ;;  %3134 = vmatprep.subr.bf16.mxu1 %v6142_v56  ;;  %v6181_v54 = vld [vmem:[#allocation4 + $0x384] ss:$16 sps:$4 sm:$0xff]   ;;  %v6184_v56 = vld [vmem:[#allocation4 + $0x38c] ss:$16 sps:$4 sm:$0xff]  }
 0x2cb   :  { %v7132_v6 = vsub.f32 %v7089_v32, %v1176_v62  ;;  %v1192_v20 = vsel %vm1093_vm0, %v1191_v3, 0.0  ;;  %v6182_v62 = vld [vmem:[#allocation4 + $0x388] ss:$16 sps:$4 sm:$0xff]   ;;  %v6190_v3 = vld [vmem:[#allocation4 + $0x3ac] ss:$16 sps:$4 sm:$0xff]  }
 0x2cc   :  { %1193 = vadd.xlane.f32.xlu0 %v1192_v20  ;;  %v6188_v20 = vld [vmem:[#allocation4 + $0x3a8] ss:$16 sps:$4 sm:$0xff]  }
 0x2cd   :  { %2971 = vmatpush1.bf16.msra.mxu0 %v6137_v0  ;;  %3135 = vmatpush1.bf16.msra.mxu1 %v6140_v2  ;;  %v1178_v7 = vmul.f32 %v7132_v6, %v7132_v6  ;;  %v6187_v2 = vld [vmem:[#allocation4 + $0x3a4] ss:$16 sps:$4 sm:$0xff]  }
 0x2ce   :  { %2972 = vmatprep.subr.bf16.mxu0 %v6145_v4  ;;  %3136 = vmatprep.subr.bf16.mxu1 %v6148_v5  ;;  %v6185_v5 = vld [vmem:[#allocation4 + $0x3a0] ss:$16 sps:$4 sm:$0xff]  }
 0x2cf   :  { %v6640_v17 = vpop.eup %6639  ;;  %v1179_v32 = vsel %vm1093_vm0, %v1178_v7, 0.0  ;;  %v6193_v7 = vld [vmem:[#allocation4 + $0x3c4] ss:$16 sps:$4 sm:$0xff]  }
 0x2d0   :  { %1180 = vadd.xlane.f32.xlu1 %v1179_v32  ;;  %v1146_v19 = vmul.f32 %v6640_v17, %v7069_v15  ;;  %v1260_v15 = vrot.slane %v7113_v51, %v7019_v25 }
 0x2d1   :  { %2973 = vmatpush1.bf16.msra.mxu0 %v6143_v55  ;;  %3137 = vmatpush1.bf16.msra.mxu1 %v6146_v9  ;;  %v6196_v55 = vld [vmem:[#allocation4 + $0x3cc] ss:$16 sps:$4 sm:$0xff]   ;;  %v6191_v9 = vld [vmem:[#allocation4 + $0x3c0] ss:$16 sps:$4 sm:$0xff]  }
 0x2d2   :  { %2974 = vmatprep.subr.bf16.mxu0 %v6151_v14  ;;  %3138 = vmatprep.subr.bf16.mxu1 %v6154_v8  ;;  %v1243_v27 = vmul.f32 %v1215_v18, %v1146_v19  ;;  %v6194_v14 = vld [vmem:[#allocation4 + $0x3c8] ss:$16 sps:$4 sm:$0xff]   ;;  %v6199_v8 = vld [vmem:[#allocation4 + $0x3e4] ss:$16 sps:$4 sm:$0xff]   ;;  %v6202_v18 = vld [vmem:[#allocation4 + $0x3ec] ss:$16 sps:$4 sm:$0xff]  }
 0x2d3   :  { %v6642_v29 = vpop.eup %6641  ;;  %v6197_v19 = vld [vmem:[#allocation4 + $0x3e0] ss:$16 sps:$4 sm:$0xff]  }
 0x2d4   :  { %v1133_v21 = vmul.f32 %v6642_v29, %v7079_v23  ;;  %v7146_v12 = vadd.f32 %v1264_v22, %v1243_v27  ;;  %v6161_v23 = vld [vmem:[#allocation4 + $0x320] ss:$16 sps:$4 sm:$0xff]   ;;  %v6200_v22 = vld [vmem:[#allocation4 + $0x3e8] ss:$16 sps:$4 sm:$0xff]  }
 0x2d5   :  { %2975 = vmatpush1.bf16.msra.mxu0 %v6149_v61  ;;  %3139 = vmatpush1.bf16.msra.mxu1 %v6152_v30  ;;  %v6205_v30 = vld [vmem:[#allocation4 + $0x404] ss:$16 sps:$4 sm:$0xff]   ;;  %v6206_v29 = vld [vmem:[#allocation4 + $0x408] ss:$16 sps:$4 sm:$0xff]  }
 0x2d6   :  { %2976 = vmatprep.subr.bf16.mxu0 %v6157_v10  ;;  %3140 = vmatprep.subr.bf16.mxu1 %v6160_v26  ;;  %v5460_v36 = vmul.f32 -1.442695, %v7146_v12  ;;  %v1242_v37 = vmul.f32 %v1211_v28, %v1133_v21  ;;  %v6208_v10 = vld [vmem:[#allocation4 + $0x40c] ss:$16 sps:$4 sm:$0xff]   ;;  %v6203_v28 = vld [vmem:[#allocation4 + $0x400] ss:$16 sps:$4 sm:$0xff]  }
 0x2d8   :  { %6643 = vpow2.f32 %v5460_v36  ;;  %v7151_v38 = vadd.f32 %v1260_v15, %v1242_v37  ;;  %v6214_v15 = vld [vmem:[#allocation4 + $0x42c] ss:$16 sps:$4 sm:$0xff]   ;;  %v6215_v36 = vld [vmem:[#allocation4 + $0x440] ss:$16 sps:$4 sm:$0xff]   ;;  %v6218_v37 = vld [vmem:[#allocation4 + $0x448] ss:$16 sps:$4 sm:$0xff]  }
 0x2d9   :  { %2977 = vmatpush1.bf16.msra.mxu0 %v6155_v31  ;;  %3141 = vmatpush1.bf16.msra.mxu1 %v6158_v33  ;;  %v6209_v31 = vld [vmem:[#allocation4 + $0x420] ss:$16 sps:$4 sm:$0xff]   ;;  %v6212_v33 = vld [vmem:[#allocation4 + $0x428] ss:$16 sps:$4 sm:$0xff]  }
 0x2da   :  { %2978 = vmatprep.subr.bf16.mxu0 %v6163_v34  ;;  %3142 = vmatprep.subr.bf16.mxu1 %v6166_v35  ;;  %v5459_v42 = vmul.f32 -1.442695, %v7151_v38  ;;  %v6217_v34 = vld [vmem:[#allocation4 + $0x444] ss:$16 sps:$4 sm:$0xff]   ;;  %v6220_v35 = vld [vmem:[#allocation4 + $0x44c] ss:$16 sps:$4 sm:$0xff]  }
 0x2dc   :  { %6645 = vpow2.f32 %v5459_v42  ;;  %v6232_v42 = vld [vmem:[#allocation4 + $0x48c] ss:$16 sps:$4 sm:$0xff]  }
 0x2dd   :  { %2979 = vmatpush1.bf16.msra.mxu0 %v6161_v23  ;;  %3143 = vmatpush1.bf16.msra.mxu1 %v6164_v40  ;;  %v6226_v23 = vld [vmem:[#allocation4 + $0x46c] ss:$16 sps:$4 sm:$0xff]   ;;  %v6221_v40 = vld [vmem:[#allocation4 + $0x460] ss:$16 sps:$4 sm:$0xff]  }
 0x2de   :  { %2980 = vmatprep.subr.bf16.mxu0 %v6169_v39  ;;  %3144 = vmatprep.subr.bf16.mxu1 %v6172_v41  ;;  %v6224_v39 = vld [vmem:[#allocation4 + $0x468] ss:$16 sps:$4 sm:$0xff]   ;;  %v6229_v41 = vld [vmem:[#allocation4 + $0x484] ss:$16 sps:$4 sm:$0xff]  }
 0x2e1   :  { %2981 = vmatpush1.bf16.msra.mxu0 %v6167_v44  ;;  %3145 = vmatpush1.bf16.msra.mxu1 %v6170_v45  ;;  %v6227_v44 = vld [vmem:[#allocation4 + $0x480] ss:$16 sps:$4 sm:$0xff]   ;;  %v6230_v45 = vld [vmem:[#allocation4 + $0x488] ss:$16 sps:$4 sm:$0xff]  }
 0x2e2   :  { %v6644_v52 = vpop.eup %6643  ;;  %2982 = vmatprep.subr.bf16.mxu0 %v6175_v46  ;;  %3146 = vmatprep.subr.bf16.mxu1 %v6178_v48  ;;  %v6235_v46 = vld [vmem:[#allocation4 + $0x4a4] ss:$16 sps:$4 sm:$0xff]   ;;  %v6238_v48 = vld [vmem:[#allocation4 + $0x4ac] ss:$16 sps:$4 sm:$0xff]  }
 0x2e3   :  { %v1324_v57 = vadd.f32 1.0, %v6644_v52  ;;  %v6241_v52 = vld [vmem:[#allocation4 + $0x4c4] ss:$16 sps:$4 sm:$0xff]  }
 0x2e5   :  { %2983 = vmatpush1.bf16.msra.mxu0 %v6173_v59  ;;  %3147 = vmatpush1.bf16.msra.mxu1 %v6176_v63  ;;  %6647 = vrcp.f32 %v1324_v57  ;;  %v6233_v59 = vld [vmem:[#allocation4 + $0x4a0] ss:$16 sps:$4 sm:$0xff]   ;;  %v6236_v63 = vld [vmem:[#allocation4 + $0x4a8] ss:$16 sps:$4 sm:$0xff]  }
 0x2e6   :  { %v6646_v0 = vpop.eup %6645  ;;  %2984 = vmatprep.subr.bf16.mxu0 %v6181_v54  ;;  %3148 = vmatprep.subr.bf16.mxu1 %v6184_v56  ;;  %v6244_v54 = vld [vmem:[#allocation4 + $0x4cc] ss:$16 sps:$4 sm:$0xff]   ;;  %v6239_v56 = vld [vmem:[#allocation4 + $0x4c0] ss:$16 sps:$4 sm:$0xff]   ;;  %v6242_v57 = vld [vmem:[#allocation4 + $0x4c8] ss:$16 sps:$4 sm:$0xff]  }
 0x2e7   :  { %v1323_v4 = vadd.f32 1.0, %v6646_v0  ;;  %v6245_v0 = vld [vmem:[#allocation4 + $0x4e0] ss:$16 sps:$4 sm:$0xff]  }
 0x2e9   :  { %2985 = vmatpush1.bf16.msra.mxu0 %v6179_v60  ;;  %3149 = vmatpush1.bf16.msra.mxu1 %v6182_v62  ;;  %6649 = vrcp.f32 %v1323_v4  ;;  %v6247_v60 = vld [vmem:[#allocation4 + $0x4e4] ss:$16 sps:$4 sm:$0xff]   ;;  %v6250_v62 = vld [vmem:[#allocation4 + $0x4ec] ss:$16 sps:$4 sm:$0xff]  }
 0x2ea   :  { %2986 = vmatprep.subr.bf16.mxu0 %v6187_v2  ;;  %3150 = vmatprep.subr.bf16.mxu1 %v6190_v3  ;;  %v6248_v2 = vld [vmem:[#allocation4 + $0x4e8] ss:$16 sps:$4 sm:$0xff]   ;;  %v6253_v3 = vld [vmem:[#allocation4 + $0x504] ss:$16 sps:$4 sm:$0xff]   ;;  %v6256_v4 = vld [vmem:[#allocation4 + $0x50c] ss:$16 sps:$4 sm:$0xff]  }
 0x2ed   :  { %2987 = vmatpush1.bf16.msra.mxu0 %v6185_v5  ;;  %3151 = vmatpush1.bf16.msra.mxu1 %v6188_v20  ;;  %v6251_v5 = vld [vmem:[#allocation4 + $0x500] ss:$16 sps:$4 sm:$0xff]   ;;  %v6254_v20 = vld [vmem:[#allocation4 + $0x508] ss:$16 sps:$4 sm:$0xff]  }
 0x2ee   :  { %2988 = vmatprep.subr.bf16.mxu0 %v6193_v7  ;;  %3152 = vmatprep.subr.bf16.mxu1 %v6196_v55  ;;  %v6259_v7 = vld [vmem:[#allocation4 + $0x524] ss:$16 sps:$4 sm:$0xff]   ;;  %v6262_v55 = vld [vmem:[#allocation4 + $0x52c] ss:$16 sps:$4 sm:$0xff]  }
 0x2ef   :  { %v6648_v17 = vpop.eup %6647 }
 0x2f0   :  { %v1348_v32 = vmul.f32 %v6648_v17, %v7146_v12  ;;  %v6211_v12 = vld [vmem:[#allocation4 + $0x424] ss:$16 sps:$4 sm:$0xff]  }
 0x2f1   :  { %2989 = vmatpush1.bf16.msra.mxu0 %v6191_v9  ;;  %3153 = vmatpush1.bf16.msra.mxu1 %v6194_v14  ;;  %v6257_v14 = vld [vmem:[#allocation4 + $0x520] ss:$16 sps:$4 sm:$0xff]   ;;  %v6265_v17 = vld [vmem:[#allocation4 + $0x544] ss:$16 sps:$4 sm:$0xff]  }
 0x2f2   :  { %2990 = vmatprep.subr.bf16.mxu0 %v6199_v8  ;;  %v1356_v61 = vpack.c.bf16 %v1348_v32, %v1348_v32  ;;  %3154 = vmatprep.subr.bf16.mxu1 %v6202_v18  ;;  %v6260_v8 = vld [vmem:[#allocation4 + $0x528] ss:$16 sps:$4 sm:$0xff]   ;;  %v6268_v32 = vld [vmem:[#allocation4 + $0x54c] ss:$16 sps:$4 sm:$0xff]  }
 0x2f3   :  { %v6650_v26 = vpop.eup %6649 }
 0x2f4   :  { %2992 = vmatprep.mubr.bf16.mxu0 %v1356_v61  ;;  %3156 = vmatprep.mubr.bf16.mxu1 %v1356_v61  ;;  %v1347_v27 = vmul.f32 %v6650_v26, %v7151_v38  ;;  %v6223_v38 = vld [vmem:[#allocation4 + $0x464] ss:$16 sps:$4 sm:$0xff]   ;;  %v6263_v61 = vld [vmem:[#allocation4 + $0x540] ss:$16 sps:$4 sm:$0xff]  }
 0x2f5   :  { %2991 = vmatpush1.bf16.msra.mxu0 %v6197_v19  ;;  %3155 = vmatpush1.bf16.msra.mxu1 %v6200_v22  ;;  %v6271_v26 = vld [vmem:[#allocation4 + $0x564] ss:$16 sps:$4 sm:$0xff]  }
 0x2f6   :  { %v1355_v21 = vpack.c.bf16 %v1347_v27, %v1347_v27  ;;  %3001 = vmatprep.subr.bf16.mxu0 %v6205_v30  ;;  %3165 = vmatprep.subr.bf16.mxu1 %v6208_v10  ;;  %v6266_v30 = vld [vmem:[#allocation4 + $0x548] ss:$16 sps:$4 sm:$0xff]   ;;  %v6274_v27 = vld [vmem:[#allocation4 + $0x56c] ss:$16 sps:$4 sm:$0xff]  }
 0x2f8   :  { %2993 = vmatmul.mubr.bf16.vlgmr.msra.gmra.mrb[0].mxu0 %v1355_v21  ;;  %3157 = vmatmul.mubr.bf16.vlgmr.msra.gmra.mrb[16].mxu1 %v1355_v21  ;;  %v6272_v21 = vld [vmem:[#allocation4 + $0x568] ss:$16 sps:$4 sm:$0xff]  }
 0x2f9   :  { %3002 = vmatpush1.bf16.msra.mxu0 %v6203_v28  ;;  %3166 = vmatpush1.bf16.msra.mxu1 %v6206_v29  ;;  %v6269_v29 = vld [vmem:[#allocation4 + $0x560] ss:$16 sps:$4 sm:$0xff]  }
 0x2fa   :  { %3003 = vmatprep.subr.bf16.mxu0 %v6211_v12  ;;  %3167 = vmatprep.subr.bf16.mxu1 %v6214_v15  ;;  %v6277_v12 = vld [vmem:[#allocation4 + $0x584] ss:$16 sps:$4 sm:$0xff]   ;;  %v6280_v15 = vld [vmem:[#allocation4 + $0x58c] ss:$16 sps:$4 sm:$0xff]  }
 0x2fd   :  { %3004 = vmatpush1.bf16.msra.mxu0 %v6209_v31  ;;  %3168 = vmatpush1.bf16.msra.mxu1 %v6212_v33  ;;  %v6275_v31 = vld [vmem:[#allocation4 + $0x580] ss:$16 sps:$4 sm:$0xff]   ;;  %v6278_v33 = vld [vmem:[#allocation4 + $0x588] ss:$16 sps:$4 sm:$0xff]  }
 0x2fe   :  { %3005 = vmatprep.subr.bf16.mxu0 %v6217_v34  ;;  %3169 = vmatprep.subr.bf16.mxu1 %v6220_v35  ;;  %v6283_v34 = vld [vmem:[#allocation4 + $0x5a4] ss:$16 sps:$4 sm:$0xff]   ;;  %v6286_v35 = vld [vmem:[#allocation4 + $0x5ac] ss:$16 sps:$4 sm:$0xff]  }
 0x301   :  { %3006 = vmatpush1.bf16.msra.mxu0 %v6215_v36  ;;  %3170 = vmatpush1.bf16.msra.mxu1 %v6218_v37  ;;  %v1223_v36 = vrot.slane %v7106_v49, %v7034_v50 }
 0x302   :  { %3007 = vmatprep.subr.bf16.mxu0 %v6223_v38  ;;  %3171 = vmatprep.subr.bf16.mxu1 %v6226_v23  ;;  %v6281_v38 = vld [vmem:[#allocation4 + $0x5a0] ss:$16 sps:$4 sm:$0xff]   ;;  %v6284_v23 = vld [vmem:[#allocation4 + $0x5a8] ss:$16 sps:$4 sm:$0xff]  }
 0x305   :  { %3008 = vmatpush1.bf16.msra.mxu0 %v6221_v40  ;;  %3172 = vmatpush1.bf16.msra.mxu1 %v6224_v39  ;;  %v1272_v39 = vrot.slane %v7113_v51, %v7034_v50 }
 0x306   :  { %3009 = vmatprep.subr.bf16.mxu0 %v6229_v41  ;;  %3173 = vmatprep.subr.bf16.mxu1 %v6232_v42  ;;  %v6289_v41 = vld [vmem:[#allocation4 + $0x5c4] ss:$16 sps:$4 sm:$0xff]   ;;  %v6292_v42 = vld [vmem:[#allocation4 + $0x5cc] ss:$16 sps:$4 sm:$0xff]  }
 0x309   :  { %3010 = vmatpush1.bf16.msra.mxu0 %v6227_v44  ;;  %3174 = vmatpush1.bf16.msra.mxu1 %v6230_v45  ;;  %v1219_v45 = vrot.slane %v7106_v49, %v7037_v53 }
 0x30a   :  { %3011 = vmatprep.subr.bf16.mxu0 %v6235_v46  ;;  %3175 = vmatprep.subr.bf16.mxu1 %v6238_v48 }
 0x30d   :  { %3012 = vmatpush1.bf16.msra.mxu0 %v6233_v59  ;;  %3176 = vmatpush1.bf16.msra.mxu1 %v6236_v63  ;;  %v6287_v59 = vld [vmem:[#allocation4 + $0x5c0] ss:$16 sps:$4 sm:$0xff]   ;;  %v6290_v63 = vld [vmem:[#allocation4 + $0x5c8] ss:$16 sps:$4 sm:$0xff]  }
 0x30e   :  { %3013 = vmatprep.subr.bf16.mxu0 %v6241_v52  ;;  %3177 = vmatprep.subr.bf16.mxu1 %v6244_v54  ;;  %v6295_v54 = vld [vmem:[#allocation4 + $0x5e4] ss:$16 sps:$4 sm:$0xff]  }
 0x311   :  { %3014 = vmatpush1.bf16.msra.mxu0 %v6239_v56  ;;  %3178 = vmatpush1.bf16.msra.mxu1 %v6242_v57  ;;  %v6298_v56 = vld [vmem:[#allocation4 + $0x5ec] ss:$16 sps:$4 sm:$0xff]  }
 0x312   :  { %3015 = vmatprep.subr.bf16.mxu0 %v6247_v60  ;;  %3179 = vmatprep.subr.bf16.mxu1 %v6250_v62  ;;  %v6293_v62 = vld [vmem:[#allocation4 + $0x5e0] ss:$16 sps:$4 sm:$0xff]  }
 0x315   :  { %3016 = vmatpush1.bf16.msra.mxu0 %v6245_v0  ;;  %3180 = vmatpush1.bf16.msra.mxu1 %v6248_v2  ;;  %v6296_v0 = vld [vmem:[#allocation4 + $0x5e8] ss:$16 sps:$4 sm:$0xff]   ;;  %v6301_v2 = vld [vmem:[#allocation4 + $0x604] ss:$16 sps:$4 sm:$0xff]  }
 0x316   :  { %3017 = vmatprep.subr.bf16.mxu0 %v6253_v3  ;;  %3181 = vmatprep.subr.bf16.mxu1 %v6256_v4  ;;  %v6304_v3 = vld [vmem:[#allocation4 + $0x60c] ss:$16 sps:$4 sm:$0xff]  }
 0x319   :  { %v1168_v9 = vpop.xlane.xlu0 %1167  ;;  %3018 = vmatpush1.bf16.msra.mxu0 %v6251_v5  ;;  %3182 = vmatpush1.bf16.msra.mxu1 %v6254_v20 }
 0x31a   :  { %v1169_v18 = vmul.f32 0.0078125, %v1168_v9  ;;  %3019 = vmatprep.subr.bf16.mxu0 %v6259_v7  ;;  %3183 = vmatprep.subr.bf16.mxu1 %v6262_v55 }
 0x31c   :  { %v1170_v19 = vadd.f32 1e-05, %v1169_v18 }
 0x31d   :  { %v1155_v22 = vpop.xlane.xlu1 %1154  ;;  %3020 = vmatpush1.bf16.msra.mxu0 %v6257_v14  ;;  %3184 = vmatpush1.bf16.msra.mxu1 %v6260_v8 }
 0x31e   :  { %6651 = vrsqrt.f32 %v1170_v19  ;;  %v1156_v10 = vmul.f32 0.0078125, %v1155_v22  ;;  %3021 = vmatprep.subr.bf16.mxu0 %v6265_v17  ;;  %3185 = vmatprep.subr.bf16.mxu1 %v6268_v32  ;;  %v6299_v32 = vld [vmem:[#allocation4 + $0x600] ss:$16 sps:$4 sm:$0xff]   ;;  %v6302_v19 = vld [vmem:[#allocation4 + $0x608] ss:$16 sps:$4 sm:$0xff]  }
 0x320   :  { %v1157_v28 = vadd.f32 1e-05, %v1156_v10  ;;  %v6305_v10 = vld [vmem:[#allocation4 + $0x620] ss:$16 sps:$4 sm:$0xff]  }
 0x321   :  { %3022 = vmatpush1.bf16.msra.mxu0 %v6263_v61  ;;  %3186 = vmatpush1.bf16.msra.mxu1 %v6266_v30  ;;  %v6307_v61 = vld [vmem:[#allocation4 + $0x624] ss:$16 sps:$4 sm:$0xff]   ;;  %v6310_v30 = vld [vmem:[#allocation4 + $0x62c] ss:$16 sps:$4 sm:$0xff]  }
 0x322   :  { %6653 = vrsqrt.f32 %v1157_v28  ;;  %3023 = vmatprep.subr.bf16.mxu0 %v6271_v26  ;;  %3187 = vmatprep.subr.bf16.mxu1 %v6274_v27  ;;  %v6308_v26 = vld [vmem:[#allocation4 + $0x628] ss:$16 sps:$4 sm:$0xff]   ;;  %v6313_v27 = vld [vmem:[#allocation4 + $0x644] ss:$16 sps:$4 sm:$0xff]   ;;  %v6316_v28 = vld [vmem:[#allocation4 + $0x64c] ss:$16 sps:$4 sm:$0xff]  }
 0x325   :  { %3024 = vmatpush1.bf16.msra.mxu0 %v6269_v29  ;;  %3188 = vmatpush1.bf16.msra.mxu1 %v6272_v21  ;;  %v6311_v29 = vld [vmem:[#allocation4 + $0x640] ss:$16 sps:$4 sm:$0xff]   ;;  %v6314_v21 = vld [vmem:[#allocation4 + $0x648] ss:$16 sps:$4 sm:$0xff]  }
 0x326   :  { %3025 = vmatprep.subr.bf16.mxu0 %v6277_v12  ;;  %3189 = vmatprep.subr.bf16.mxu1 %v6280_v15  ;;  %v6319_v12 = vld [vmem:[#allocation4 + $0x664] ss:$16 sps:$4 sm:$0xff]   ;;  %v6322_v15 = vld [vmem:[#allocation4 + $0x66c] ss:$16 sps:$4 sm:$0xff]  }
 0x328   :  { %v6652_v37 = vpop.eup %6651 }
 0x329   :  { %3026 = vmatpush1.bf16.msra.mxu0 %v6275_v31  ;;  %3190 = vmatpush1.bf16.msra.mxu1 %v6278_v33  ;;  %v1172_v40 = vmul.f32 %v6652_v37, %v7095_v43  ;;  %v1268_v43 = vrot.slane %v7113_v51, %v7037_v53  ;;  %v6328_v37 = vld [vmem:[#allocation4 + $0x68c] ss:$16 sps:$4 sm:$0xff]  }
 0x32a   :  { %3027 = vmatprep.subr.bf16.mxu0 %v6283_v34  ;;  %3191 = vmatprep.subr.bf16.mxu1 %v6286_v35  ;;  %v6317_v34 = vld [vmem:[#allocation4 + $0x660] ss:$16 sps:$4 sm:$0xff]   ;;  %v6320_v35 = vld [vmem:[#allocation4 + $0x668] ss:$16 sps:$4 sm:$0xff]  }
 0x32b   :  { %v1245_v44 = vmul.f32 %v1223_v36, %v1172_v40  ;;  %v6325_v36 = vld [vmem:[#allocation4 + $0x684] ss:$16 sps:$4 sm:$0xff]  }
 0x32c   :  { %v6654_v46 = vpop.eup %6653 }
 0x32d   :  { %v1159_v48 = vmul.f32 %v6654_v46, %v7100_v47  ;;  %3028 = vmatpush1.bf16.msra.mxu0 %v6281_v38  ;;  %3192 = vmatpush1.bf16.msra.mxu1 %v6284_v23  ;;  %v1294_v52 = vadd.f32 %v1272_v39, %v1245_v44  ;;  %v6323_v39 = vld [vmem:[#allocation4 + $0x680] ss:$16 sps:$4 sm:$0xff]   ;;  %v6334_v44 = vld [vmem:[#allocation4 + $0x6ac] ss:$16 sps:$4 sm:$0xff]  }
 0x32e   :  { %3029 = vmatprep.subr.bf16.mxu0 %v6289_v41  ;;  %3193 = vmatprep.subr.bf16.mxu1 %v6292_v42  ;;  %v6326_v41 = vld [vmem:[#allocation4 + $0x688] ss:$16 sps:$4 sm:$0xff]   ;;  %v6331_v42 = vld [vmem:[#allocation4 + $0x6a4] ss:$16 sps:$4 sm:$0xff]   ;;  %v6329_v46 = vld [vmem:[#allocation4 + $0x6a0] ss:$16 sps:$4 sm:$0xff]  }
 0x32f   :  { %v5462_v57 = vmul.f32 -1.442695, %v1294_v52  ;;  %v1244_v60 = vmul.f32 %v1219_v45, %v1159_v48  ;;  %v6332_v48 = vld [vmem:[#allocation4 + $0x6a8] ss:$16 sps:$4 sm:$0xff]  }
 0x331   :  { %3030 = vmatpush1.bf16.msra.mxu0 %v6287_v59  ;;  %3194 = vmatpush1.bf16.msra.mxu1 %v6290_v63  ;;  %6655 = vpow2.f32 %v5462_v57  ;;  %v1293_v47 = vadd.f32 %v1268_v43, %v1244_v60  ;;  %v6337_v59 = vld [vmem:[#allocation4 + $0x6c4] ss:$16 sps:$4 sm:$0xff]   ;;  %v6340_v63 = vld [vmem:[#allocation4 + $0x6cc] ss:$16 sps:$4 sm:$0xff]   ;;  %v6338_v43 = vld [vmem:[#allocation4 + $0x6c8] ss:$16 sps:$4 sm:$0xff]   ;;  %v1231_v57 = vrot.slane %v7106_v49, %v7064_v1 }
 0x332   :  { %3031 = vmatprep.subr.bf16.mxu0 %v6295_v54  ;;  %3195 = vmatprep.subr.bf16.mxu1 %v6298_v56  ;;  %v6343_v54 = vld [vmem:[#allocation4 + $0x6e4] ss:$16 sps:$4 sm:$0xff]   ;;  %v6346_v56 = vld [vmem:[#allocation4 + $0x6ec] ss:$16 sps:$4 sm:$0xff]  }
 0x333   :  { %v5461_v4 = vmul.f32 -1.442695, %v1293_v47 }
 0x335   :  { %3032 = vmatpush1.bf16.msra.mxu0 %v6293_v62  ;;  %3196 = vmatpush1.bf16.msra.mxu1 %v6296_v0  ;;  %6657 = vpow2.f32 %v5461_v4  ;;  %v1280_v0 = vrot.slane %v7113_v51, %v7064_v1  ;;  %v6352_v4 = vld [vmem:[#allocation4 + $0x70c] ss:$16 sps:$4 sm:$0xff]  }
 0x336   :  { %3042 = vmatprep.subr.bf16.mxu0 %v6301_v2  ;;  %3206 = vmatprep.subr.bf16.mxu1 %v6304_v3  ;;  %v6344_v2 = vld [vmem:[#allocation4 + $0x6e8] ss:$16 sps:$4 sm:$0xff]   ;;  %v6349_v3 = vld [vmem:[#allocation4 + $0x704] ss:$16 sps:$4 sm:$0xff]  }
 0x33b   :  { %v6656_v5 = vpop.eup %6655 }
 0x33c   :  { %v1326_v20 = vadd.f32 1.0, %v6656_v5 }
 0x33e   :  { %6659 = vrcp.f32 %v1326_v20  ;;  %v1227_v20 = vrot.slane %v7106_v49, %v7072_v16 }
 0x33f   :  { %v6658_v7 = vpop.eup %6657 }
 0x340   :  { %v1325_v55 = vadd.f32 1.0, %v6658_v7 }
 0x342   :  { %6661 = vrcp.f32 %v1325_v55 }
 0x348   :  { %v6660_v9 = vpop.eup %6659 }
 0x349   :  { %v1350_v14 = vmul.f32 %v6660_v9, %v1294_v52  ;;  %v6335_v52 = vld [vmem:[#allocation4 + $0x6c0] ss:$16 sps:$4 sm:$0xff]  }
 0x34b   :  { %v1358_v8 = vpack.c.bf16 %v1350_v14, %v1350_v14  ;;  %v6347_v14 = vld [vmem:[#allocation4 + $0x700] ss:$16 sps:$4 sm:$0xff]  }
 0x34c   :  { %v6662_v18 = vpop.eup %6661 }
 0x34d   :  { %3033 = vmatprep.mubr.bf16.mxu0 %v1358_v8  ;;  %3197 = vmatprep.mubr.bf16.mxu1 %v1358_v8  ;;  %v1349_v17 = vmul.f32 %v6662_v18, %v1293_v47  ;;  %v6341_v47 = vld [vmem:[#allocation4 + $0x6e0] ss:$16 sps:$4 sm:$0xff]   ;;  %v6350_v8 = vld [vmem:[#allocation4 + $0x708] ss:$16 sps:$4 sm:$0xff]   ;;  %v6355_v18 = vld [vmem:[#allocation4 + $0x724] ss:$16 sps:$4 sm:$0xff]  }
 0x34f   :  { %v1357_v22 = vpack.c.bf16 %v1349_v17, %v1349_v17  ;;  %v6358_v17 = vld [vmem:[#allocation4 + $0x72c] ss:$16 sps:$4 sm:$0xff]  }
 0x351   :  { %3034 = vmatmul.mubr.bf16.vlgmr.msra.gmra.mrb[0].mxu0 %v1357_v22  ;;  %3198 = vmatmul.mubr.bf16.vlgmr.msra.gmra.mrb[16].mxu1 %v1357_v22  ;;  %v6356_v22 = vld [vmem:[#allocation4 + $0x728] ss:$16 sps:$4 sm:$0xff]  }
 0x352   :  { %3043 = vmatpush1.bf16.msra.mxu0 %v6299_v32  ;;  %3207 = vmatpush1.bf16.msra.mxu1 %v6302_v19 }
 0x353   :  { %3044 = vmatprep.subr.bf16.mxu0 %v6307_v61  ;;  %3208 = vmatprep.subr.bf16.mxu1 %v6310_v30  ;;  %v6364_v61 = vld [vmem:[#allocation4 + $0x74c] ss:$16 sps:$4 sm:$0xff]  }
 0x356   :  { %3045 = vmatpush1.bf16.msra.mxu0 %v6305_v10  ;;  %3209 = vmatpush1.bf16.msra.mxu1 %v6308_v26  ;;  %v6359_v10 = vld [vmem:[#allocation4 + $0x740] ss:$16 sps:$4 sm:$0xff]   ;;  %v6362_v26 = vld [vmem:[#allocation4 + $0x748] ss:$16 sps:$4 sm:$0xff]  }
 0x357   :  { %3046 = vmatprep.subr.bf16.mxu0 %v6313_v27  ;;  %3210 = vmatprep.subr.bf16.mxu1 %v6316_v28  ;;  %v6367_v27 = vld [vmem:[#allocation4 + $0x764] ss:$16 sps:$4 sm:$0xff]   ;;  %v6370_v28 = vld [vmem:[#allocation4 + $0x76c] ss:$16 sps:$4 sm:$0xff]  }
 0x359   :  { %v1194_v31 = vpop.xlane.xlu0 %1193 }
 0x35a   :  { %v1195_v33 = vmul.f32 0.0078125, %v1194_v31  ;;  %3047 = vmatpush1.bf16.msra.mxu0 %v6311_v29  ;;  %3211 = vmatpush1.bf16.msra.mxu1 %v6314_v21  ;;  %v6365_v29 = vld [vmem:[#allocation4 + $0x760] ss:$16 sps:$4 sm:$0xff]   ;;  %v6368_v21 = vld [vmem:[#allocation4 + $0x768] ss:$16 sps:$4 sm:$0xff]  }
 0x35b   :  { %3048 = vmatprep.subr.bf16.mxu0 %v6319_v12  ;;  %3212 = vmatprep.subr.bf16.mxu1 %v6322_v15  ;;  %v6373_v15 = vld [vmem:[#allocation4 + $0x784] ss:$16 sps:$4 sm:$0xff]   ;;  %v6376_v31 = vld [vmem:[#allocation4 + $0x78c] ss:$16 sps:$4 sm:$0xff]  }
 0x35c   :  { %v1196_v38 = vadd.f32 1e-05, %v1195_v33 }
 0x35d   :  { %v1181_v23 = vpop.xlane.xlu1 %1180 }
 0x35e   :  { %6663 = vrsqrt.f32 %v1196_v38  ;;  %v1182_v40 = vmul.f32 0.0078125, %v1181_v23  ;;  %3049 = vmatpush1.bf16.msra.mxu0 %v6317_v34  ;;  %3213 = vmatpush1.bf16.msra.mxu1 %v6320_v35  ;;  %v6371_v34 = vld [vmem:[#allocation4 + $0x780] ss:$16 sps:$4 sm:$0xff]   ;;  %v6374_v35 = vld [vmem:[#allocation4 + $0x788] ss:$16 sps:$4 sm:$0xff]  }
 0x35f   :  { %3050 = vmatprep.subr.bf16.mxu0 %v6325_v36  ;;  %3214 = vmatprep.subr.bf16.mxu1 %v6328_v37  ;;  %v6379_v37 = vld [vmem:[#allocation4 + $0x7a4] ss:$16 sps:$4 sm:$0xff]   ;;  %v6382_v38 = vld [vmem:[#allocation4 + $0x7ac] ss:$16 sps:$4 sm:$0xff]  }
 0x360   :  { %v1183_v45 = vadd.f32 1e-05, %v1182_v40  ;;  %v6377_v40 = vld [vmem:[#allocation4 + $0x7a0] ss:$16 sps:$4 sm:$0xff]  }
 0x362   :  { %6665 = vrsqrt.f32 %v1183_v45  ;;  %3051 = vmatpush1.bf16.msra.mxu0 %v6323_v39  ;;  %3215 = vmatpush1.bf16.msra.mxu1 %v6326_v41  ;;  %v6380_v39 = vld [vmem:[#allocation4 + $0x7a8] ss:$16 sps:$4 sm:$0xff]   ;;  %v6385_v41 = vld [vmem:[#allocation4 + $0x7c4] ss:$16 sps:$4 sm:$0xff]  }
 0x363   :  { %3052 = vmatprep.subr.bf16.mxu0 %v6331_v42  ;;  %3216 = vmatprep.subr.bf16.mxu1 %v6334_v44  ;;  %v6388_v42 = vld [vmem:[#allocation4 + $0x7cc] ss:$16 sps:$4 sm:$0xff]   ;;  %v6383_v44 = vld [vmem:[#allocation4 + $0x7c0] ss:$16 sps:$4 sm:$0xff]   ;;  %v6386_v45 = vld [vmem:[#allocation4 + $0x7c8] ss:$16 sps:$4 sm:$0xff]  }
 0x366   :  { %3053 = vmatpush1.bf16.msra.mxu0 %v6329_v46  ;;  %3217 = vmatpush1.bf16.msra.mxu1 %v6332_v48  ;;  %v6391_v46 = vld [vmem:[#allocation4 + $0x7e4] ss:$16 sps:$4 sm:$0xff]   ;;  %v6394_v48 = vld [vmem:[#allocation4 + $0x7ec] ss:$16 sps:$4 sm:$0xff]  }
 0x367   :  { %3054 = vmatprep.subr.bf16.mxu0 %v6337_v59  ;;  %3218 = vmatprep.subr.bf16.mxu1 %v6340_v63 }
 0x368   :  { %v6664_v60 = vpop.eup %6663 }
 0x369   :  { %v1198_v62 = vmul.f32 %v6664_v60, %v7127_v58  ;;  %v1276_v58 = vrot.slane %v7113_v51, %v7072_v16  ;;  %v6361_v51 = vld [vmem:[#allocation4 + $0x744] ss:$16 sps:$4 sm:$0xff]  }
 0x36a   :  { %3055 = vmatpush1.bf16.msra.mxu0 %v6335_v52  ;;  %3219 = vmatpush1.bf16.msra.mxu1 %v6338_v43  ;;  %v6389_v52 = vld [vmem:[#allocation4 + $0x7e0] ss:$16 sps:$4 sm:$0xff]   ;;  %v6392_v43 = vld [vmem:[#allocation4 + $0x7e8] ss:$16 sps:$4 sm:$0xff]  }
 0x36b   :  { %3056 = vmatprep.subr.bf16.mxu0 %v6343_v54  ;;  %3220 = vmatprep.subr.bf16.mxu1 %v6346_v56  ;;  %v1247_v5 = vmul.f32 %v1231_v57, %v1198_v62  ;;  %v1617_v62 = vld [vmem:[%s7568_s7] sm:$0xf] }
 0x36c   :  { %v6666_v7 = vpop.eup %6665 }
 0x36d   :  { %v1185_v55 = vmul.f32 %v6666_v7, %v7132_v6  ;;  %v7174_v9 = vadd.f32 %v1280_v0, %v1247_v5  ;;  %v6353_v6 = vld [vmem:[#allocation4 + $0x720] ss:$16 sps:$4 sm:$0xff]   ;;  %v1622_v0 = vrot.slane %v1617_v62, %v7007_v13 }
 0x36e   :  { %3057 = vmatpush1.bf16.msra.mxu0 %v6341_v47  ;;  %3221 = vmatpush1.bf16.msra.mxu1 %v6344_v2  ;;  %v1626_v47 = vrot.slane %v1617_v62, %v6999_v11 }
 0x36f   :  { %3058 = vmatprep.subr.bf16.mxu0 %v6349_v3  ;;  %3222 = vmatprep.subr.bf16.mxu1 %v6352_v4  ;;  %v5464_v32 = vmul.f32 -1.442695, %v7174_v9  ;;  %v1246_v19 = vmul.f32 %v1227_v20, %v1185_v55  ;;  %v1634_v20 = vrot.slane %v1617_v62, %v7016_v24 }
 0x371   :  { %6667 = vpow2.f32 %v5464_v32  ;;  %v7179_v49 = vadd.f32 %v1276_v58, %v1246_v19 }
 0x372   :  { %3059 = vmatpush1.bf16.msra.mxu0 %v6347_v14  ;;  %3223 = vmatpush1.bf16.msra.mxu1 %v6350_v8 }
 0x373   :  { %3060 = vmatprep.subr.bf16.mxu0 %v6355_v18  ;;  %3224 = vmatprep.subr.bf16.mxu1 %v6358_v17  ;;  %v5463_v30 = vmul.f32 -1.442695, %v7179_v49  ;;  %v1630_v18 = vrot.slane %v1617_v62, %v7019_v25 }
 0x375   :  { %6669 = vpow2.f32 %v5463_v30 }
 0x376   :  { %3061 = vmatpush1.bf16.msra.mxu0 %v6353_v6  ;;  %3225 = vmatpush1.bf16.msra.mxu1 %v6356_v22 }
 0x377   :  { %3062 = vmatprep.subr.bf16.mxu0 %v6361_v51  ;;  %3226 = vmatprep.subr.bf16.mxu1 %v6364_v61 }
 0x37a   :  { %3063 = vmatpush1.bf16.msra.mxu0 %v6359_v10  ;;  %3227 = vmatpush1.bf16.msra.mxu1 %v6362_v26 }
 0x37b   :  { %v6668_v12 = vpop.eup %6667  ;;  %3064 = vmatprep.subr.bf16.mxu0 %v6367_v27  ;;  %3228 = vmatprep.subr.bf16.mxu1 %v6370_v28 }
 0x37c   :  { %v1328_v33 = vadd.f32 1.0, %v6668_v12 }
 0x37e   :  { %3065 = vmatpush1.bf16.msra.mxu0 %v6365_v29  ;;  %3229 = vmatpush1.bf16.msra.mxu1 %v6368_v21  ;;  %6671 = vrcp.f32 %v1328_v33 }
 0x37f   :  { %v6670_v36 = vpop.eup %6669  ;;  %3066 = vmatprep.subr.bf16.mxu0 %v6373_v15  ;;  %3230 = vmatprep.subr.bf16.mxu1 %v6376_v31 }
 0x380   :  { %v1327_v23 = vadd.f32 1.0, %v6670_v36 }
 0x382   :  { %3067 = vmatpush1.bf16.msra.mxu0 %v6371_v34  ;;  %3231 = vmatpush1.bf16.msra.mxu1 %v6374_v35  ;;  %6673 = vrcp.f32 %v1327_v23 }
 0x383   :  { %3068 = vmatprep.subr.bf16.mxu0 %v6379_v37  ;;  %3232 = vmatprep.subr.bf16.mxu1 %v6382_v38 }
 0x386   :  { %3069 = vmatpush1.bf16.msra.mxu0 %v6377_v40  ;;  %3233 = vmatpush1.bf16.msra.mxu1 %v6380_v39 }
 0x387   :  { %3070 = vmatprep.subr.bf16.mxu0 %v6385_v41  ;;  %3234 = vmatprep.subr.bf16.mxu1 %v6388_v42 }
 0x388   :  { %v6672_v59 = vpop.eup %6671 }
 0x389   :  { %v1352_v63 = vmul.f32 %v6672_v59, %v7174_v9 }
 0x38a   :  { %3071 = vmatpush1.bf16.msra.mxu0 %v6383_v44  ;;  %3235 = vmatpush1.bf16.msra.mxu1 %v6386_v45 }
 0x38b   :  { %3072 = vmatprep.subr.bf16.mxu0 %v6391_v46  ;;  %v1360_v54 = vpack.c.bf16 %v1352_v63, %v1352_v63  ;;  %3236 = vmatprep.subr.bf16.mxu1 %v6394_v48 }
 0x38c   :  { %v6674_v56 = vpop.eup %6673 }
 0x38d   :  { %3074 = vmatprep.mubr.bf16.mxu0 %v1360_v54  ;;  %3238 = vmatprep.mubr.bf16.mxu1 %v1360_v54  ;;  %v1351_v57 = vmul.f32 %v6674_v56, %v7179_v49 }
 0x38e   :  { %3073 = vmatpush1.bf16.msra.mxu0 %v6389_v52  ;;  %3237 = vmatpush1.bf16.msra.mxu1 %v6392_v43 }
 0x38f   :  { %v1359_v60 = vpack.c.bf16 %v1351_v57, %v1351_v57 }
 0x391   :  { %3075 = vmatmul.mubr.bf16.vlgmr.msra.gmra.mrb[0].mxu0 %v1359_v60  ;;  %3239 = vmatmul.mubr.bf16.vlgmr.msra.gmra.mrb[16].mxu1 %v1359_v60 }
 0x464   :  { %v3076_v2 = vpop.f32.mrb[0].mxu0  ;;  %v3240_v3 = vpop.f32.mrb[16].mxu1 }
 0x465   :  { %v7189_v4 = vadd.f32 %v3076_v2, %v1622_v0  ;;  %v3078_v5 = vpop.f32.mrb[1].mxu0  ;;  %v3242_v7 = vpop.f32.mrb[17].mxu1  ;;  %v7197_v32 = vadd.f32 %v3240_v3, %v1630_v18 }
 0x466   :  { %v5958_v55 = vadd.f32 %v3078_v5, %v1626_v47  ;;  %v3080_v9 = vpop.f32.mrb[2].mxu0  ;;  %v3244_v58 = vpop.f32.mrb[18].mxu1  ;;  %v5960_v17 = vadd.f32 %v3242_v7, %v1634_v20 }
 0x467   :  { %v3081_v14 = vpop.f32.mrb[3].mxu0  ;;  %v3245_v8 = vpop.f32.mrb[19].mxu1  ;;  %3265 = vrot.lane.b32.xlu1 %v7189_v4, %s6836_s2  ;;  %v3250_v61 = vsel %vm3249_vm1, %v7189_v4, 0.0  ;;  %v3319_v26 = vsel %vm3249_vm1, %v7197_v32, 0.0 }
 0x468   :  { %3299 = vrot.lane.b32.xlu0 %v5958_v55, %s6836_s2  ;;  %v3285_v28 = vsel %vm3249_vm1, %v5958_v55, 0.0  ;;  %v3353_v29 = vsel %vm3249_vm1, %v5960_v17, 0.0 }
 0x46b   :  { %3367 = vrot.lane.b32.xlu1 %v5960_v17, %s6836_s2 }
 0x46f   :  { %3333 = vrot.lane.b32.xlu1 %v7197_v32, %s6836_s2 }
 0x4d9   :  { %v3266_v19 = vpop.permute.xlu1 %3265 }
 0x4da   :  { %v3300_v49 = vpop.permute.xlu0 %3299  ;;  %v3268_v6 = vsel %vm3249_vm1, %v3266_v19, 0.0  ;;  %v6395_v19 = vld [vmem:[%s7571_s10 + $0x40] sm:$0xff]  }
 0x4db   :  { %3269 = vadd.xlane.f32.xlu1 %v3268_v6  ;;  %v3302_v22 = vsel %vm3249_vm1, %v3300_v49, 0.0  ;;  %v6396_v49 = vld [vmem:[%s7571_s10] sm:$0xff]   ;;  %5913 = vmatprep.subr.bf16.mxu0 %v6395_v19  ;;  %v6397_v6 = vld [vmem:[%s7571_s10 + $0x48] sm:$0xff]  }
 0x4dc   :  { %3303 = vadd.xlane.f32.xlu0 %v3302_v22  ;;  %5914 = vmatpush3.bf16.msra.mxu0 %v6396_v49  ;;  %v6398_v22 = vld [vmem:[%s7571_s10 + $0x8] sm:$0xff]  }
 0x4dd   :  { %v3368_v51 = vpop.permute.xlu1 %3367  ;;  %5915 = vmatprep.subr.bf16.mxu0 %v6397_v6 }
 0x4de   :  { %v3370_v30 = vsel %vm3249_vm1, %v3368_v51, 0.0  ;;  %v6399_v51 = vld [vmem:[%s7571_s10 + $0xc0] sm:$0xff]  }
 0x4df   :  { %3251 = vadd.xlane.f32.xlu1 %v3250_v61  ;;  %v6400_v61 = vld [vmem:[%s7571_s10 + $0x50] sm:$0xff]   ;;  %5935 = vmatprep.subr.bf16.mxu1 %v6399_v51 }
 0x4e0   :  { %3371 = vadd.xlane.f32.xlu0 %v3370_v30  ;;  %v6401_v30 = vld [vmem:[%s7571_s10 + $0x80] sm:$0xff]   ;;  %5916 = vmatpush3.bf16.msra.mxu0 %v6398_v22 }
 0x4e1   :  { %v3334_v10 = vpop.permute.xlu1 %3333  ;;  %5936 = vmatpush3.bf16.msra.mxu1 %v6401_v30  ;;  %5917 = vmatprep.subr.bf16.mxu0 %v6400_v61 }
 0x4e2   :  { %v3336_v27 = vsel %vm3249_vm1, %v3334_v10, 0.0  ;;  %v6403_v10 = vld [vmem:[%s7571_s10 + $0xc8] sm:$0xff]  }
 0x4e3   :  { %3320 = vadd.xlane.f32.xlu1 %v3319_v26  ;;  %v6402_v26 = vld [vmem:[%s7571_s10 + $0x10] sm:$0xff]   ;;  %5937 = vmatprep.subr.bf16.mxu1 %v6403_v10 }
 0x4e4   :  { %3337 = vadd.xlane.f32.xlu0 %v3336_v27  ;;  %v6405_v27 = vld [vmem:[%s7571_s10 + $0x88] sm:$0xff]   ;;  %5918 = vmatpush3.bf16.msra.mxu0 %v6402_v26  ;;  %v3247_v26 = vld [vmem:[%s7569_s8] sm:$0xf] }
 0x4e5   :  { %5938 = vmatpush3.bf16.msra.mxu1 %v6405_v27 }
 0x4e8   :  { %3286 = vadd.xlane.f32.xlu0 %v3285_v28  ;;  %v6404_v28 = vld [vmem:[%s7571_s10 + $0x58] sm:$0xff]  }
 0x4e9   :  { %5919 = vmatprep.subr.bf16.mxu0 %v6404_v28 }
 0x4ec   :  { %3354 = vadd.xlane.f32.xlu0 %v3353_v29  ;;  %v6407_v29 = vld [vmem:[%s7571_s10 + $0xd0] sm:$0xff]  }
 0x4ed   :  { %5939 = vmatprep.subr.bf16.mxu1 %v6407_v29  ;;  %v3248_v29 = vld [vmem:[%s7570_s9] sm:$0xf] }
 0x568   :  { %v3270_v21 = vpop.xlane.xlu1 %3269 }
 0x569   :  { %v3271_v12 = vmul.f32 0.015625, %v3270_v21  ;;  %v3304_v15 = vpop.xlane.xlu0 %3303  ;;  %v6406_v21 = vld [vmem:[%s7571_s10 + $0x18] sm:$0xff]  }
 0x56a   :  { %v3305_v31 = vmul.f32 0.015625, %v3304_v15  ;;  %v6408_v15 = vld [vmem:[%s7571_s10 + $0x60] sm:$0xff]   ;;  %5920 = vmatpush3.bf16.msra.mxu0 %v6406_v21 }
 0x56b   :  { %v7212_v33 = vsub.f32 %v7189_v4, %v3271_v12  ;;  %v6409_v12 = vld [vmem:[%s7571_s10 + $0x90] sm:$0xff]   ;;  %5921 = vmatprep.subr.bf16.mxu0 %v6408_v15 }
 0x56c   :  { %v7214_v34 = vsub.f32 %v5958_v55, %v3305_v31  ;;  %v3252_v48 = vpop.xlane.xlu1 %3251  ;;  %v6411_v31 = vld [vmem:[%s7571_s10 + $0xd8] sm:$0xff]   ;;  %5940 = vmatpush3.bf16.msra.mxu1 %v6409_v12  ;;  %v3396_v12 = vrot.slane %v3247_v26, %v7007_v13 }
 0x56d   :  { %v3372_v35 = vpop.xlane.xlu0 %3371  ;;  %v3273_v36 = vmul.f32 %v7212_v33, %v7212_v33  ;;  %v3254_v59 = vmul.f32 0.015625, %v3252_v48  ;;  %5941 = vmatprep.subr.bf16.mxu1 %v6411_v31  ;;  %v6420_v48 = vld [vmem:[%s7571_s10 + $0x78] sm:$0xff]  }
 0x56e   :  { %v3373_v37 = vmul.f32 0.015625, %v3372_v35  ;;  %v3307_v38 = vmul.f32 %v7214_v34, %v7214_v34  ;;  %v6410_v35 = vld [vmem:[%s7571_s10 + $0x20] sm:$0xff]  }
 0x56f   :  { %3275 = vrot.lane.b32.xlu1 %v3273_v36, %s6836_s2  ;;  %v7236_v43 = vsub.f32 %v7189_v4, %v3254_v59  ;;  %v6413_v36 = vld [vmem:[%s7571_s10 + $0x98] sm:$0xff]   ;;  %5922 = vmatpush3.bf16.msra.mxu0 %v6410_v35 }
 0x570   :  { %v7221_v23 = vsub.f32 %v5960_v17, %v3373_v37  ;;  %3309 = vrot.lane.b32.xlu0 %v3307_v38, %s6836_s2  ;;  %v3321_v3 = vpop.xlane.xlu1 %3320  ;;  %v6412_v37 = vld [vmem:[%s7571_s10 + $0x68] sm:$0xff]   ;;  %v6415_v38 = vld [vmem:[%s7571_s10 + $0xe0] sm:$0xff]   ;;  %5942 = vmatpush3.bf16.msra.mxu1 %v6413_v36  ;;  %v6422_v59 = vld [vmem:[%s7571_s10 + $0x38] sm:$0xff]   ;;  %v3400_v36 = vrot.slane %v3247_v26, %v6999_v11 }
 0x571   :  { %v3338_v40 = vpop.xlane.xlu0 %3337  ;;  %v3256_v62 = vmul.f32 %v7236_v43, %v7236_v43  ;;  %v3322_v4 = vmul.f32 0.015625, %v3321_v3  ;;  %5923 = vmatprep.subr.bf16.mxu0 %v6412_v37  ;;  %5943 = vmatprep.subr.bf16.mxu1 %v6415_v38 }
 0x572   :  { %v3339_v39 = vmul.f32 0.015625, %v3338_v40  ;;  %v3375_v41 = vmul.f32 %v7221_v23, %v7221_v23  ;;  %v6414_v40 = vld [vmem:[%s7571_s10 + $0x28] sm:$0xff]  }
 0x573   :  { %v3257_v0 = vsel %vm3249_vm1, %v3256_v62, 0.0  ;;  %v7250_v5 = vsub.f32 %v7197_v32, %v3322_v4  ;;  %5924 = vmatpush3.bf16.msra.mxu0 %v6414_v40  ;;  %v3421_v40 = vrot.slane %v3248_v29, %v7007_v13 }
 0x574   :  { %v7227_v42 = vsub.f32 %v7197_v32, %v3339_v39  ;;  %3377 = vrot.lane.b32.xlu1 %v3375_v41, %s6836_s2  ;;  %v6417_v39 = vld [vmem:[%s7571_s10 + $0xa0] sm:$0xff]   ;;  %v6416_v41 = vld [vmem:[%s7571_s10 + $0x70] sm:$0xff]  }
 0x575   :  { %v3287_v45 = vpop.xlane.xlu0 %3286  ;;  %v3324_v9 = vmul.f32 %v7250_v5, %v7250_v5  ;;  %5944 = vmatpush3.bf16.msra.mxu1 %v6417_v39  ;;  %5925 = vmatprep.subr.bf16.mxu0 %v6416_v41  ;;  %v3425_v41 = vrot.slane %v3248_v29, %v6999_v11 }
 0x576   :  { %v3341_v44 = vmul.f32 %v7227_v42, %v7227_v42  ;;  %v3288_v46 = vmul.f32 0.015625, %v3287_v45  ;;  %v6418_v45 = vld [vmem:[%s7571_s10 + $0x30] sm:$0xff]  }
 0x577   :  { %v3325_v8 = vsel %vm3249_vm1, %v3324_v9, 0.0  ;;  %5926 = vmatpush3.bf16.msra.mxu0 %v6418_v45 }
 0x578   :  { %3343 = vrot.lane.b32.xlu1 %v3341_v44, %s6836_s2  ;;  %v7233_v63 = vsub.f32 %v5958_v55, %v3288_v46  ;;  %v6419_v44 = vld [vmem:[%s7571_s10 + $0xe8] sm:$0xff]   ;;  %5927 = vmatprep.subr.bf16.mxu0 %v6420_v48 }
 0x579   :  { %v3355_v52 = vpop.xlane.xlu0 %3354  ;;  %v6421_v46 = vld [vmem:[%s7571_s10 + $0xa8] sm:$0xff]   ;;  %5945 = vmatprep.subr.bf16.mxu1 %v6419_v44 }
 0x57a   :  { %v3356_v54 = vmul.f32 0.015625, %v3355_v52  ;;  %v3290_v56 = vmul.f32 %v7233_v63, %v7233_v63  ;;  %5946 = vmatpush3.bf16.msra.mxu1 %v6421_v46  ;;  %v6423_v52 = vld [vmem:[%s7571_s10 + $0xf0] sm:$0xff]  }
 0x57b   :  { %5928 = vmatpush3.bf16.msra.mxu0 %v6422_v59  ;;  %5947 = vmatprep.subr.bf16.mxu1 %v6423_v52 }
 0x57c   :  { %v7240_v57 = vsub.f32 %v5960_v17, %v3356_v54  ;;  %v3291_v60 = vsel %vm3249_vm1, %v3290_v56, 0.0  ;;  %v6424_v54 = vld [vmem:[%s7571_s10 + $0xb0] sm:$0xff]   ;;  %v6425_v56 = vld [vmem:[%s7571_s10 + $0xf8] sm:$0xff]  }
 0x57e   :  { %v3358_v47 = vmul.f32 %v7240_v57, %v7240_v57  ;;  %5948 = vmatpush3.bf16.msra.mxu1 %v6424_v54 }
 0x57f   :  { %5949 = vmatprep.subr.bf16.mxu1 %v6425_v56  ;;  %v3433_v56 = vrot.slane %v3248_v29, %v7016_v24 }
 0x580   :  { %v3359_v2 = vsel %vm3249_vm1, %v3358_v47, 0.0 }
 0x58f   :  { %3292 = vadd.xlane.f32.xlu0 %v3291_v60  ;;  %v6426_v60 = vld [vmem:[%s7571_s10 + $0xb8] sm:$0xff]   ;;  %s7591_s10 = sld [smem:[#allocation13_spill]] }
 0x590   :  { %5950 = vmatpush3.bf16.msra.mxu1 %v6426_v60 }
 0x593   :  { %3258 = vadd.xlane.f32.xlu0 %v3257_v0 }
 0x597   :  { %3360 = vadd.xlane.f32.xlu0 %v3359_v2 }
 0x5e1   :  { %v3276_v20 = vpop.permute.xlu1 %3275 }
 0x5e2   :  { %v3310_v7 = vpop.permute.xlu0 %3309  ;;  %v3278_v55 = vsel %vm3249_vm1, %v3276_v20, 0.0 }
 0x5e3   :  { %3279 = vadd.xlane.f32.xlu0 %v3278_v55  ;;  %v3312_v58 = vsel %vm3249_vm1, %v3310_v7, 0.0 }
 0x5e4   :  { %3313 = vadd.xlane.f32.xlu1 %v3312_v58 }
 0x5e6   :  { %v3378_v14 = vpop.permute.xlu1 %3377 }
 0x5e7   :  { %3326 = vadd.xlane.f32.xlu0 %v3325_v8  ;;  %v3380_v18 = vsel %vm3249_vm1, %v3378_v14, 0.0 }
 0x5e8   :  { %3381 = vadd.xlane.f32.xlu1 %v3380_v18 }
 0x5ea   :  { %v3344_v17 = vpop.permute.xlu1 %3343 }
 0x5eb   :  { %v3346_v32 = vsel %vm3249_vm1, %v3344_v17, 0.0 }
 0x5ec   :  { %3347 = vadd.xlane.f32.xlu1 %v3346_v32 }
 0x61c   :  { %v3293_v62 = vpop.xlane.xlu0 %3292 }
 0x61d   :  { %v3294_v2 = vmul.f32 0.015625, %v3293_v62 }
 0x61f   :  { %v3295_v20 = vadd.f32 1e-05, %v3294_v2 }
 0x620   :  { %v3259_v0 = vpop.xlane.xlu0 %3258 }
 0x621   :  { %v3260_v47 = vmul.f32 0.015625, %v3259_v0 }
 0x623   :  { %v3261_v4 = vadd.f32 1e-05, %v3260_v47 }
 0x624   :  { %v3361_v3 = vpop.xlane.xlu0 %3360 }
 0x625   :  { %v3362_v7 = vmul.f32 0.015625, %v3361_v3  ;;  %6675 = vrsqrt.f32 %v3261_v4  ;;  %v3404_v3 = vrot.slane %v3247_v26, %v7019_v25 }
 0x626   :  { %6677 = vrsqrt.f32 %v3295_v20 }
 0x627   :  { %v3363_v18 = vadd.f32 1e-05, %v3362_v7 }
 0x62f   :  { %v6676_v27 = vpop.eup %6675 }
 0x630   :  { %v6678_v28 = vpop.eup %6677  ;;  %v3263_v31 = vmul.f32 %v6676_v27, %v7236_v43 }
 0x631   :  { %v3297_v37 = vmul.f32 %v6678_v28, %v7233_v63 }
 0x670   :  { %v3280_v55 = vpop.xlane.xlu0 %3279 }
 0x671   :  { %v3281_v9 = vmul.f32 0.015625, %v3280_v55  ;;  %v3314_v58 = vpop.xlane.xlu1 %3313 }
 0x672   :  { %v3315_v14 = vmul.f32 0.015625, %v3314_v58 }
 0x673   :  { %v3282_v8 = vadd.f32 1e-05, %v3281_v9 }
 0x674   :  { %v3316_v17 = vadd.f32 1e-05, %v3315_v14  ;;  %v3327_v32 = vpop.xlane.xlu0 %3326 }
 0x675   :  { %6679 = vrsqrt.f32 %v3282_v8  ;;  %v3328_v19 = vmul.f32 0.015625, %v3327_v32  ;;  %v3382_v49 = vpop.xlane.xlu1 %3381 }
 0x676   :  { %6681 = vrsqrt.f32 %v3316_v17  ;;  %v3383_v6 = vmul.f32 0.015625, %v3382_v49 }
 0x677   :  { %6683 = vrsqrt.f32 %v3363_v18  ;;  %v3329_v22 = vadd.f32 1e-05, %v3328_v19 }
 0x678   :  { %v3384_v51 = vadd.f32 1e-05, %v3383_v6 }
 0x679   :  { %v3348_v61 = vpop.xlane.xlu1 %3347 }
 0x67a   :  { %6685 = vrsqrt.f32 %v3384_v51  ;;  %v3349_v30 = vmul.f32 0.015625, %v3348_v61 }
 0x67b   :  { %6687 = vrsqrt.f32 %v3329_v22 }
 0x67c   :  { %v3350_v10 = vadd.f32 1e-05, %v3349_v30 }
 0x67e   :  { %6689 = vrsqrt.f32 %v3350_v10 }
 0x67f   :  { %v6680_v21 = vpop.eup %6679 }
 0x680   :  { %v6682_v15 = vpop.eup %6681  ;;  %v3284_v35 = vmul.f32 %v6680_v21, %v7212_v33  ;;  %v3408_v33 = vrot.slane %v3247_v26, %v7016_v24 }
 0x681   :  { %v3318_v38 = vmul.f32 %v6682_v15, %v7214_v34  ;;  %v6684_v39 = vpop.eup %6683  ;;  %v3832_v15 = vld [vmem:[%s7573_s12] sm:$0xff] }
 0x682   :  { %v3388_v44 = vsel %vm3387_vm2, %v3263_v31, %v3284_v35  ;;  %v3365_v59 = vmul.f32 %v6684_v39, %v7240_v57  ;;  %v3429_v57 = vrot.slane %v3248_v29, %v7019_v25  ;;  %v5761_v31 = vcombine.high %v3832_v15, %v3832_v15  ;;  %v5725_v39 = vld [vmem:[%s7572_s11] ss:$0 sm:$0xff] }
 0x683   :  { %v3389_v45 = vsel %vm3387_vm2, %v3297_v37, %v3318_v38  ;;  %v3413_v46 = vmul.f32 %v3396_v12, %v3388_v44 }
 0x684   :  { %v6686_v48 = vpop.eup %6685  ;;  %v3414_v43 = vmul.f32 %v3400_v36, %v3389_v45  ;;  %5768 = vmatprep.subr.msk.bf16.mxu0 %vm3902_vm3, %v5761_v31 }
 0x685   :  { %v3386_v63 = vmul.f32 %v6686_v48, %v7221_v23  ;;  %v3438_v52 = vadd.f32 %v3421_v40, %v3413_v46  ;;  %v6688_v34 = vpop.eup %6687 }
 0x686   :  { %v3439_v54 = vadd.f32 %v3425_v41, %v3414_v43  ;;  %v3331_v4 = vmul.f32 %v6688_v34, %v7250_v5 }
 0x687   :  { %v5721_v60 = vmul.f32 -1.442695, %v3438_v52  ;;  %v3391_v62 = vsel %vm3387_vm2, %v3365_v59, %v3386_v63 }
 0x688   :  { %v6690_v0 = vpop.eup %6689  ;;  %v5722_v47 = vmul.f32 -1.442695, %v3439_v54  ;;  %v3416_v2 = vmul.f32 %v3408_v33, %v3391_v62 }
 0x689   :  { %v3352_v20 = vmul.f32 %v6690_v0, %v7227_v42  ;;  %6691 = vpow2.f32 %v5721_v60 }
 0x68a   :  { %6693 = vpow2.f32 %v5722_v47  ;;  %v3441_v23 = vadd.f32 %v3433_v56, %v3416_v2  ;;  %v5760_v56 = vcombine.low %v3832_v15, %v3832_v15  ;;  %v6837_v2 = vmov 0  }
 0x68b   :  { %v3390_v7 = vsel %vm3387_vm2, %v3331_v4, %v3352_v20  ;;  %v3835_v4 = vld [vmem:[%s7573_s12 + $0x18] sm:$0xff] }
 0x68c   :  { %v5724_v55 = vmul.f32 -1.442695, %v3441_v23  ;;  %v3415_v9 = vmul.f32 %v3404_v3, %v3390_v7  ;;  %v3904_v0 = vsel %vm3902_vm3, %v5760_v56, 0  ;;  %v3834_v3 = vld [vmem:[%s7573_s12 + $0x10] sm:$0xff]  ;;  %v3819_v7 = vld [vmem:[%s7590_s20] sm:$0x3] }
 0x68d   :  { %v5765_v20 = vcombine.high %v3834_v3, %v3834_v3  ;;  %v6438_v56 = vld [vmem:[#allocation6 + $0x10] ss:$8 sps:$4 sm:$0xff]  }
 0x68e   :  { %6695 = vpow2.f32 %v5724_v55  ;;  %v3440_v58 = vadd.f32 %v3429_v57, %v3415_v9 }
 0x690   :  { %v5723_v14 = vmul.f32 -1.442695, %v3440_v58 }
 0x692   :  { %6697 = vpow2.f32 %v5723_v14  ;;  %v5764_v14 = vcombine.low %v3834_v3, %v3834_v3 }
 0x693   :  { %v6692_v8 = vpop.eup %6691 }
 0x694   :  { %v6694_v18 = vpop.eup %6693  ;;  %v3454_v17 = vadd.f32 1.0, %v6692_v8  ;;  %v5766_v8 = vcombine.low %v3835_v4, %v3835_v4 }
 0x695   :  { %v3455_v32 = vadd.f32 1.0, %v6694_v18 }
 0x696   :  { %6699 = vrcp.f32 %v3454_v17 }
 0x697   :  { %6701 = vrcp.f32 %v3455_v32  ;;  %v3916_v32 = vsel %vm3902_vm3, %v5764_v14, 0 }
 0x698   :  { %v6696_v42 = vpop.eup %6695 }
 0x699   :  { %v3457_v5 = vadd.f32 1.0, %v6696_v42  ;;  %v3922_v42 = vsel %vm3902_vm3, %v5766_v8, 0 }
 0x69b   :  { %6703 = vrcp.f32 %v3457_v5  ;;  %v7418_v5 = vld [vmem:[%s7574_s13] sm:$0xff] }
 0x69c   :  { %v6698_v19 = vpop.eup %6697  ;;  %v3861_v15 = vrot.slane %v7418_v5, %v7034_v50  ;;  %v3849_v31 = vrot.slane %v7418_v5, %v7019_v25 }
 0x69d   :  { %v3456_v49 = vadd.f32 1.0, %v6698_v19  ;;  %v3845_v19 = vrot.slane %v7418_v5, %v6999_v11 }
 0x69f   :  { %6705 = vrcp.f32 %v3456_v49  ;;  %v3841_v49 = vrot.slane %v7418_v5, %v7007_v13 }
 0x6a0   :  { %v6700_v6 = vpop.eup %6699 }
 0x6a1   :  { %v6702_v22 = vpop.eup %6701  ;;  %v3466_v51 = vmul.f32 %v6700_v6, %v3438_v52 }
 0x6a2   :  { %v3467_v61 = vmul.f32 %v6702_v22, %v3439_v54  ;;  %v3833_v54 = vld [vmem:[%s7573_s12 + $0x8] sm:$0xff] }
 0x6a3   :  { %v3470_v26 = vpack.c.bf16 %v3466_v51, %v3466_v51  ;;  %v5763_v60 = vcombine.high %v3833_v54, %v3833_v54  ;;  %v5762_v62 = vcombine.low %v3833_v54, %v3833_v54  ;;  %v6440_v54 = vld [vmem:[#allocation6 + $0x14] ss:$8 sps:$4 sm:$0xff]  }
 0x6a4   :  { %v3471_v30 = vpack.c.bf16 %v3467_v61, %v3467_v61 }
 0x6a5   :  { %v6704_v10 = vpop.eup %6703  ;;  %5770 = vmatprep.subr.msk.bf16.mxu1 %vm3902_vm3, %v5763_v60  ;;  %v3910_v47 = vsel %vm3902_vm3, %v5762_v62, 0  ;;  %v6443_v60 = vld [vmem:[#allocation6 + $0x24] ss:$8 sps:$4 sm:$0xff]   ;;  %v6441_v62 = vld [vmem:[#allocation6 + $0x20] ss:$8 sps:$4 sm:$0xff]  }
 0x6a6   :  { %3769 = vmatprep.mubr.bf16.mxu0 %v3471_v30  ;;  %v3469_v27 = vmul.f32 %v6704_v10, %v3441_v23  ;;  %v5767_v23 = vcombine.high %v3835_v4, %v3835_v4 }
 0x6a7   :  { %3770 = vmatmul.mubr.bf16.vlgmr.msra.gmra.mrb[4].mxu0 %v3470_v26 }
 0x6a8   :  { %v3473_v28 = vpack.c.bf16 %v3469_v27, %v3469_v27  ;;  %3928 = vmatpush1.bf16.msra.mxu0 %v3904_v0  ;;  %3959 = vmatprep.mubr.bf16.mxu0 %v6837_v2 }
 0x6a9   :  { %v6706_v29 = vpop.eup %6705  ;;  %5772 = vmatprep.subr.msk.bf16.mxu0 %vm3902_vm3, %v5765_v20 }
 0x6aa   :  { %3809 = vmatprep.mubr.bf16.mxu1 %v3473_v28  ;;  %v3468_v21 = vmul.f32 %v6706_v29, %v3440_v58 }
 0x6ac   :  { %v3472_v12 = vpack.c.bf16 %v3468_v21, %v3468_v21  ;;  %v3853_v21 = vrot.slane %v7418_v5, %v7016_v24 }
 0x6ae   :  { %3810 = vmatmul.mubr.bf16.vlgmr.msra.gmra.mrb[20].mxu1 %v3472_v12 }
 0x6af   :  { %3969 = vmatpush1.bf16.msra.mxu1 %v3910_v47  ;;  %4000 = vmatprep.mubr.bf16.mxu1 %v6837_v2 }
 0x6b0   :  { %5774 = vmatprep.subr.msk.bf16.mxu1 %vm3902_vm3, %v5767_v23  ;;  %v3857_v23 = vrot.slane %v7418_v5, %v7037_v53 }
 0x77a   :  { %v5929_v35 = vpop.f32.mrb[4].mxu0 }
 0x77b   :  { %v5930_v36 = vpop.f32.mrb[5].mxu0 }
 0x77c   :  { %v5931_v37 = vadd.f32 %v5930_v36, %v5929_v35  ;;  %v5932_v38 = vpop.f32.mrb[6].mxu0 }
 0x77d   :  { %v5933_v40 = vpop.f32.mrb[7].mxu0 }
 0x77e   :  { %v3772_v45 = vadd.f32 %v5931_v37, %v5725_v39 }
 0x781   :  { %v5951_v41 = vpop.f32.mrb[20].mxu1 }
 0x782   :  { %v5952_v44 = vpop.f32.mrb[21].mxu1 }
 0x783   :  { %v5953_v46 = vadd.f32 %v5952_v44, %v5951_v41  ;;  %v5954_v48 = vpop.f32.mrb[22].mxu1 }
 0x784   :  { %v5955_v43 = vpop.f32.mrb[23].mxu1 }
 0x785   :  { %v3812_v33 = vadd.f32 %v5953_v46, %v3772_v45 }
 0x787   :  { %v5758_v59 = vclamps-f32 %v3812_v33, 10.0 }
 0x789   :  { %v3820_v63 = vmul.f32 0.5, %v5758_v59  ;;  %v5303_v52 = vsel %vm3898_vm4, %v3812_v33, %v5758_v59 }
 0x78a   :  { %5305 = vst.msk [vmem:[%s7579_s18] sm:$0x3] %vm5304_vm5, %v5303_v52  ;;  %v6435_v52 = vld [vmem:[#allocation6] ss:$8 sps:$4 sm:$0xff]  }
 0x78b   :  { %v3821_v34 = vmul.f32 1.442695, %v3820_v63 }
 0x78d   :  { %6707 = vpow2.f32 %v3821_v34  ;;  %v6437_v34 = vld [vmem:[#allocation6 + $0x4] ss:$8 sps:$4 sm:$0xff]  }
 0x797   :  { %v6708_v57 = vpop.eup %6707 }
 0x798   :  { %3824 = vrot.lane.b32.xlu0 %v6708_v57, %s6838_s27 }
 0x80a   :  { %v3825_v55 = vpop.permute.xlu0 %3824 }
 0x80b   :  { %v3827_v9 = vmul.f32 %v3825_v55, %v3819_v7 }
 0x80d   :  { %v3828_v58 = vadd.f32 %v3827_v9, %v3812_v33 }
 0x80f   :  { %v5759_v18 = vclamps-f32 %v3828_v58, 10.0 }
 0x811   :  { %v3831_v17 = vpack.c.bf16 %v5759_v18, %v5759_v18 }
 0x813   :  { %5769 = vmatmul.mubr.msk.bf16.vlgmr.msra.gmra.mrb[8].mxu0 %vm3898_vm4, %v3831_v17  ;;  %5771 = vmatmul.mubr.msk.bf16.vlgmr.msra.gmra.mrb[24].mxu1 %vm3898_vm4, %v3831_v17 }
 0x814   :  { %4010 = vmatpush1.bf16.msra.mxu0 %v3916_v32  ;;  %4051 = vmatpush1.bf16.msra.mxu1 %v3922_v42 }
 0x815   :  { %4041 = vmatprep.mubr.bf16.mxu0 %v6837_v2  ;;  %4082 = vmatprep.mubr.bf16.mxu1 %v6837_v2 }
 0x816   :  { %5139 = vmatprep.subr.bf16.mxu0 %v6437_v34  ;;  %v6470_v34 = vld [vmem:[#allocation6 + $0xb4] ss:$8 sps:$4 sm:$0xff]  }
 0x81b   :  { %5773 = vmatmul.mubr.msk.bf16.vlgmr.msra.gmra.mrb[12].mxu0 %vm3898_vm4, %v3831_v17  ;;  %5775 = vmatmul.mubr.msk.bf16.vlgmr.msra.gmra.mrb[28].mxu1 %vm3898_vm4, %v3831_v17 }
 0x81c   :  { %5140 = vmatpush1.bf16.msra.mxu0 %v6435_v52  ;;  %v6468_v52 = vld [vmem:[#allocation6 + $0xb0] ss:$8 sps:$4 sm:$0xff]  }
 0x81d   :  { %5141 = vmatprep.subr.bf16.mxu0 %v6440_v54  ;;  %v6473_v54 = vld [vmem:[#allocation6 + $0xc4] ss:$8 sps:$4 sm:$0xff]  }
 0x820   :  { %5142 = vmatpush1.bf16.msra.mxu0 %v6438_v56  ;;  %v6471_v56 = vld [vmem:[#allocation6 + $0xc0] ss:$8 sps:$4 sm:$0xff]  }
 0x821   :  { %5143 = vmatprep.subr.bf16.mxu0 %v6443_v60  ;;  %v6476_v60 = vld [vmem:[#allocation6 + $0xd4] ss:$8 sps:$4 sm:$0xff]  }
 0x824   :  { %5144 = vmatpush1.bf16.msra.mxu0 %v6441_v62  ;;  %v6474_v62 = vld [vmem:[#allocation6 + $0xd0] ss:$8 sps:$4 sm:$0xff]  }
 0x8e6   :  { %v3961_v6 = vpop.f32.mrb[8].mxu0  ;;  %v4002_v22 = vpop.f32.mrb[24].mxu1 }
 0x8e7   :  { %v3963_v51 = vpop.f32.mrb[9].mxu0  ;;  %v4004_v61 = vpop.f32.mrb[25].mxu1  ;;  %v3962_v29 = vadd.f32 %v3961_v6, %v3841_v49  ;;  %v4003_v43 = vadd.f32 %v4002_v22, %v3849_v31  ;;  %v3869_v6 = vrot.slane %v7418_v5, %v7064_v1 }
 0x8e8   :  { %v3964_v30 = vadd.f32 %v3963_v51, %v3845_v19  ;;  %v3965_v10 = vpop.f32.mrb[10].mxu0  ;;  %v4006_v26 = vpop.f32.mrb[26].mxu1  ;;  %v4005_v35 = vadd.f32 %v4004_v61, %v3853_v21  ;;  %v6449_v21 = vld [vmem:[#allocation6 + $0x44] ss:$8 sps:$4 sm:$0xff]  }
 0x8e9   :  { %v3966_v27 = vpop.f32.mrb[11].mxu0  ;;  %v4007_v28 = vpop.f32.mrb[27].mxu1  ;;  %v4093_v38 = vsel %vm1093_vm0, %v3962_v29, 0.0  ;;  %v4119_v63 = vsel %vm1093_vm0, %v4003_v43, 0.0  ;;  %v3865_v10 = vrot.slane %v7418_v5, %v7072_v16  ;;  %v6447_v5 = vld [vmem:[#allocation6 + $0x40] ss:$8 sps:$4 sm:$0xff]  }
 0x8ea   :  { %v4106_v12 = vsel %vm1093_vm0, %v3964_v30, 0.0  ;;  %v4132_v59 = vsel %vm1093_vm0, %v4005_v35, 0.0 }
 0x8eb   :  { %4107 = vadd.xlane.f32.xlu1 %v4106_v12 }
 0x8ee   :  { %v4043_v36 = vpop.f32.mrb[12].mxu0  ;;  %v7431_v37 = vpop.f32.mrb[28].mxu1 }
 0x8ef   :  { %v4045_v40 = vpop.f32.mrb[13].mxu0  ;;  %v4086_v39 = vpop.f32.mrb[29].mxu1  ;;  %4094 = vadd.xlane.f32.xlu1 %v4093_v38  ;;  %v7451_v14 = vadd.f32 %v4043_v36, %v3857_v23  ;;  %v7473_v12 = vadd.f32 %v7431_v37, %v3865_v10  ;;  %v6455_v37 = vld [vmem:[#allocation6 + $0x64] ss:$8 sps:$4 sm:$0xff]  }
 0x8f0   :  { %v7434_v41 = vadd.f32 %v4045_v40, %v3861_v15  ;;  %v4047_v44 = vpop.f32.mrb[14].mxu0  ;;  %v4088_v45 = vpop.f32.mrb[30].mxu1  ;;  %v7469_v26 = vadd.f32 %v4086_v39, %v3869_v6  ;;  %v6450_v40 = vld [vmem:[#allocation6 + $0x50] ss:$8 sps:$4 sm:$0xff]  }
 0x8f1   :  { %v4048_v46 = vpop.f32.mrb[15].mxu0  ;;  %v4089_v48 = vpop.f32.mrb[31].mxu1  ;;  %v4145_v19 = vsel %vm1093_vm0, %v7451_v14, 0.0  ;;  %v4171_v36 = vsel %vm1093_vm0, %v7473_v12, 0.0  ;;  %v6458_v44 = vld [vmem:[#allocation6 + $0x74] ss:$8 sps:$4 sm:$0xff]  }
 0x8f2   :  { %v4158_v33 = vsel %vm1093_vm0, %v7434_v41, 0.0  ;;  %v4184_v31 = vsel %vm1093_vm0, %v7469_v26, 0.0  ;;  %v6456_v45 = vld [vmem:[#allocation6 + $0x70] ss:$8 sps:$4 sm:$0xff]   ;;  %v6461_v46 = vld [vmem:[#allocation6 + $0x84] ss:$8 sps:$4 sm:$0xff]  }
 0x8f3   :  { %4159 = vadd.xlane.f32.xlu0 %v4158_v33  ;;  %4133 = vadd.xlane.f32.xlu1 %v4132_v59  ;;  %v6459_v48 = vld [vmem:[#allocation6 + $0x80] ss:$8 sps:$4 sm:$0xff]   ;;  %v6462_v33 = vld [vmem:[#allocation6 + $0x90] ss:$8 sps:$4 sm:$0xff]   ;;  %v6467_v59 = vld [vmem:[#allocation6 + $0xa4] ss:$8 sps:$4 sm:$0xff]  }
 0x8f7   :  { %4120 = vadd.xlane.f32.xlu1 %v4119_v63  ;;  %v6465_v63 = vld [vmem:[#allocation6 + $0xa0] ss:$8 sps:$4 sm:$0xff]  }
 0x978   :  { %v4108_v0 = vpop.xlane.xlu1 %4107 }
 0x979   :  { %v4109_v47 = vmul.f32 0.0078125, %v4108_v0  ;;  %v6479_v0 = vld [vmem:[#allocation6 + $0xe4] ss:$8 sps:$4 sm:$0xff]  }
 0x97b   :  { %v7440_v2 = vsub.f32 %v3964_v30, %v4109_v47  ;;  %v6446_v30 = vld [vmem:[#allocation6 + $0x34] ss:$8 sps:$4 sm:$0xff]   ;;  %v6477_v47 = vld [vmem:[#allocation6 + $0xe0] ss:$8 sps:$4 sm:$0xff]  }
 0x97c   :  { %v4095_v3 = vpop.xlane.xlu1 %4094  ;;  %5145 = vmatprep.subr.bf16.mxu0 %v6446_v30 }
 0x97d   :  { %v4096_v4 = vmul.f32 0.0078125, %v4095_v3  ;;  %v4111_v20 = vmul.f32 %v7440_v2, %v7440_v2  ;;  %v6482_v3 = vld [vmem:[#allocation6 + $0xf4] ss:$8 sps:$4 sm:$0xff]  }
 0x97f   :  { %v7446_v57 = vsub.f32 %v3962_v29, %v4096_v4  ;;  %v4112_v7 = vsel %vm1093_vm0, %v4111_v20, 0.0  ;;  %v6444_v29 = vld [vmem:[#allocation6 + $0x30] ss:$8 sps:$4 sm:$0xff]   ;;  %v6485_v20 = vld [vmem:[#allocation6 + $0x104] ss:$8 sps:$4 sm:$0xff]  }
 0x980   :  { %4113 = vadd.xlane.f32.xlu1 %v4112_v7  ;;  %v4134_v55 = vpop.xlane.xlu1 %4133  ;;  %v4160_v61 = vpop.xlane.xlu0 %4159  ;;  %5146 = vmatpush1.bf16.msra.mxu0 %v6444_v29  ;;  %v6480_v4 = vld [vmem:[#allocation6 + $0xf0] ss:$8 sps:$4 sm:$0xff]  }
 0x981   :  { %v4135_v9 = vmul.f32 0.0078125, %v4134_v55  ;;  %v4098_v58 = vmul.f32 %v7446_v57, %v7446_v57  ;;  %v4161_v27 = vmul.f32 0.0078125, %v4160_v61  ;;  %5147 = vmatprep.subr.bf16.mxu0 %v6449_v21  ;;  %v7498_v61 = vld [vmem:[%s7576_s15] sm:$0xff] }
 0x982   :  { %v4254_v21 = vrot.slane %v7498_v61, %v6999_v11 }
 0x983   :  { %v7453_v8 = vsub.f32 %v4005_v35, %v4135_v9  ;;  %v4099_v18 = vsel %vm1093_vm0, %v4098_v58, 0.0  ;;  %v7476_v15 = vsub.f32 %v7434_v41, %v4161_v27  ;;  %v6452_v35 = vld [vmem:[#allocation6 + $0x54] ss:$8 sps:$4 sm:$0xff]   ;;  %v6453_v41 = vld [vmem:[#allocation6 + $0x60] ss:$8 sps:$4 sm:$0xff]  }
 0x984   :  { %4100 = vadd.xlane.f32.xlu1 %v4099_v18  ;;  %v4121_v17 = vpop.xlane.xlu1 %4120  ;;  %5148 = vmatpush1.bf16.msra.mxu0 %v6447_v5 }
 0x985   :  { %v4122_v32 = vmul.f32 0.0078125, %v4121_v17  ;;  %v4137_v49 = vmul.f32 %v7453_v8, %v7453_v8  ;;  %v4163_v38 = vmul.f32 %v7476_v15, %v7476_v15  ;;  %5149 = vmatprep.subr.bf16.mxu0 %v6452_v35 }
 0x987   :  { %v7456_v42 = vsub.f32 %v4003_v43, %v4122_v32  ;;  %v4138_v22 = vsel %vm1093_vm0, %v4137_v49, 0.0  ;;  %v4164_v39 = vsel %vm1093_vm0, %v4163_v38, 0.0  ;;  %v6464_v43 = vld [vmem:[#allocation6 + $0x94] ss:$8 sps:$4 sm:$0xff]   ;;  %v7491_v49 = vld [vmem:[%s7575_s14] sm:$0xff] }
 0x988   :  { %4146 = vadd.xlane.f32.xlu1 %v4145_v19  ;;  %5150 = vmatpush1.bf16.msra.mxu0 %v6450_v40  ;;  %v4205_v30 = vrot.slane %v7491_v49, %v6999_v11  ;;  %v4201_v5 = vrot.slane %v7491_v49, %v7007_v13 }
 0x989   :  { %v4124_v51 = vmul.f32 %v7456_v42, %v7456_v42  ;;  %5151 = vmatprep.subr.bf16.mxu0 %v6455_v37  ;;  %v4250_v37 = vrot.slane %v7498_v61, %v7007_v13 }
 0x98b   :  { %v4125_v28 = vsel %vm1093_vm0, %v4124_v51, 0.0 }
 0x98c   :  { %4139 = vadd.xlane.f32.xlu1 %v4138_v22  ;;  %5152 = vmatpush1.bf16.msra.mxu0 %v6453_v41 }
 0x98d   :  { %5153 = vmatprep.subr.bf16.mxu0 %v6458_v44 }
 0x990   :  { %4126 = vadd.xlane.f32.xlu1 %v4125_v28  ;;  %5154 = vmatpush1.bf16.msra.mxu0 %v6456_v45 }
 0x991   :  { %5155 = vmatprep.subr.bf16.mxu0 %v6461_v46 }
 0x994   :  { %4185 = vadd.xlane.f32.xlu1 %v4184_v31  ;;  %5156 = vmatpush1.bf16.msra.mxu0 %v6459_v48 }
 0x995   :  { %5157 = vmatprep.subr.bf16.mxu0 %v6464_v43 }
 0x998   :  { %4172 = vadd.xlane.f32.xlu1 %v4171_v36  ;;  %5158 = vmatpush1.bf16.msra.mxu0 %v6462_v33 }
 0x999   :  { %5159 = vmatprep.subr.bf16.mxu0 %v6467_v59 }
 0x99c   :  { %4165 = vadd.xlane.f32.xlu1 %v4164_v39  ;;  %5160 = vmatpush1.bf16.msra.mxu0 %v6465_v63 }
 0x99d   :  { %5161 = vmatprep.subr.bf16.mxu0 %v6470_v34  ;;  %v4262_v34 = vrot.slane %v7498_v61, %v7016_v24 }
 0x9a0   :  { %5162 = vmatpush1.bf16.msra.mxu0 %v6468_v52 }
 0x9a1   :  { %5163 = vmatprep.subr.bf16.mxu0 %v6473_v54 }
 0x9a4   :  { %5164 = vmatpush1.bf16.msra.mxu0 %v6471_v56 }
 0x9a5   :  { %5165 = vmatprep.subr.bf16.mxu0 %v6476_v60 }
 0x9a8   :  { %5166 = vmatpush1.bf16.msra.mxu0 %v6474_v62 }
 0x9a9   :  { %5167 = vmatprep.subr.bf16.mxu0 %v6479_v0 }
 0x9ac   :  { %5168 = vmatpush1.bf16.msra.mxu0 %v6477_v47 }
 0x9ad   :  { %5169 = vmatprep.subr.bf16.mxu0 %v6482_v3 }
 0x9b0   :  { %5170 = vmatpush1.bf16.msra.mxu0 %v6480_v4 }
 0x9b1   :  { %5180 = vmatprep.subr.bf16.mxu0 %v6485_v20 }
 0xa0d   :  { %v4114_v23 = vpop.xlane.xlu1 %4113 }
 0xa0e   :  { %v4115_v7 = vmul.f32 0.0078125, %v4114_v23 }
 0xa10   :  { %v4116_v55 = vadd.f32 1e-05, %v4115_v7 }
 0xa11   :  { %v4101_v9 = vpop.xlane.xlu1 %4100 }
 0xa12   :  { %6709 = vrsqrt.f32 %v4116_v55  ;;  %v4102_v58 = vmul.f32 0.0078125, %v4101_v9 }
 0xa14   :  { %v4103_v18 = vadd.f32 1e-05, %v4102_v58 }
 0xa15   :  { %v4147_v17 = vpop.xlane.xlu1 %4146 }
 0xa16   :  { %6711 = vrsqrt.f32 %v4103_v18  ;;  %v4148_v32 = vmul.f32 0.0078125, %v4147_v17 }
 0xa18   :  { %v7486_v19 = vsub.f32 %v7451_v14, %v4148_v32 }
 0xa19   :  { %v4140_v6 = vpop.xlane.xlu1 %4139 }
 0xa1a   :  { %v4141_v22 = vmul.f32 0.0078125, %v4140_v6  ;;  %v4150_v51 = vmul.f32 %v7486_v19, %v7486_v19 }
 0xa1c   :  { %v6710_v14 = vpop.eup %6709  ;;  %v4142_v10 = vadd.f32 1e-05, %v4141_v22  ;;  %v4151_v27 = vsel %vm1093_vm0, %v4150_v51, 0.0  ;;  %v6483_v22 = vld [vmem:[#allocation6 + $0x100] ss:$8 sps:$4 sm:$0xff]  }
 0xa1d   :  { %4152 = vadd.xlane.f32.xlu1 %v4151_v27  ;;  %v4127_v28 = vpop.xlane.xlu1 %4126  ;;  %v4118_v29 = vmul.f32 %v6710_v14, %v7440_v2  ;;  %v6486_v14 = vld [vmem:[#allocation6 + $0x110] ss:$8 sps:$4 sm:$0xff]  }
 0xa1e   :  { %6713 = vrsqrt.f32 %v4142_v10  ;;  %v6491_v10 = vld [vmem:[#allocation6 + $0x124] ss:$8 sps:$4 sm:$0xff]  }
 0xa1f   :  { %v4239_v31 = vmul.f32 %v4205_v30, %v4118_v29  ;;  %v6488_v30 = vld [vmem:[#allocation6 + $0x114] ss:$8 sps:$4 sm:$0xff]   ;;  %v6489_v29 = vld [vmem:[#allocation6 + $0x120] ss:$8 sps:$4 sm:$0xff]  }
 0xa20   :  { %v6712_v35 = vpop.eup %6711 }
 0xa21   :  { %v4105_v36 = vmul.f32 %v6712_v35, %v7446_v57  ;;  %v4186_v38 = vpop.xlane.xlu1 %4185  ;;  %v4288_v40 = vadd.f32 %v4254_v21, %v4239_v31  ;;  %v4213_v57 = vrot.slane %v7491_v49, %v7016_v24  ;;  %v4128_v24 = vmul.f32 0.0078125, %v4127_v28  ;;  %v6494_v31 = vld [vmem:[#allocation6 + $0x134] ss:$8 sps:$4 sm:$0xff]   ;;  %v6492_v35 = vld [vmem:[#allocation6 + $0x130] ss:$8 sps:$4 sm:$0xff]  }
 0xa22   :  { %v4187_v39 = vmul.f32 0.0078125, %v4186_v38  ;;  %v6497_v38 = vld [vmem:[#allocation6 + $0x144] ss:$8 sps:$4 sm:$0xff]  }
 0xa23   :  { %v5777_v41 = vmul.f32 -1.442695, %v4288_v40  ;;  %v4238_v44 = vmul.f32 %v4201_v5, %v4105_v36  ;;  %v4129_v17 = vadd.f32 1e-05, %v4128_v24 }
 0xa24   :  { %v7512_v2 = vsub.f32 %v7469_v26, %v4187_v39  ;;  %v6495_v39 = vld [vmem:[#allocation6 + $0x140] ss:$8 sps:$4 sm:$0xff]  }
 0xa25   :  { %v4173_v45 = vpop.xlane.xlu1 %4172  ;;  %6715 = vpow2.f32 %v5777_v41  ;;  %v4287_v46 = vadd.f32 %v4250_v37, %v4238_v44  ;;  %v4209_v37 = vrot.slane %v7491_v49, %v7019_v25  ;;  %v4221_v44 = vrot.slane %v7491_v49, %v7034_v50 }
 0xa26   :  { %v4174_v48 = vmul.f32 0.0078125, %v4173_v45  ;;  %v4189_v43 = vmul.f32 %v7512_v2, %v7512_v2  ;;  %v6500_v45 = vld [vmem:[#allocation6 + $0x154] ss:$8 sps:$4 sm:$0xff]  }
 0xa27   :  { %v5776_v33 = vmul.f32 -1.442695, %v4287_v46 }
 0xa28   :  { %v6714_v59 = vpop.eup %6713  ;;  %v7519_v63 = vsub.f32 %v7473_v12, %v4174_v48  ;;  %v4190_v52 = vsel %vm1093_vm0, %v4189_v43, 0.0  ;;  %v4258_v48 = vrot.slane %v7498_v61, %v7019_v25  ;;  %v6498_v43 = vld [vmem:[#allocation6 + $0x150] ss:$8 sps:$4 sm:$0xff]   ;;  %v6509_v25 = vld [vmem:[#allocation6 + $0x184] ss:$8 sps:$4 sm:$0xff]  }
 0xa29   :  { %4191 = vadd.xlane.f32.xlu1 %v4190_v52  ;;  %6717 = vpow2.f32 %v5776_v33  ;;  %v4144_v26 = vmul.f32 %v6714_v59, %v7453_v8  ;;  %v4166_v8 = vpop.xlane.xlu1 %4165 }
 0xa2a   :  { %v4176_v54 = vmul.f32 %v7519_v63, %v7519_v63  ;;  %v4167_v55 = vmul.f32 0.0078125, %v4166_v8  ;;  %v6516_v8 = vld [vmem:[#allocation6 + $0x1b0] ss:$8 sps:$4 sm:$0xff]  }
 0xa2b   :  { %v4241_v56 = vmul.f32 %v4213_v57, %v4144_v26  ;;  %v6503_v57 = vld [vmem:[#allocation6 + $0x164] ss:$8 sps:$4 sm:$0xff]   ;;  %v6506_v26 = vld [vmem:[#allocation6 + $0x174] ss:$8 sps:$4 sm:$0xff]  }
 0xa2c   :  { %v4177_v60 = vsel %vm1093_vm0, %v4176_v54, 0.0  ;;  %v4168_v32 = vadd.f32 1e-05, %v4167_v55  ;;  %v6504_v54 = vld [vmem:[#allocation6 + $0x170] ss:$8 sps:$4 sm:$0xff]  }
 0xa2d   :  { %4178 = vadd.xlane.f32.xlu0 %v4177_v60  ;;  %v4290_v62 = vadd.f32 %v4262_v34, %v4241_v56  ;;  %v6507_v60 = vld [vmem:[#allocation6 + $0x180] ss:$8 sps:$4 sm:$0xff]   ;;  %v6524_v55 = vld [vmem:[#allocation6 + $0x1d4] ss:$8 sps:$4 sm:$0xff]  }
 0xa2f   :  { %v6716_v0 = vpop.eup %6715  ;;  %v5779_v12 = vmul.f32 -1.442695, %v4290_v62 }
 0xa30   :  { %v4320_v47 = vadd.f32 1.0, %v6716_v0  ;;  %v6515_v0 = vld [vmem:[#allocation6 + $0x1a4] ss:$8 sps:$4 sm:$0xff]  }
 0xa31   :  { %6719 = vpow2.f32 %v5779_v12  ;;  %v6513_v12 = vld [vmem:[#allocation6 + $0x1a0] ss:$8 sps:$4 sm:$0xff]  }
 0xa32   :  { %6721 = vrcp.f32 %v4320_v47 }
 0xa33   :  { %v6718_v3 = vpop.eup %6717 }
 0xa34   :  { %v4319_v4 = vadd.f32 1.0, %v6718_v3  ;;  %v6518_v3 = vld [vmem:[#allocation6 + $0x1b4] ss:$8 sps:$4 sm:$0xff]  }
 0xa36   :  { %6723 = vrcp.f32 %v4319_v4 }
 0xa3b   :  { %v6720_v20 = vpop.eup %6719 }
 0xa3c   :  { %v6722_v23 = vpop.eup %6721  ;;  %v4322_v7 = vadd.f32 1.0, %v6720_v20 }
 0xa3d   :  { %v4344_v9 = vmul.f32 %v6722_v23, %v4288_v40  ;;  %v6521_v23 = vld [vmem:[#allocation6 + $0x1c4] ss:$8 sps:$4 sm:$0xff]  }
 0xa3e   :  { %6725 = vrcp.f32 %v4322_v7  ;;  %v6519_v7 = vld [vmem:[#allocation6 + $0x1c0] ss:$8 sps:$4 sm:$0xff]  }
 0xa3f   :  { %v4352_v58 = vpack.c.bf16 %v4344_v9, %v4344_v9  ;;  %6727 = vrsqrt.f32 %v4129_v17  ;;  %v6522_v9 = vld [vmem:[#allocation6 + $0x1d0] ss:$8 sps:$4 sm:$0xff]   ;;  %v6530_v17 = vld [vmem:[#allocation6 + $0x1f4] ss:$8 sps:$4 sm:$0xff]  }
 0xa40   :  { %v6724_v18 = vpop.eup %6723  ;;  %6729 = vrsqrt.f32 %v4168_v32 }
 0xa41   :  { %5171 = vmatprep.mubr.bf16.mxu0 %v4352_v58  ;;  %v4343_v6 = vmul.f32 %v6724_v18, %v4287_v46  ;;  %v6527_v58 = vld [vmem:[#allocation6 + $0x1e4] ss:$8 sps:$4 sm:$0xff]   ;;  %v6525_v18 = vld [vmem:[#allocation6 + $0x1e0] ss:$8 sps:$4 sm:$0xff]  }
 0xa43   :  { %v4351_v51 = vpack.c.bf16 %v4343_v6, %v4343_v6 }
 0xa45   :  { %5172 = vmatmul.mubr.bf16.vlgmr.msra.gmra.mrb[16].mxu0 %v4351_v51 }
 0xa46   :  { %5181 = vmatpush1.bf16.msra.mxu0 %v6483_v22  ;;  %v6528_v22 = vld [vmem:[#allocation6 + $0x1f0] ss:$8 sps:$4 sm:$0xff]  }
 0xa47   :  { %5182 = vmatprep.subr.bf16.mxu0 %v6488_v30  ;;  %v6533_v30 = vld [vmem:[#allocation6 + $0x204] ss:$8 sps:$4 sm:$0xff]  }
 0xa48   :  { %v6726_v27 = vpop.eup %6725 }
 0xa49   :  { %v4346_v28 = vmul.f32 %v6726_v27, %v4290_v62  ;;  %v6728_v5 = vpop.eup %6727  ;;  %v6510_v62 = vld [vmem:[#allocation6 + $0x190] ss:$8 sps:$4 sm:$0xff]  }
 0xa4a   :  { %5183 = vmatpush1.bf16.msra.mxu0 %v6486_v14  ;;  %v6730_v36 = vpop.eup %6729  ;;  %v4131_v40 = vmul.f32 %v6728_v5, %v7456_v42  ;;  %v4270_v42 = vrot.slane %v7498_v61, %v7034_v50  ;;  %v6512_v50 = vld [vmem:[#allocation6 + $0x194] ss:$8 sps:$4 sm:$0xff]   ;;  %v6537_v5 = vld [vmem:[#allocation6 + $0x220] ss:$8 sps:$4 sm:$0xff]  }
 0xa4b   :  { %5184 = vmatprep.subr.bf16.mxu0 %v6491_v10  ;;  %v4354_v21 = vpack.c.bf16 %v4346_v28, %v4346_v28  ;;  %v4170_v41 = vmul.f32 %v6730_v36, %v7476_v15  ;;  %v6501_v15 = vld [vmem:[#allocation6 + $0x160] ss:$8 sps:$4 sm:$0xff]   ;;  %v6536_v28 = vld [vmem:[#allocation6 + $0x214] ss:$8 sps:$4 sm:$0xff]   ;;  %v6540_v36 = vld [vmem:[#allocation6 + $0x230] ss:$8 sps:$4 sm:$0xff]  }
 0xa4c   :  { %v4240_v46 = vmul.f32 %v4209_v37, %v4131_v40  ;;  %v6531_v10 = vld [vmem:[#allocation6 + $0x200] ss:$8 sps:$4 sm:$0xff]   ;;  %v6548_v37 = vld [vmem:[#allocation6 + $0x254] ss:$8 sps:$4 sm:$0xff]  }
 0xa4d   :  { %5212 = vmatprep.mubr.bf16.mxu0 %v4354_v21  ;;  %v4243_v33 = vmul.f32 %v4221_v44, %v4170_v41  ;;  %v6534_v21 = vld [vmem:[#allocation6 + $0x210] ss:$8 sps:$4 sm:$0xff]   ;;  %v6543_v40 = vld [vmem:[#allocation6 + $0x240] ss:$8 sps:$4 sm:$0xff]   ;;  %v6551_v41 = vld [vmem:[#allocation6 + $0x264] ss:$8 sps:$4 sm:$0xff]  }
 0xa4e   :  { %5185 = vmatpush1.bf16.msra.mxu0 %v6489_v29  ;;  %v4289_v59 = vadd.f32 %v4258_v48, %v4240_v46  ;;  %v6549_v44 = vld [vmem:[#allocation6 + $0x260] ss:$8 sps:$4 sm:$0xff]   ;;  %v6552_v46 = vld [vmem:[#allocation6 + $0x270] ss:$8 sps:$4 sm:$0xff]   ;;  %v6557_v48 = vld [vmem:[#allocation6 + $0x284] ss:$8 sps:$4 sm:$0xff]  }
 0xa4f   :  { %5186 = vmatprep.subr.bf16.mxu0 %v6494_v31  ;;  %v4292_v52 = vadd.f32 %v4270_v42, %v4243_v33  ;;  %v6539_v31 = vld [vmem:[#allocation6 + $0x224] ss:$8 sps:$4 sm:$0xff]   ;;  %v6560_v33 = vld [vmem:[#allocation6 + $0x294] ss:$8 sps:$4 sm:$0xff]   ;;  %v6558_v42 = vld [vmem:[#allocation6 + $0x290] ss:$8 sps:$4 sm:$0xff]  }
 0xa50   :  { %v5778_v34 = vmul.f32 -1.442695, %v4289_v59 }
 0xa51   :  { %v5781_v56 = vmul.f32 -1.442695, %v4292_v52 }
 0xa52   :  { %5187 = vmatpush1.bf16.msra.mxu0 %v6492_v35  ;;  %6731 = vpow2.f32 %v5778_v34  ;;  %v6542_v35 = vld [vmem:[#allocation6 + $0x234] ss:$8 sps:$4 sm:$0xff]  }
 0xa53   :  { %5188 = vmatprep.subr.bf16.mxu0 %v6497_v38  ;;  %6733 = vpow2.f32 %v5781_v56  ;;  %v6545_v38 = vld [vmem:[#allocation6 + $0x244] ss:$8 sps:$4 sm:$0xff]  }
 0xa54   :  { %v6569_v56 = vld [vmem:[#allocation6 + $0x2c4] ss:$8 sps:$4 sm:$0xff]  }
 0xa56   :  { %5189 = vmatpush1.bf16.msra.mxu0 %v6495_v39  ;;  %v6546_v39 = vld [vmem:[#allocation6 + $0x250] ss:$8 sps:$4 sm:$0xff]  }
 0xa57   :  { %5190 = vmatprep.subr.bf16.mxu0 %v6500_v45  ;;  %v6554_v45 = vld [vmem:[#allocation6 + $0x274] ss:$8 sps:$4 sm:$0xff]  }
 0xa5a   :  { %5191 = vmatpush1.bf16.msra.mxu0 %v6498_v43  ;;  %v6555_v43 = vld [vmem:[#allocation6 + $0x280] ss:$8 sps:$4 sm:$0xff]  }
 0xa5b   :  { %5192 = vmatprep.subr.bf16.mxu0 %v6503_v57  ;;  %v6563_v57 = vld [vmem:[#allocation6 + $0x2a4] ss:$8 sps:$4 sm:$0xff]  }
 0xa5c   :  { %v6732_v47 = vpop.eup %6731 }
 0xa5d   :  { %v6734_v4 = vpop.eup %6733  ;;  %v4321_v20 = vadd.f32 1.0, %v6732_v47  ;;  %v4217_v47 = vrot.slane %v7491_v49, %v7037_v53 }
 0xa5e   :  { %5193 = vmatpush1.bf16.msra.mxu0 %v6501_v15  ;;  %v4324_v24 = vadd.f32 1.0, %v6734_v4  ;;  %v6561_v15 = vld [vmem:[#allocation6 + $0x2a0] ss:$8 sps:$4 sm:$0xff]  }
 0xa5f   :  { %5194 = vmatprep.subr.bf16.mxu0 %v6506_v26  ;;  %6735 = vrcp.f32 %v4321_v20  ;;  %v6566_v26 = vld [vmem:[#allocation6 + $0x2b4] ss:$8 sps:$4 sm:$0xff]   ;;  %v6573_v20 = vld [vmem:[#allocation6 + $0x2e0] ss:$8 sps:$4 sm:$0xff]  }
 0xa60   :  { %6737 = vrcp.f32 %v4324_v24  ;;  %v6578_v24 = vld [vmem:[#allocation6 + $0x2f4] ss:$8 sps:$4 sm:$0xff]  }
 0xa62   :  { %5195 = vmatpush1.bf16.msra.mxu0 %v6504_v54  ;;  %v6564_v54 = vld [vmem:[#allocation6 + $0x2b0] ss:$8 sps:$4 sm:$0xff]  }
 0xa63   :  { %5196 = vmatprep.subr.bf16.mxu0 %v6509_v25  ;;  %v6567_v25 = vld [vmem:[#allocation6 + $0x2c0] ss:$8 sps:$4 sm:$0xff]  }
 0xa66   :  { %5197 = vmatpush1.bf16.msra.mxu0 %v6507_v60  ;;  %v6572_v60 = vld [vmem:[#allocation6 + $0x2d4] ss:$8 sps:$4 sm:$0xff]  }
 0xa67   :  { %5198 = vmatprep.subr.bf16.mxu0 %v6512_v50 }
 0xa69   :  { %v6736_v32 = vpop.eup %6735 }
 0xa6a   :  { %5199 = vmatpush1.bf16.msra.mxu0 %v6510_v62  ;;  %v6738_v6 = vpop.eup %6737  ;;  %v4345_v51 = vmul.f32 %v6736_v32, %v4289_v59  ;;  %v6570_v62 = vld [vmem:[#allocation6 + $0x2d0] ss:$8 sps:$4 sm:$0xff]  }
 0xa6b   :  { %5200 = vmatprep.subr.bf16.mxu0 %v6515_v0  ;;  %v4348_v14 = vmul.f32 %v6738_v6, %v4292_v52 }
 0xa6c   :  { %v4353_v27 = vpack.c.bf16 %v4345_v51, %v4345_v51 }
 0xa6d   :  { %v4356_v29 = vpack.c.bf16 %v4348_v14, %v4348_v14 }
 0xa6e   :  { %5201 = vmatpush1.bf16.msra.mxu0 %v6513_v12  ;;  %v6575_v12 = vld [vmem:[#allocation6 + $0x2e4] ss:$8 sps:$4 sm:$0xff]  }
 0xa6f   :  { %5202 = vmatprep.subr.bf16.mxu0 %v6518_v3 }
 0xa72   :  { %5203 = vmatpush1.bf16.msra.mxu0 %v6516_v8 }
 0xa73   :  { %5204 = vmatprep.subr.bf16.mxu0 %v6521_v23  ;;  %v4266_v23 = vrot.slane %v7498_v61, %v7037_v53  ;;  %v4278_v53 = vrot.slane %v7498_v61, %v7064_v1 }
 0xa76   :  { %5205 = vmatpush1.bf16.msra.mxu0 %v6519_v7 }
 0xa77   :  { %5206 = vmatprep.subr.bf16.mxu0 %v6524_v55  ;;  %v6576_v55 = vld [vmem:[#allocation6 + $0x2f0] ss:$8 sps:$4 sm:$0xff]  }
 0xa7a   :  { %5207 = vmatpush1.bf16.msra.mxu0 %v6522_v9 }
 0xa7b   :  { %5208 = vmatprep.subr.bf16.mxu0 %v6527_v58  ;;  %v6581_v58 = vld [vmem:[#allocation6 + $0x304] ss:$8 sps:$4 sm:$0xff]  }
 0xa7e   :  { %5209 = vmatpush1.bf16.msra.mxu0 %v6525_v18 }
 0xa7f   :  { %5210 = vmatprep.subr.bf16.mxu0 %v6530_v17 }
 0xa82   :  { %5211 = vmatpush1.bf16.msra.mxu0 %v6528_v22 }
 0xa83   :  { %5221 = vmatprep.subr.bf16.mxu0 %v6533_v30 }
 0xa85   :  { %5213 = vmatmul.mubr.bf16.vlgmr.msra.gmra.mrb[16].mxu0 %v4353_v27 }
 0xa86   :  { %5253 = vmatprep.mubr.bf16.mxu0 %v4356_v29  ;;  %5222 = vmatpush1.bf16.msra.mxu0 %v6531_v10 }
 0xa87   :  { %5223 = vmatprep.subr.bf16.mxu0 %v6536_v28 }
 0xa8a   :  { %5224 = vmatpush1.bf16.msra.mxu0 %v6534_v21 }
 0xa8b   :  { %5225 = vmatprep.subr.bf16.mxu0 %v6539_v31 }
 0xa8e   :  { %5226 = vmatpush1.bf16.msra.mxu0 %v6537_v5 }
 0xa8f   :  { %5227 = vmatprep.subr.bf16.mxu0 %v6542_v35  ;;  %v6579_v35 = vld [vmem:[#allocation6 + $0x300] ss:$8 sps:$4 sm:$0xff]  }
 0xa92   :  { %5228 = vmatpush1.bf16.msra.mxu0 %v6540_v36  ;;  %v6584_v36 = vld [vmem:[#allocation6 + $0x314] ss:$8 sps:$4 sm:$0xff]  }
 0xa93   :  { %5229 = vmatprep.subr.bf16.mxu0 %v6545_v38  ;;  %v6587_v38 = vld [vmem:[#allocation6 + $0x324] ss:$8 sps:$4 sm:$0xff]  }
 0xa96   :  { %5230 = vmatpush1.bf16.msra.mxu0 %v6543_v40  ;;  %v6585_v40 = vld [vmem:[#allocation6 + $0x320] ss:$8 sps:$4 sm:$0xff]  }
 0xa97   :  { %5231 = vmatprep.subr.bf16.mxu0 %v6548_v37  ;;  %v6590_v37 = vld [vmem:[#allocation6 + $0x334] ss:$8 sps:$4 sm:$0xff]  }
 0xa9a   :  { %5232 = vmatpush1.bf16.msra.mxu0 %v6546_v39 }
 0xa9b   :  { %5233 = vmatprep.subr.bf16.mxu0 %v6551_v41 }
 0xa9e   :  { %5234 = vmatpush1.bf16.msra.mxu0 %v6549_v44 }
 0xa9f   :  { %5235 = vmatprep.subr.bf16.mxu0 %v6554_v45  ;;  %v6588_v45 = vld [vmem:[#allocation6 + $0x330] ss:$8 sps:$4 sm:$0xff]  }
 0xaa2   :  { %5236 = vmatpush1.bf16.msra.mxu0 %v6552_v46 }
 0xaa3   :  { %5237 = vmatprep.subr.bf16.mxu0 %v6557_v48  ;;  %v6593_v48 = vld [vmem:[#allocation6 + $0x344] ss:$8 sps:$4 sm:$0xff]  }
 0xaa6   :  { %5238 = vmatpush1.bf16.msra.mxu0 %v6555_v43 }
 0xaa7   :  { %5239 = vmatprep.subr.bf16.mxu0 %v6560_v33  ;;  %v4225_v33 = vrot.slane %v7491_v49, %v7072_v16 }
 0xaaa   :  { %v4153_v59 = vpop.xlane.xlu1 %4152  ;;  %5240 = vmatpush1.bf16.msra.mxu0 %v6558_v42  ;;  %v6591_v42 = vld [vmem:[#allocation6 + $0x340] ss:$8 sps:$4 sm:$0xff]  }
 0xaab   :  { %v4154_v52 = vmul.f32 0.0078125, %v4153_v59  ;;  %5241 = vmatprep.subr.bf16.mxu0 %v6563_v57  ;;  %v6596_v57 = vld [vmem:[#allocation6 + $0x354] ss:$8 sps:$4 sm:$0xff]  }
 0xaad   :  { %v4155_v34 = vadd.f32 1e-05, %v4154_v52  ;;  %v6594_v52 = vld [vmem:[#allocation6 + $0x350] ss:$8 sps:$4 sm:$0xff]  }
 0xaae   :  { %5242 = vmatpush1.bf16.msra.mxu0 %v6561_v15  ;;  %v4274_v15 = vrot.slane %v7498_v61, %v7072_v16  ;;  %v6606_v16 = vld [vmem:[#allocation6 + $0x390] ss:$8 sps:$4 sm:$0xff]   ;;  %v6611_v61 = vld [vmem:[#allocation6 + $0x3a4] ss:$8 sps:$4 sm:$0xff]  }
 0xaaf   :  { %6739 = vrsqrt.f32 %v4155_v34  ;;  %5243 = vmatprep.subr.bf16.mxu0 %v6566_v26  ;;  %v6599_v26 = vld [vmem:[#allocation6 + $0x364] ss:$8 sps:$4 sm:$0xff]  }
 0xab2   :  { %5244 = vmatpush1.bf16.msra.mxu0 %v6564_v54  ;;  %v6597_v54 = vld [vmem:[#allocation6 + $0x360] ss:$8 sps:$4 sm:$0xff]  }
 0xab3   :  { %5245 = vmatprep.subr.bf16.mxu0 %v6569_v56 }
 0xab6   :  { %v4192_v50 = vpop.xlane.xlu1 %4191  ;;  %5246 = vmatpush1.bf16.msra.mxu0 %v6567_v25  ;;  %v6605_v25 = vld [vmem:[#allocation6 + $0x384] ss:$8 sps:$4 sm:$0xff]  }
 0xab7   :  { %v4193_v0 = vmul.f32 0.0078125, %v4192_v50  ;;  %5247 = vmatprep.subr.bf16.mxu0 %v6572_v60  ;;  %v6603_v60 = vld [vmem:[#allocation6 + $0x380] ss:$8 sps:$4 sm:$0xff]   ;;  %v6608_v50 = vld [vmem:[#allocation6 + $0x394] ss:$8 sps:$4 sm:$0xff]  }
 0xab9   :  { %v6740_v3 = vpop.eup %6739  ;;  %v4194_v4 = vadd.f32 1e-05, %v4193_v0 }
 0xaba   :  { %v4157_v8 = vmul.f32 %v6740_v3, %v7486_v19  ;;  %5248 = vmatpush1.bf16.msra.mxu0 %v6570_v62  ;;  %v4229_v19 = vrot.slane %v7491_v49, %v7064_v1  ;;  %v4179_v10 = vpop.xlane.xlu0 %4178  ;;  %v6582_v1 = vld [vmem:[#allocation6 + $0x310] ss:$8 sps:$4 sm:$0xff]   ;;  %v6609_v62 = vld [vmem:[#allocation6 + $0x3a0] ss:$8 sps:$4 sm:$0xff]  }
 0xabb   :  { %6741 = vrsqrt.f32 %v4194_v4  ;;  %5249 = vmatprep.subr.bf16.mxu0 %v6575_v12  ;;  %v4180_v27 = vmul.f32 0.0078125, %v4179_v10  ;;  %v6600_v49 = vld [vmem:[#allocation6 + $0x370] ss:$8 sps:$4 sm:$0xff]   ;;  %v6614_v12 = vld [vmem:[#allocation6 + $0x3b4] ss:$8 sps:$4 sm:$0xff]  }
 0xabc   :  { %v4242_v7 = vmul.f32 %v4217_v47, %v4157_v8  ;;  %v6612_v47 = vld [vmem:[#allocation6 + $0x3b0] ss:$8 sps:$4 sm:$0xff]   ;;  %v6617_v4 = vld [vmem:[#allocation6 + $0x3c4] ss:$8 sps:$4 sm:$0xff]   ;;  %v6615_v8 = vld [vmem:[#allocation6 + $0x3c0] ss:$8 sps:$4 sm:$0xff]  }
 0xabd   :  { %v4181_v21 = vadd.f32 1e-05, %v4180_v27 }
 0xabe   :  { %5250 = vmatpush1.bf16.msra.mxu0 %v6573_v20  ;;  %v4291_v9 = vadd.f32 %v4266_v23, %v4242_v7  ;;  %v6620_v20 = vld [vmem:[#allocation6 + $0x3d4] ss:$8 sps:$4 sm:$0xff]   ;;  %v6618_v23 = vld [vmem:[#allocation6 + $0x3d0] ss:$8 sps:$4 sm:$0xff]   ;;  %v6621_v7 = vld [vmem:[#allocation6 + $0x3e0] ss:$8 sps:$4 sm:$0xff]  }
 0xabf   :  { %5251 = vmatprep.subr.bf16.mxu0 %v6578_v24  ;;  %v6623_v24 = vld [vmem:[#allocation6 + $0x3e4] ss:$8 sps:$4 sm:$0xff]  }
 0xac0   :  { %v5780_v18 = vmul.f32 -1.442695, %v4291_v9 }
 0xac2   :  { %5252 = vmatpush1.bf16.msra.mxu0 %v6576_v55  ;;  %6743 = vpow2.f32 %v5780_v18  ;;  %v6626_v55 = vld [vmem:[#allocation6 + $0x3f4] ss:$8 sps:$4 sm:$0xff]  }
 0xac3   :  { %5262 = vmatprep.subr.bf16.mxu0 %v6581_v58  ;;  %v6624_v58 = vld [vmem:[#allocation6 + $0x3f0] ss:$8 sps:$4 sm:$0xff]  }
 0xac5   :  { %v6742_v17 = vpop.eup %6741 }
 0xac6   :  { %v4196_v32 = vmul.f32 %v6742_v17, %v7512_v2  ;;  %v4487_v17 = vld [vmem:[%s7578_s17] sm:$0x3] }
 0xac8   :  { %v4245_v6 = vmul.f32 %v4229_v19, %v4196_v32  ;;  %v4492_v32 = vrot.slane %v4487_v17, %v7007_v13 }
 0xaca   :  { %v4294_v22 = vadd.f32 %v4278_v53, %v4245_v6  ;;  %v4496_v53 = vrot.slane %v4487_v17, %v6999_v11 }
 0xacc   :  { %v6744_v51 = vpop.eup %6743  ;;  %v5783_v30 = vmul.f32 -1.442695, %v4294_v22 }
 0xacd   :  { %v4323_v14 = vadd.f32 1.0, %v6744_v51 }
 0xace   :  { %6745 = vpow2.f32 %v5783_v30 }
 0xacf   :  { %6747 = vrcp.f32 %v4323_v14 }
 0xad8   :  { %v6746_v28 = vpop.eup %6745 }
 0xad9   :  { %v6748_v29 = vpop.eup %6747  ;;  %v4326_v31 = vadd.f32 1.0, %v6746_v28 }
 0xada   :  { %v4347_v5 = vmul.f32 %v6748_v29, %v4291_v9 }
 0xadb   :  { %6749 = vrcp.f32 %v4326_v31 }
 0xadc   :  { %v4355_v2 = vpack.c.bf16 %v4347_v5, %v4347_v5  ;;  %6751 = vrsqrt.f32 %v4181_v21 }
 0xade   :  { %5254 = vmatmul.mubr.bf16.vlgmr.msra.gmra.mrb[16].mxu0 %v4355_v2 }
 0xadf   :  { %5263 = vmatpush1.bf16.msra.mxu0 %v6579_v35 }
 0xae0   :  { %5264 = vmatprep.subr.bf16.mxu0 %v6584_v36 }
 0xae3   :  { %5265 = vmatpush1.bf16.msra.mxu0 %v6582_v1 }
 0xae4   :  { %5266 = vmatprep.subr.bf16.mxu0 %v6587_v38 }
 0xae5   :  { %v6750_v39 = vpop.eup %6749 }
 0xae6   :  { %v4350_v41 = vmul.f32 %v6750_v39, %v4294_v22  ;;  %v6752_v44 = vpop.eup %6751 }
 0xae7   :  { %5267 = vmatpush1.bf16.msra.mxu0 %v6585_v40  ;;  %v4183_v43 = vmul.f32 %v6752_v44, %v7519_v63  ;;  %v6602_v63 = vld [vmem:[#allocation6 + $0x374] ss:$8 sps:$4 sm:$0xff]  }
 0xae8   :  { %5268 = vmatprep.subr.bf16.mxu0 %v6590_v37  ;;  %v4358_v46 = vpack.c.bf16 %v4350_v41, %v4350_v41 }
 0xae9   :  { %v4244_v59 = vmul.f32 %v4225_v33, %v4183_v43 }
 0xaea   :  { %5294 = vmatprep.mubr.bf16.mxu0 %v4358_v46 }
 0xaeb   :  { %5269 = vmatpush1.bf16.msra.mxu0 %v6588_v45  ;;  %v4293_v34 = vadd.f32 %v4274_v15, %v4244_v59 }
 0xaec   :  { %5270 = vmatprep.subr.bf16.mxu0 %v6593_v48 }
 0xaed   :  { %v5782_v56 = vmul.f32 -1.442695, %v4293_v34 }
 0xaef   :  { %5271 = vmatpush1.bf16.msra.mxu0 %v6591_v42  ;;  %6753 = vpow2.f32 %v5782_v56 }
 0xaf0   :  { %5272 = vmatprep.subr.bf16.mxu0 %v6596_v57 }
 0xaf3   :  { %5273 = vmatpush1.bf16.msra.mxu0 %v6594_v52 }
 0xaf4   :  { %5274 = vmatprep.subr.bf16.mxu0 %v6599_v26 }
 0xaf7   :  { %5275 = vmatpush1.bf16.msra.mxu0 %v6597_v54 }
 0xaf8   :  { %5276 = vmatprep.subr.bf16.mxu0 %v6602_v63 }
 0xaf9   :  { %v6754_v0 = vpop.eup %6753 }
 0xafa   :  { %v4325_v3 = vadd.f32 1.0, %v6754_v0 }
 0xafb   :  { %5277 = vmatpush1.bf16.msra.mxu0 %v6600_v49 }
 0xafc   :  { %5278 = vmatprep.subr.bf16.mxu0 %v6605_v25  ;;  %6755 = vrcp.f32 %v4325_v3 }
 0xaff   :  { %5279 = vmatpush1.bf16.msra.mxu0 %v6603_v60 }
 0xb00   :  { %5280 = vmatprep.subr.bf16.mxu0 %v6608_v50 }
 0xb03   :  { %5281 = vmatpush1.bf16.msra.mxu0 %v6606_v16 }
 0xb04   :  { %5282 = vmatprep.subr.bf16.mxu0 %v6611_v61 }
 0xb06   :  { %v6756_v9 = vpop.eup %6755 }
 0xb07   :  { %5283 = vmatpush1.bf16.msra.mxu0 %v6609_v62  ;;  %v4349_v18 = vmul.f32 %v6756_v9, %v4293_v34 }
 0xb08   :  { %5284 = vmatprep.subr.bf16.mxu0 %v6614_v12 }
 0xb09   :  { %v4357_v19 = vpack.c.bf16 %v4349_v18, %v4349_v18 }
 0xb0b   :  { %5285 = vmatpush1.bf16.msra.mxu0 %v6612_v47 }
 0xb0c   :  { %5286 = vmatprep.subr.bf16.mxu0 %v6617_v4 }
 0xb0f   :  { %5287 = vmatpush1.bf16.msra.mxu0 %v6615_v8 }
 0xb10   :  { %5288 = vmatprep.subr.bf16.mxu0 %v6620_v20 }
 0xb13   :  { %5289 = vmatpush1.bf16.msra.mxu0 %v6618_v23 }
 0xb14   :  { %5290 = vmatprep.subr.bf16.mxu0 %v6623_v24 }
 0xb17   :  { %5291 = vmatpush1.bf16.msra.mxu0 %v6621_v7 }
 0xb18   :  { %5292 = vmatprep.subr.bf16.mxu0 %v6626_v55 }
 0xb1b   :  { %5293 = vmatpush1.bf16.msra.mxu0 %v6624_v58 }
 0xb1e   :  { %5295 = vmatmul.mubr.bf16.vlgmr.msra.gmra.mrb[16].mxu0 %v4357_v19 }
 0xbf1   :  { %v5296_v6 = vpop.f32.mrb[16].mxu0 }
 0xbf2   :  { %v5961_v22 = vadd.f32 %v5296_v6, %v4492_v32  ;;  %v5298_v51 = vpop.f32.mrb[17].mxu0 }
 0xbf3   :  { %v5962_v30 = vadd.f32 %v5298_v51, %v4496_v53  ;;  %v5300_v14 = vpop.f32.mrb[18].mxu0 }
 0xbf4   :  { %v5301_v10 = vpop.f32.mrb[19].mxu0 }
 0xbf5   :  { %v5308_v27 = vcombine.low %v5961_v22, %v5962_v30 }
 0xbf7   :  { %5912 = vst.sshfl [vmem:[%s7591_s10] sm:$0x33 pattern:$0x76325410] %v5308_v27 }
 0xbf8   :  { %5326 = vsyncpa [#allocation3], 1 }
 0xbf9   :  { %5327 = vsyncpa [#allocation5], 1 }

</bundles_post_ra>
